<compile_context>
chip_gen: v7x
topology: tpu7x:2x2x1
jax: 0.10.0
libtpu: 0.0.40
codegen_flags: <defaults>
</compile_context>

<pallas_src>
import functools

import jax
import jax.numpy as jnp
from jax import lax
from jax.experimental import pallas as pl
from jax.experimental.pallas import tpu as pltpu


def _round_up(x, m):
    return ((x + m - 1) // m) * m


def _triple(v):
    return (v, v, v) if isinstance(v, int) else tuple(v)


# ----------------------------- Pallas kernels ------------------------------

def _stage_taps(xa_ref, xb_ref, xbuf_ref, xstk_ref, *, tap_offsets, ts, c_in_p):
    """Stage [tile s | halo of tile s+1] and stack the shifted tap slices.

    After this, xstk_ref holds the (n_taps*C_in_p, ts) bf16 RHS of the folded
    implicit-GEMM contraction.  All slices below are STATIC lane offsets (the
    dynamic, block-aligned part lives in the BlockSpec index maps), which is
    the Mosaic-friendly formulation.
    """
    xbuf_ref[:, :ts] = xa_ref[...]
    xbuf_ref[:, ts:] = xb_ref[...]
    for t, off in enumerate(tap_offsets):
        xstk_ref[t * c_in_p:(t + 1) * c_in_p, :] = xbuf_ref[:, off:off + ts]


def _stats_kernel(xa_ref, xb_ref, w_ref, mask_ref, sum_ref, ssq_ref,
                  xbuf_ref, xstk_ref, *, tap_offsets, ts, c_in_p, cs):
    """Folded conv + masked per-channel sum / sum-of-squares (per batch idx)."""
    @pl.when(pl.program_id(1) == 0)
    def _():
        sum_ref[...] = jnp.zeros_like(sum_ref)
        ssq_ref[...] = jnp.zeros_like(ssq_ref)

    _stage_taps(xa_ref, xb_ref, xbuf_ref, xstk_ref,
                tap_offsets=tap_offsets, ts=ts, c_in_p=c_in_p)
    w = w_ref[...]                                    # (C_out_p, n_taps*C_in_p)
    j = 0
    while j < ts:                                     # static unroll (ts/cs chunks)
        c = min(cs, ts - j)
        acc = jnp.dot(w, xstk_ref[:, j:j + c],        # (C_out_p, c) f32
                      preferred_element_type=jnp.float32)
        am = acc * mask_ref[:, j:j + c].astype(jnp.float32)
        sum_ref[...] += jnp.sum(am, axis=1, keepdims=True)
        ssq_ref[...] += jnp.sum(am * acc, axis=1, keepdims=True)
        j += c


def _apply_kernel(xa_ref, xb_ref, w_ref, scale_ref, shift_ref, o_ref,
                  xbuf_ref, xstk_ref, *, tap_offsets, ts, c_in_p, cs):
    """Recompute the folded conv tile and apply the folded BatchNorm affine."""
    _stage_taps(xa_ref, xb_ref, xbuf_ref, xstk_ref,
                tap_offsets=tap_offsets, ts=ts, c_in_p=c_in_p)
    w = w_ref[...]
    sc = scale_ref[...]
    sh = shift_ref[...]
    j = 0
    while j < ts:
        c = min(cs, ts - j)
        acc = jnp.dot(w, xstk_ref[:, j:j + c],
                      preferred_element_type=jnp.float32)
        o_ref[:, j:j + c] = (acc * sc + sh).astype(o_ref.dtype)
        j += c


# ------------------------------- JAX wrapper --------------------------------

def relu_conv_bn(x, weight, gamma, beta, *, stride, padding, dilation,
                 eps=1e-5, block_s=2048, out_dtype=jnp.float32):
    """ReLUConvBN forward.  x: (N, C_in, D, H, W) f32 -> (N, C_out, Do, Ho, Wo)."""
    N, C_in, D, H, W = x.shape
    C_out, _, kd, kh, kw = weight.shape
    sd, sh, sw = _triple(stride)
    pd, ph, pw = _triple(padding)
    dd, dh, dw = _triple(dilation)

    Do = (D + 2 * pd - dd * (kd - 1) - 1) // sd + 1
    Ho = (H + 2 * ph - dh * (kh - 1) - 1) // sh + 1
    Wo = (W + 2 * pw - dw * (kw - 1) - 1) // sw + 1
    Dp, Hp, Wp = D + 2 * pd, H + 2 * ph, W + 2 * pw
    plane = Hp * Wp
    Sp = Dp * plane

    # Pad channels to sublane multiples (zero channels / weight cols are inert).
    C_in_p = _round_up(C_in, 8)
    C_out_p = _round_up(C_out, 8)

    # Flat offsets of the kd*kh*kw conv taps over the padded volume.
    tap_offsets = tuple(a * dd * plane + b * dh * Wp + c * dw
                        for a in range(kd) for b in range(kh) for c in range(kw))
    n_taps = len(tap_offsets)
    t_max = tap_offsets[-1]

    # Halo = lanes of the NEXT tile the farthest tap can reach into.
    halo = _round_up(max(t_max, 1), 128)
    # Lane tile: a multiple of the halo (so the halo index map is exact) and
    # large enough to amortize per-grid-step overhead.
    ts = _round_up(max(block_s, halo), halo)

    s_needed = ((Do - 1) * sd + 1) * plane            # window-origin range
    n_sblk = pl.cdiv(s_needed, ts)
    s_pad = n_sblk * ts
    s_x = _round_up(max(Sp, s_pad + ts), ts)          # flat x length (halo-safe)

    # ReLU + spatial/channel pad + flatten + bf16: one fused pass over x.
    xp = jnp.pad(jnp.maximum(x, 0.0).astype(jnp.bfloat16),
                 ((0, 0), (0, C_in_p - C_in), (pd, pd), (ph, ph), (pw, pw)))
    x_flat = jnp.pad(xp.reshape(N, C_in_p, Sp),
                     ((0, 0), (0, 0), (0, s_x - Sp)))

    # 0/1 mask of flat positions that correspond to real output voxels (bf16:
    # values exact, half the DMA of f32).
    # TODO(synk): generate in-kernel from broadcasted_iota once Mosaic vector
    # int div/mod by arbitrary constants is guaranteed; removes this stream.
    s_idx = jnp.arange(s_pad, dtype=jnp.int32)
    d_i = s_idx // plane
    r_i = s_idx % plane
    h_i = r_i // Wp
    w_i = r_i % Wp
    valid = ((d_i % sd == 0) & (d_i // sd < Do) &
             (h_i % sh == 0) & (h_i // sh < Ho) &
             (w_i % sw == 0) & (w_i // sw < Wo))
    mask = valid.astype(jnp.bfloat16).reshape(1, s_pad)

    # Weights folded along the contraction: (C_out_p, n_taps*C_in_p) bf16,
    # column block t holds the C_in slice of tap t (same order as tap_offsets).
    kdim = n_taps * C_in_p
    w_t = jnp.transpose(weight, (0, 2, 3, 4, 1)).reshape(C_out, n_taps, C_in)
    w_t = jnp.pad(w_t, ((0, C_out_p - C_out), (0, 0), (0, C_in_p - C_in)))
    w_fold = w_t.reshape(C_out_p, kdim).astype(jnp.bfloat16)

    # Lane chunk for the folded matmul: keep the (kdim, cs) bf16 operand small
    # enough (~128 KiB) that register pressure stays bounded.
    cs = min(ts, max(128, ((128 * 1024) // (2 * kdim)) // 128 * 128))

    grid = (N, n_sblk)
    hblk = ts // halo
    x_spec_a = pl.BlockSpec((None, C_in_p, ts), lambda n, s: (n, 0, s))
    x_spec_b = pl.BlockSpec((None, C_in_p, halo),
                            lambda n, s: (n, 0, (s + 1) * hblk))
    w_spec = pl.BlockSpec((C_out_p, kdim), lambda n, s: (0, 0))

    def _scratch():
        return [pltpu.VMEM((C_in_p, ts + halo), jnp.bfloat16),
                pltpu.VMEM((kdim, ts), jnp.bfloat16)]

    # VMEM budget derived from actual block sizes (v7x only has 64 MiB VMEM).
    bb = 2  # bf16 bytes/elem
    vmem_need = (2 * bb * (C_in_p * ts + C_in_p * halo + ts)     # dbl-buffered inputs
                 + bb * C_out_p * _round_up(kdim, 128)           # weights
                 + 2 * bb * C_out_p * ts                         # pass-2 output blocks
                 + bb * (C_in_p * (ts + halo) + kdim * ts)       # scratch
                 + 64 * 1024)                                    # scale/shift/stats etc.
    vmem_limit = int(min(48 * 1024 * 1024,
                         max(16 * 1024 * 1024, 2 * vmem_need)))

    # ---- pass 1: folded implicit-GEMM conv + per-n partial BN statistics ---
    part_sum, part_ssq = pl.pallas_call(
        functools.partial(_stats_kernel, tap_offsets=tap_offsets, ts=ts,
                          c_in_p=C_in_p, cs=cs),
        out_shape=(jax.ShapeDtypeStruct((N, C_out_p, 1), jnp.float32),
                   jax.ShapeDtypeStruct((N, C_out_p, 1), jnp.float32)),
        grid_spec=pltpu.PrefetchScalarGridSpec(
            num_scalar_prefetch=0,
            grid=grid,
            in_specs=[x_spec_a, x_spec_b, w_spec,
                      pl.BlockSpec((1, ts), lambda n, s: (0, s))],
            out_specs=[pl.BlockSpec((None, C_out_p, 1), lambda n, s: (n, 0, 0)),
                       pl.BlockSpec((None, C_out_p, 1), lambda n, s: (n, 0, 0))],
            scratch_shapes=_scratch()),
        compiler_params=pltpu.CompilerParams(
            dimension_semantics=("parallel", "arbitrary"),
            vmem_limit_bytes=vmem_limit),
    )(x_flat, x_flat, w_fold, mask)

    # ---- fold BN batch statistics into a single scale/shift (tiny XLA op) --
    m_cnt = float(N * Do * Ho * Wo)
    ch_sum = jnp.sum(part_sum[..., 0], axis=0)                 # (C_out_p,)
    ch_ssq = jnp.sum(part_ssq[..., 0], axis=0)
    mean = ch_sum / m_cnt
    # TODO(synk): E[x^2]-E[x]^2 in f32 can lose precision for very large
    # N*D*H*W with post-ReLU (positive-mean) activations; switch to a shifted
    # or compensated accumulation if spatial sizes grow.
    var = ch_ssq / m_cnt - mean * mean                         # biased (training BN)
    gamma_p = jnp.pad(gamma.astype(jnp.float32), (0, C_out_p - C_out))
    beta_p = jnp.pad(beta.astype(jnp.float32), (0, C_out_p - C_out))
    scale = gamma_p * lax.rsqrt(var + eps)
    shift = beta_p - mean * scale

    # ---- pass 2: recompute conv, apply BN, store NCDHW channel-major (bf16) -
    y = pl.pallas_call(
        functools.partial(_apply_kernel, tap_offsets=tap_offsets, ts=ts,
                          c_in_p=C_in_p, cs=cs),
        out_shape=jax.ShapeDtypeStruct((N, C_out_p, s_pad), jnp.bfloat16),
        grid_spec=pltpu.PrefetchScalarGridSpec(
            num_scalar_prefetch=0,
            grid=grid,
            in_specs=[x_spec_a, x_spec_b, w_spec,
                      pl.BlockSpec((C_out_p, 1), lambda n, s: (0, 0)),
                      pl.BlockSpec((C_out_p, 1), lambda n, s: (0, 0))],
            out_specs=pl.BlockSpec((None, C_out_p, ts), lambda n, s: (n, 0, s)),
            scratch_shapes=_scratch()),
        compiler_params=pltpu.CompilerParams(
            dimension_semantics=("parallel", "parallel"),
            vmem_limit_bytes=vmem_limit),
    )(x_flat, x_flat, w_fold, scale.reshape(C_out_p, 1),
      shift.reshape(C_out_p, 1))

    # Discard padded channels / garbage window origins (crop runs on bf16; the
    # cast to the final dtype is fused into the same copy).
    dp_used = (Do - 1) * sd + 1
    y = y[:, :C_out, :dp_used * plane].reshape(N, C_out, dp_used, Hp, Wp)
    out = y[:, :, ::sd, 0:(Ho - 1) * sh + 1:sh, 0:(Wo - 1) * sw + 1:sw]
    return out.astype(out_dtype)


# --------------------------------- driver -----------------------------------

if __name__ == "__main__":
    key = jax.random.PRNGKey(0)
    kx, kw_key = jax.random.split(key)

    # ReLUConvBN(C_in=4, C_out=8, kernel_size=3, stride=1, padding=1, dilation=1)
    N, C_in, C_out = 2, 4, 8
    D = H = W = 8
    ks, stride, padding, dilation = 3, 1, 1, 1

    x = jax.random.normal(kx, (N, C_in, D, H, W), dtype=jnp.float32)
    fan_in = C_in * ks ** 3
    bound = (1.0 / fan_in) ** 0.5
    weight = jax.random.uniform(kw_key, (C_out, C_in, ks, ks, ks),
                                minval=-bound, maxval=bound, dtype=jnp.float32)
    gamma = jnp.ones((C_out,), jnp.float32)    # BatchNorm3d affine init
    beta = jnp.zeros((C_out,), jnp.float32)

    out = relu_conv_bn(x, weight, gamma, beta, stride=stride, padding=padding,
                       dilation=dilation)
    out = jax.block_until_ready(out)

    # Reference (plain JAX).  The kernel feeds the MXU bf16 operands with f32
    # accumulation, so build the reference from the same bf16-rounded values.
    xr = jnp.maximum(x, 0.0).astype(jnp.bfloat16).astype(jnp.float32)
    wr = weight.astype(jnp.bfloat16).astype(jnp.float32)
    y_ref = lax.conv_general_dilated(
        xr, wr, window_strides=(stride,) * 3,
        padding=[(padding, padding)] * 3, rhs_dilation=(dilation,) * 3,
        dimension_numbers=("NCDHW", "OIDHW", "NCDHW"),
        precision=lax.Precision.HIGHEST)
    mean = y_ref.mean(axis=(0, 2, 3, 4), keepdims=True)
    var = y_ref.var(axis=(0, 2, 3, 4), keepdims=True)
    ref = ((y_ref - mean) * lax.rsqrt(var + 1e-5)
           * gamma.reshape(1, -1, 1, 1, 1) + beta.reshape(1, -1, 1, 1, 1))

    assert out.shape == ref.shape, (out.shape, ref.shape)
    # Kernel output takes one pass through bf16 (HBM-stream halving), so allow
    # bf16-ulp tolerance on the BN-normalized values.
    err = float(jnp.max(jnp.abs(out - ref)))
    assert jnp.allclose(out, ref, atol=2e-2, rtol=2e-2), err

    print("KERNEL_OK")
</pallas_src>

<mosaic_0001>
module attributes {stable_mosaic.version = 11 : i64} {
  func.func @_stats_kernel(%arg0: i32, %arg1: i32, %arg2: memref<1x8x2048xbf16, #tpu.memory_space<vmem>>, %arg3: memref<1x8x256xbf16, #tpu.memory_space<vmem>>, %arg4: memref<8x216xbf16, #tpu.memory_space<vmem>>, %arg5: memref<1x2048xbf16, #tpu.memory_space<vmem>>, %arg6: memref<1x8x1xf32, #tpu.memory_space<vmem>>, %arg7: memref<1x8x1xf32, #tpu.memory_space<vmem>>, %arg8: memref<8x2304xbf16, #tpu.memory_space<vmem>>, %arg9: memref<216x2048xbf16, #tpu.memory_space<vmem>>) attributes {dimension_semantics = [#tpu.dimension_semantics<parallel>, #tpu.dimension_semantics<arbitrary>], iteration_bounds = array<i64: 2, 1>, scalar_prefetch = 0 : i64, scratch_operands = 2 : i64, tpu.core_type = #tpu.core_type<tc>, window_params = [{transform_indices = @transform_0, window_bounds = array<i64: 1, 8, 2048>}, {transform_indices = @transform_1, window_bounds = array<i64: 1, 8, 256>}, {pipeline_mode = #tpu.pipeline_mode<synchronous>, transform_indices = @transform_2, window_bounds = array<i64: 8, 216>}, {transform_indices = @transform_3, window_bounds = array<i64: 1, 2048>}, {transform_indices = @transform_4, window_bounds = array<i64: 1, 8, 1>}, {transform_indices = @transform_5, window_bounds = array<i64: 1, 8, 1>}]} {
    %c0_i32 = arith.constant 0 : i32
    %0 = arith.cmpi eq, %arg1, %c0_i32 : i32
    %1 = arith.extui %0 : i1 to i32
    %c0_i32_0 = arith.constant 0 : i32
    %2 = arith.cmpi ne, %1, %c0_i32_0 : i32
    scf.if %2 {
      %cst_214 = arith.constant 0.000000e+00 : f32
      %248 = vector.broadcast %cst_214 : f32 to vector<8x1xf32>
      %c0_215 = arith.constant 0 : index
      %c0_216 = arith.constant 0 : index
      %c0_217 = arith.constant 0 : index
      %249 = vector.load %arg6[%c0_215, %c0_216, %c0_217] : memref<1x8x1xf32, #tpu.memory_space<vmem>>, vector<1x8x1xf32>
      %250 = vector.shape_cast %249 : vector<1x8x1xf32> to vector<8x1xf32>
      %251 = vector.shape_cast %248 : vector<8x1xf32> to vector<1x8x1xf32>
      tpu.vector_store %arg6[%c0_215, %c0_216, %c0_217], %251 {strides = array<i32>} : memref<1x8x1xf32, #tpu.memory_space<vmem>>, vector<1x8x1xf32>,
      %cst_218 = arith.constant 0.000000e+00 : f32
      %252 = vector.broadcast %cst_218 : f32 to vector<8x1xf32>
      %c0_219 = arith.constant 0 : index
      %c0_220 = arith.constant 0 : index
      %c0_221 = arith.constant 0 : index
      %253 = vector.load %arg7[%c0_219, %c0_220, %c0_221] : memref<1x8x1xf32, #tpu.memory_space<vmem>>, vector<1x8x1xf32>
      %254 = vector.shape_cast %253 : vector<1x8x1xf32> to vector<8x1xf32>
      %255 = vector.shape_cast %252 : vector<8x1xf32> to vector<1x8x1xf32>
      tpu.vector_store %arg7[%c0_219, %c0_220, %c0_221], %255 {strides = array<i32>} : memref<1x8x1xf32, #tpu.memory_space<vmem>>, vector<1x8x1xf32>,
    } else {
    }
    %c0 = arith.constant 0 : index
    %c0_1 = arith.constant 0 : index
    %c0_2 = arith.constant 0 : index
    %3 = vector.load %arg2[%c0, %c0_1, %c0_2] : memref<1x8x2048xbf16, #tpu.memory_space<vmem>>, vector<1x8x2048xbf16>
    %4 = vector.shape_cast %3 : vector<1x8x2048xbf16> to vector<8x2048xbf16>
    %c0_3 = arith.constant 0 : index
    %c0_4 = arith.constant 0 : index
    %5 = vector.load %arg8[%c0_3, %c0_4] : memref<8x2304xbf16, #tpu.memory_space<vmem>>, vector<8x2048xbf16>
    tpu.vector_store %arg8[%c0_3, %c0_4], %4 {strides = array<i32>} : memref<8x2304xbf16, #tpu.memory_space<vmem>>, vector<8x2048xbf16>,
    %c0_5 = arith.constant 0 : index
    %c0_6 = arith.constant 0 : index
    %c0_7 = arith.constant 0 : index
    %6 = vector.load %arg3[%c0_5, %c0_6, %c0_7] : memref<1x8x256xbf16, #tpu.memory_space<vmem>>, vector<1x8x256xbf16>
    %7 = vector.shape_cast %6 : vector<1x8x256xbf16> to vector<8x256xbf16>
    %c0_8 = arith.constant 0 : index
    %c2048 = arith.constant 2048 : index
    %8 = vector.load %arg8[%c0_8, %c2048] : memref<8x2304xbf16, #tpu.memory_space<vmem>>, vector<8x256xbf16>
    tpu.vector_store %arg8[%c0_8, %c2048], %7 {strides = array<i32>} : memref<8x2304xbf16, #tpu.memory_space<vmem>>, vector<8x256xbf16>,
    %c0_9 = arith.constant 0 : index
    %c0_10 = arith.constant 0 : index
    %9 = vector.load %arg8[%c0_9, %c0_10] : memref<8x2304xbf16, #tpu.memory_space<vmem>>, vector<8x2048xbf16>
    %c0_11 = arith.constant 0 : index
    %c0_12 = arith.constant 0 : index
    %10 = vector.load %arg9[%c0_11, %c0_12] : memref<216x2048xbf16, #tpu.memory_space<vmem>>, vector<8x2048xbf16>
    tpu.vector_store %arg9[%c0_11, %c0_12], %9 {strides = array<i32>} : memref<216x2048xbf16, #tpu.memory_space<vmem>>, vector<8x2048xbf16>,
    %c0_13 = arith.constant 0 : index
    %c1 = arith.constant 1 : index
    %11 = vector.load %arg8[%c0_13, %c1] : memref<8x2304xbf16, #tpu.memory_space<vmem>>, vector<8x2048xbf16>
    %c8 = arith.constant 8 : index
    %c0_14 = arith.constant 0 : index
    %12 = vector.load %arg9[%c8, %c0_14] : memref<216x2048xbf16, #tpu.memory_space<vmem>>, vector<8x2048xbf16>
    tpu.vector_store %arg9[%c8, %c0_14], %11 {strides = array<i32>} : memref<216x2048xbf16, #tpu.memory_space<vmem>>, vector<8x2048xbf16>,
    %c0_15 = arith.constant 0 : index
    %c2 = arith.constant 2 : index
    %13 = vector.load %arg8[%c0_15, %c2] : memref<8x2304xbf16, #tpu.memory_space<vmem>>, vector<8x2048xbf16>
    %c16 = arith.constant 16 : index
    %c0_16 = arith.constant 0 : index
    %14 = vector.load %arg9[%c16, %c0_16] : memref<216x2048xbf16, #tpu.memory_space<vmem>>, vector<8x2048xbf16>
    tpu.vector_store %arg9[%c16, %c0_16], %13 {strides = array<i32>} : memref<216x2048xbf16, #tpu.memory_space<vmem>>, vector<8x2048xbf16>,
    %c0_17 = arith.constant 0 : index
    %c10 = arith.constant 10 : index
    %15 = vector.load %arg8[%c0_17, %c10] : memref<8x2304xbf16, #tpu.memory_space<vmem>>, vector<8x2048xbf16>
    %c24 = arith.constant 24 : index
    %c0_18 = arith.constant 0 : index
    %16 = vector.load %arg9[%c24, %c0_18] : memref<216x2048xbf16, #tpu.memory_space<vmem>>, vector<8x2048xbf16>
    tpu.vector_store %arg9[%c24, %c0_18], %15 {strides = array<i32>} : memref<216x2048xbf16, #tpu.memory_space<vmem>>, vector<8x2048xbf16>,
    %c0_19 = arith.constant 0 : index
    %c11 = arith.constant 11 : index
    %17 = vector.load %arg8[%c0_19, %c11] : memref<8x2304xbf16, #tpu.memory_space<vmem>>, vector<8x2048xbf16>
    %c32 = arith.constant 32 : index
    %c0_20 = arith.constant 0 : index
    %18 = vector.load %arg9[%c32, %c0_20] : memref<216x2048xbf16, #tpu.memory_space<vmem>>, vector<8x2048xbf16>
    tpu.vector_store %arg9[%c32, %c0_20], %17 {strides = array<i32>} : memref<216x2048xbf16, #tpu.memory_space<vmem>>, vector<8x2048xbf16>,
    %c0_21 = arith.constant 0 : index
    %c12 = arith.constant 12 : index
    %19 = vector.load %arg8[%c0_21, %c12] : memref<8x2304xbf16, #tpu.memory_space<vmem>>, vector<8x2048xbf16>
    %c40 = arith.constant 40 : index
    %c0_22 = arith.constant 0 : index
    %20 = vector.load %arg9[%c40, %c0_22] : memref<216x2048xbf16, #tpu.memory_space<vmem>>, vector<8x2048xbf16>
    tpu.vector_store %arg9[%c40, %c0_22], %19 {strides = array<i32>} : memref<216x2048xbf16, #tpu.memory_space<vmem>>, vector<8x2048xbf16>,
    %c0_23 = arith.constant 0 : index
    %c20 = arith.constant 20 : index
    %21 = vector.load %arg8[%c0_23, %c20] : memref<8x2304xbf16, #tpu.memory_space<vmem>>, vector<8x2048xbf16>
    %c48 = arith.constant 48 : index
    %c0_24 = arith.constant 0 : index
    %22 = vector.load %arg9[%c48, %c0_24] : memref<216x2048xbf16, #tpu.memory_space<vmem>>, vector<8x2048xbf16>
    tpu.vector_store %arg9[%c48, %c0_24], %21 {strides = array<i32>} : memref<216x2048xbf16, #tpu.memory_space<vmem>>, vector<8x2048xbf16>,
    %c0_25 = arith.constant 0 : index
    %c21 = arith.constant 21 : index
    %23 = vector.load %arg8[%c0_25, %c21] : memref<8x2304xbf16, #tpu.memory_space<vmem>>, vector<8x2048xbf16>
    %c56 = arith.constant 56 : index
    %c0_26 = arith.constant 0 : index
    %24 = vector.load %arg9[%c56, %c0_26] : memref<216x2048xbf16, #tpu.memory_space<vmem>>, vector<8x2048xbf16>
    tpu.vector_store %arg9[%c56, %c0_26], %23 {strides = array<i32>} : memref<216x2048xbf16, #tpu.memory_space<vmem>>, vector<8x2048xbf16>,
    %c0_27 = arith.constant 0 : index
    %c22 = arith.constant 22 : index
    %25 = vector.load %arg8[%c0_27, %c22] : memref<8x2304xbf16, #tpu.memory_space<vmem>>, vector<8x2048xbf16>
    %c64 = arith.constant 64 : index
    %c0_28 = arith.constant 0 : index
    %26 = vector.load %arg9[%c64, %c0_28] : memref<216x2048xbf16, #tpu.memory_space<vmem>>, vector<8x2048xbf16>
    tpu.vector_store %arg9[%c64, %c0_28], %25 {strides = array<i32>} : memref<216x2048xbf16, #tpu.memory_space<vmem>>, vector<8x2048xbf16>,
    %c0_29 = arith.constant 0 : index
    %c100 = arith.constant 100 : index
    %27 = vector.load %arg8[%c0_29, %c100] : memref<8x2304xbf16, #tpu.memory_space<vmem>>, vector<8x2048xbf16>
    %c72 = arith.constant 72 : index
    %c0_30 = arith.constant 0 : index
    %28 = vector.load %arg9[%c72, %c0_30] : memref<216x2048xbf16, #tpu.memory_space<vmem>>, vector<8x2048xbf16>
    tpu.vector_store %arg9[%c72, %c0_30], %27 {strides = array<i32>} : memref<216x2048xbf16, #tpu.memory_space<vmem>>, vector<8x2048xbf16>,
    %c0_31 = arith.constant 0 : index
    %c101 = arith.constant 101 : index
    %29 = vector.load %arg8[%c0_31, %c101] : memref<8x2304xbf16, #tpu.memory_space<vmem>>, vector<8x2048xbf16>
    %c80 = arith.constant 80 : index
    %c0_32 = arith.constant 0 : index
    %30 = vector.load %arg9[%c80, %c0_32] : memref<216x2048xbf16, #tpu.memory_space<vmem>>, vector<8x2048xbf16>
    tpu.vector_store %arg9[%c80, %c0_32], %29 {strides = array<i32>} : memref<216x2048xbf16, #tpu.memory_space<vmem>>, vector<8x2048xbf16>,
    %c0_33 = arith.constant 0 : index
    %c102 = arith.constant 102 : index
    %31 = vector.load %arg8[%c0_33, %c102] : memref<8x2304xbf16, #tpu.memory_space<vmem>>, vector<8x2048xbf16>
    %c88 = arith.constant 88 : index
    %c0_34 = arith.constant 0 : index
    %32 = vector.load %arg9[%c88, %c0_34] : memref<216x2048xbf16, #tpu.memory_space<vmem>>, vector<8x2048xbf16>
    tpu.vector_store %arg9[%c88, %c0_34], %31 {strides = array<i32>} : memref<216x2048xbf16, #tpu.memory_space<vmem>>, vector<8x2048xbf16>,
    %c0_35 = arith.constant 0 : index
    %c110 = arith.constant 110 : index
    %33 = vector.load %arg8[%c0_35, %c110] : memref<8x2304xbf16, #tpu.memory_space<vmem>>, vector<8x2048xbf16>
    %c96 = arith.constant 96 : index
    %c0_36 = arith.constant 0 : index
    %34 = vector.load %arg9[%c96, %c0_36] : memref<216x2048xbf16, #tpu.memory_space<vmem>>, vector<8x2048xbf16>
    tpu.vector_store %arg9[%c96, %c0_36], %33 {strides = array<i32>} : memref<216x2048xbf16, #tpu.memory_space<vmem>>, vector<8x2048xbf16>,
    %c0_37 = arith.constant 0 : index
    %c111 = arith.constant 111 : index
    %35 = vector.load %arg8[%c0_37, %c111] : memref<8x2304xbf16, #tpu.memory_space<vmem>>, vector<8x2048xbf16>
    %c104 = arith.constant 104 : index
    %c0_38 = arith.constant 0 : index
    %36 = vector.load %arg9[%c104, %c0_38] : memref<216x2048xbf16, #tpu.memory_space<vmem>>, vector<8x2048xbf16>
    tpu.vector_store %arg9[%c104, %c0_38], %35 {strides = array<i32>} : memref<216x2048xbf16, #tpu.memory_space<vmem>>, vector<8x2048xbf16>,
    %c0_39 = arith.constant 0 : index
    %c112 = arith.constant 112 : index
    %37 = vector.load %arg8[%c0_39, %c112] : memref<8x2304xbf16, #tpu.memory_space<vmem>>, vector<8x2048xbf16>
    %c112_40 = arith.constant 112 : index
    %c0_41 = arith.constant 0 : index
    %38 = vector.load %arg9[%c112_40, %c0_41] : memref<216x2048xbf16, #tpu.memory_space<vmem>>, vector<8x2048xbf16>
    tpu.vector_store %arg9[%c112_40, %c0_41], %37 {strides = array<i32>} : memref<216x2048xbf16, #tpu.memory_space<vmem>>, vector<8x2048xbf16>,
    %c0_42 = arith.constant 0 : index
    %c120 = arith.constant 120 : index
    %39 = vector.load %arg8[%c0_42, %c120] : memref<8x2304xbf16, #tpu.memory_space<vmem>>, vector<8x2048xbf16>
    %c120_43 = arith.constant 120 : index
    %c0_44 = arith.constant 0 : index
    %40 = vector.load %arg9[%c120_43, %c0_44] : memref<216x2048xbf16, #tpu.memory_space<vmem>>, vector<8x2048xbf16>
    tpu.vector_store %arg9[%c120_43, %c0_44], %39 {strides = array<i32>} : memref<216x2048xbf16, #tpu.memory_space<vmem>>, vector<8x2048xbf16>,
    %c0_45 = arith.constant 0 : index
    %c121 = arith.constant 121 : index
    %41 = vector.load %arg8[%c0_45, %c121] : memref<8x2304xbf16, #tpu.memory_space<vmem>>, vector<8x2048xbf16>
    %c128 = arith.constant 128 : index
    %c0_46 = arith.constant 0 : index
    %42 = vector.load %arg9[%c128, %c0_46] : memref<216x2048xbf16, #tpu.memory_space<vmem>>, vector<8x2048xbf16>
    tpu.vector_store %arg9[%c128, %c0_46], %41 {strides = array<i32>} : memref<216x2048xbf16, #tpu.memory_space<vmem>>, vector<8x2048xbf16>,
    %c0_47 = arith.constant 0 : index
    %c122 = arith.constant 122 : index
    %43 = vector.load %arg8[%c0_47, %c122] : memref<8x2304xbf16, #tpu.memory_space<vmem>>, vector<8x2048xbf16>
    %c136 = arith.constant 136 : index
    %c0_48 = arith.constant 0 : index
    %44 = vector.load %arg9[%c136, %c0_48] : memref<216x2048xbf16, #tpu.memory_space<vmem>>, vector<8x2048xbf16>
    tpu.vector_store %arg9[%c136, %c0_48], %43 {strides = array<i32>} : memref<216x2048xbf16, #tpu.memory_space<vmem>>, vector<8x2048xbf16>,
    %c0_49 = arith.constant 0 : index
    %c200 = arith.constant 200 : index
    %45 = vector.load %arg8[%c0_49, %c200] : memref<8x2304xbf16, #tpu.memory_space<vmem>>, vector<8x2048xbf16>
    %c144 = arith.constant 144 : index
    %c0_50 = arith.constant 0 : index
    %46 = vector.load %arg9[%c144, %c0_50] : memref<216x2048xbf16, #tpu.memory_space<vmem>>, vector<8x2048xbf16>
    tpu.vector_store %arg9[%c144, %c0_50], %45 {strides = array<i32>} : memref<216x2048xbf16, #tpu.memory_space<vmem>>, vector<8x2048xbf16>,
    %c0_51 = arith.constant 0 : index
    %c201 = arith.constant 201 : index
    %47 = vector.load %arg8[%c0_51, %c201] : memref<8x2304xbf16, #tpu.memory_space<vmem>>, vector<8x2048xbf16>
    %c152 = arith.constant 152 : index
    %c0_52 = arith.constant 0 : index
    %48 = vector.load %arg9[%c152, %c0_52] : memref<216x2048xbf16, #tpu.memory_space<vmem>>, vector<8x2048xbf16>
    tpu.vector_store %arg9[%c152, %c0_52], %47 {strides = array<i32>} : memref<216x2048xbf16, #tpu.memory_space<vmem>>, vector<8x2048xbf16>,
    %c0_53 = arith.constant 0 : index
    %c202 = arith.constant 202 : index
    %49 = vector.load %arg8[%c0_53, %c202] : memref<8x2304xbf16, #tpu.memory_space<vmem>>, vector<8x2048xbf16>
    %c160 = arith.constant 160 : index
    %c0_54 = arith.constant 0 : index
    %50 = vector.load %arg9[%c160, %c0_54] : memref<216x2048xbf16, #tpu.memory_space<vmem>>, vector<8x2048xbf16>
    tpu.vector_store %arg9[%c160, %c0_54], %49 {strides = array<i32>} : memref<216x2048xbf16, #tpu.memory_space<vmem>>, vector<8x2048xbf16>,
    %c0_55 = arith.constant 0 : index
    %c210 = arith.constant 210 : index
    %51 = vector.load %arg8[%c0_55, %c210] : memref<8x2304xbf16, #tpu.memory_space<vmem>>, vector<8x2048xbf16>
    %c168 = arith.constant 168 : index
    %c0_56 = arith.constant 0 : index
    %52 = vector.load %arg9[%c168, %c0_56] : memref<216x2048xbf16, #tpu.memory_space<vmem>>, vector<8x2048xbf16>
    tpu.vector_store %arg9[%c168, %c0_56], %51 {strides = array<i32>} : memref<216x2048xbf16, #tpu.memory_space<vmem>>, vector<8x2048xbf16>,
    %c0_57 = arith.constant 0 : index
    %c211 = arith.constant 211 : index
    %53 = vector.load %arg8[%c0_57, %c211] : memref<8x2304xbf16, #tpu.memory_space<vmem>>, vector<8x2048xbf16>
    %c176 = arith.constant 176 : index
    %c0_58 = arith.constant 0 : index
    %54 = vector.load %arg9[%c176, %c0_58] : memref<216x2048xbf16, #tpu.memory_space<vmem>>, vector<8x2048xbf16>
    tpu.vector_store %arg9[%c176, %c0_58], %53 {strides = array<i32>} : memref<216x2048xbf16, #tpu.memory_space<vmem>>, vector<8x2048xbf16>,
    %c0_59 = arith.constant 0 : index
    %c212 = arith.constant 212 : index
    %55 = vector.load %arg8[%c0_59, %c212] : memref<8x2304xbf16, #tpu.memory_space<vmem>>, vector<8x2048xbf16>
    %c184 = arith.constant 184 : index
    %c0_60 = arith.constant 0 : index
    %56 = vector.load %arg9[%c184, %c0_60] : memref<216x2048xbf16, #tpu.memory_space<vmem>>, vector<8x2048xbf16>
    tpu.vector_store %arg9[%c184, %c0_60], %55 {strides = array<i32>} : memref<216x2048xbf16, #tpu.memory_space<vmem>>, vector<8x2048xbf16>,
    %c0_61 = arith.constant 0 : index
    %c220 = arith.constant 220 : index
    %57 = vector.load %arg8[%c0_61, %c220] : memref<8x2304xbf16, #tpu.memory_space<vmem>>, vector<8x2048xbf16>
    %c192 = arith.constant 192 : index
    %c0_62 = arith.constant 0 : index
    %58 = vector.load %arg9[%c192, %c0_62] : memref<216x2048xbf16, #tpu.memory_space<vmem>>, vector<8x2048xbf16>
    tpu.vector_store %arg9[%c192, %c0_62], %57 {strides = array<i32>} : memref<216x2048xbf16, #tpu.memory_space<vmem>>, vector<8x2048xbf16>,
    %c0_63 = arith.constant 0 : index
    %c221 = arith.constant 221 : index
    %59 = vector.load %arg8[%c0_63, %c221] : memref<8x2304xbf16, #tpu.memory_space<vmem>>, vector<8x2048xbf16>
    %c200_64 = arith.constant 200 : index
    %c0_65 = arith.constant 0 : index
    %60 = vector.load %arg9[%c200_64, %c0_65] : memref<216x2048xbf16, #tpu.memory_space<vmem>>, vector<8x2048xbf16>
    tpu.vector_store %arg9[%c200_64, %c0_65], %59 {strides = array<i32>} : memref<216x2048xbf16, #tpu.memory_space<vmem>>, vector<8x2048xbf16>,
    %c0_66 = arith.constant 0 : index
    %c222 = arith.constant 222 : index
    %61 = vector.load %arg8[%c0_66, %c222] : memref<8x2304xbf16, #tpu.memory_space<vmem>>, vector<8x2048xbf16>
    %c208 = arith.constant 208 : index
    %c0_67 = arith.constant 0 : index
    %62 = vector.load %arg9[%c208, %c0_67] : memref<216x2048xbf16, #tpu.memory_space<vmem>>, vector<8x2048xbf16>
    tpu.vector_store %arg9[%c208, %c0_67], %61 {strides = array<i32>} : memref<216x2048xbf16, #tpu.memory_space<vmem>>, vector<8x2048xbf16>,
    %c0_68 = arith.constant 0 : index
    %c0_69 = arith.constant 0 : index
    %63 = vector.load %arg4[%c0_68, %c0_69] : memref<8x216xbf16, #tpu.memory_space<vmem>>, vector<8x216xbf16>
    %c0_70 = arith.constant 0 : index
    %c0_71 = arith.constant 0 : index
    %64 = vector.load %arg9[%c0_70, %c0_71] : memref<216x2048xbf16, #tpu.memory_space<vmem>>, vector<216x256xbf16>
    %cst = arith.constant dense<0.000000e+00> : vector<8x256xf32>
    %65 = tpu.matmul %63, %64, %cst {dimension_numbers = #tpu.dot_dimension_numbers<[1], [0], [0], [1], [0, 0, 1, 1], [], []>} : vector<8x216xbf16>, vector<216x256xbf16>, vector<8x256xf32> -> vector<8x256xf32>
    %c0_72 = arith.constant 0 : index
    %c0_73 = arith.constant 0 : index
    %66 = vector.load %arg5[%c0_72, %c0_73] : memref<1x2048xbf16, #tpu.memory_space<vmem>>, vector<1x256xbf16>
    %67 = arith.extf %66 : vector<1x256xbf16> to vector<1x256xf32>
    %68 = vector.broadcast %67 : vector<1x256xf32> to vector<8x256xf32>
    %69 = arith.mulf %65, %68 : vector<8x256xf32>
    %c0_74 = arith.constant 0 : index
    %c0_75 = arith.constant 0 : index
    %c0_76 = arith.constant 0 : index
    %70 = vector.load %arg6[%c0_74, %c0_75, %c0_76] : memref<1x8x1xf32, #tpu.memory_space<vmem>>, vector<1x8x1xf32>
    %71 = vector.shape_cast %70 : vector<1x8x1xf32> to vector<8x1xf32>
    %cst_77 = arith.constant dense<0.000000e+00> : vector<8xf32>
    %72 = vector.multi_reduction <add>, %69, %cst_77 [1] : vector<8x256xf32> to vector<8xf32>
    %73 = vector.shape_cast %72 : vector<8xf32> to vector<8x1xf32>
    %74 = arith.addf %71, %73 : vector<8x1xf32>
    %c0_78 = arith.constant 0 : index
    %c0_79 = arith.constant 0 : index
    %c0_80 = arith.constant 0 : index
    %75 = vector.load %arg6[%c0_78, %c0_79, %c0_80] : memref<1x8x1xf32, #tpu.memory_space<vmem>>, vector<1x8x1xf32>
    %76 = vector.shape_cast %75 : vector<1x8x1xf32> to vector<8x1xf32>
    %77 = vector.shape_cast %74 : vector<8x1xf32> to vector<1x8x1xf32>
    tpu.vector_store %arg6[%c0_78, %c0_79, %c0_80], %77 {strides = array<i32>} : memref<1x8x1xf32, #tpu.memory_space<vmem>>, vector<1x8x1xf32>,
    %c0_81 = arith.constant 0 : index
    %c0_82 = arith.constant 0 : index
    %c0_83 = arith.constant 0 : index
    %78 = vector.load %arg7[%c0_81, %c0_82, %c0_83] : memref<1x8x1xf32, #tpu.memory_space<vmem>>, vector<1x8x1xf32>
    %79 = vector.shape_cast %78 : vector<1x8x1xf32> to vector<8x1xf32>
    %80 = arith.mulf %69, %65 : vector<8x256xf32>
    %cst_84 = arith.constant dense<0.000000e+00> : vector<8xf32>
    %81 = vector.multi_reduction <add>, %80, %cst_84 [1] : vector<8x256xf32> to vector<8xf32>
    %82 = vector.shape_cast %81 : vector<8xf32> to vector<8x1xf32>
    %83 = arith.addf %79, %82 : vector<8x1xf32>
    %c0_85 = arith.constant 0 : index
    %c0_86 = arith.constant 0 : index
    %c0_87 = arith.constant 0 : index
    %84 = vector.load %arg7[%c0_85, %c0_86, %c0_87] : memref<1x8x1xf32, #tpu.memory_space<vmem>>, vector<1x8x1xf32>
    %85 = vector.shape_cast %84 : vector<1x8x1xf32> to vector<8x1xf32>
    %86 = vector.shape_cast %83 : vector<8x1xf32> to vector<1x8x1xf32>
    tpu.vector_store %arg7[%c0_85, %c0_86, %c0_87], %86 {strides = array<i32>} : memref<1x8x1xf32, #tpu.memory_space<vmem>>, vector<1x8x1xf32>,
    %c0_88 = arith.constant 0 : index
    %c256 = arith.constant 256 : index
    %87 = vector.load %arg9[%c0_88, %c256] : memref<216x2048xbf16, #tpu.memory_space<vmem>>, vector<216x256xbf16>
    %cst_89 = arith.constant dense<0.000000e+00> : vector<8x256xf32>
    %88 = tpu.matmul %63, %87, %cst_89 {dimension_numbers = #tpu.dot_dimension_numbers<[1], [0], [0], [1], [0, 0, 1, 1], [], []>} : vector<8x216xbf16>, vector<216x256xbf16>, vector<8x256xf32> -> vector<8x256xf32>
    %c0_90 = arith.constant 0 : index
    %c256_91 = arith.constant 256 : index
    %89 = vector.load %arg5[%c0_90, %c256_91] : memref<1x2048xbf16, #tpu.memory_space<vmem>>, vector<1x256xbf16>
    %90 = arith.extf %89 : vector<1x256xbf16> to vector<1x256xf32>
    %91 = vector.broadcast %90 : vector<1x256xf32> to vector<8x256xf32>
    %92 = arith.mulf %88, %91 : vector<8x256xf32>
    %c0_92 = arith.constant 0 : index
    %c0_93 = arith.constant 0 : index
    %c0_94 = arith.constant 0 : index
    %93 = vector.load %arg6[%c0_92, %c0_93, %c0_94] : memref<1x8x1xf32, #tpu.memory_space<vmem>>, vector<1x8x1xf32>
    %94 = vector.shape_cast %93 : vector<1x8x1xf32> to vector<8x1xf32>
    %cst_95 = arith.constant dense<0.000000e+00> : vector<8xf32>
    %95 = vector.multi_reduction <add>, %92, %cst_95 [1] : vector<8x256xf32> to vector<8xf32>
    %96 = vector.shape_cast %95 : vector<8xf32> to vector<8x1xf32>
    %97 = arith.addf %94, %96 : vector<8x1xf32>
    %c0_96 = arith.constant 0 : index
    %c0_97 = arith.constant 0 : index
    %c0_98 = arith.constant 0 : index
    %98 = vector.load %arg6[%c0_96, %c0_97, %c0_98] : memref<1x8x1xf32, #tpu.memory_space<vmem>>, vector<1x8x1xf32>
    %99 = vector.shape_cast %98 : vector<1x8x1xf32> to vector<8x1xf32>
    %100 = vector.shape_cast %97 : vector<8x1xf32> to vector<1x8x1xf32>
    tpu.vector_store %arg6[%c0_96, %c0_97, %c0_98], %100 {strides = array<i32>} : memref<1x8x1xf32, #tpu.memory_space<vmem>>, vector<1x8x1xf32>,
    %c0_99 = arith.constant 0 : index
    %c0_100 = arith.constant 0 : index
    %c0_101 = arith.constant 0 : index
    %101 = vector.load %arg7[%c0_99, %c0_100, %c0_101] : memref<1x8x1xf32, #tpu.memory_space<vmem>>, vector<1x8x1xf32>
    %102 = vector.shape_cast %101 : vector<1x8x1xf32> to vector<8x1xf32>
    %103 = arith.mulf %92, %88 : vector<8x256xf32>
    %cst_102 = arith.constant dense<0.000000e+00> : vector<8xf32>
    %104 = vector.multi_reduction <add>, %103, %cst_102 [1] : vector<8x256xf32> to vector<8xf32>
    %105 = vector.shape_cast %104 : vector<8xf32> to vector<8x1xf32>
    %106 = arith.addf %102, %105 : vector<8x1xf32>
    %c0_103 = arith.constant 0 : index
    %c0_104 = arith.constant 0 : index
    %c0_105 = arith.constant 0 : index
    %107 = vector.load %arg7[%c0_103, %c0_104, %c0_105] : memref<1x8x1xf32, #tpu.memory_space<vmem>>, vector<1x8x1xf32>
    %108 = vector.shape_cast %107 : vector<1x8x1xf32> to vector<8x1xf32>
    %109 = vector.shape_cast %106 : vector<8x1xf32> to vector<1x8x1xf32>
    tpu.vector_store %arg7[%c0_103, %c0_104, %c0_105], %109 {strides = array<i32>} : memref<1x8x1xf32, #tpu.memory_space<vmem>>, vector<1x8x1xf32>,
    %c0_106 = arith.constant 0 : index
    %c512 = arith.constant 512 : index
    %110 = vector.load %arg9[%c0_106, %c512] : memref<216x2048xbf16, #tpu.memory_space<vmem>>, vector<216x256xbf16>
    %cst_107 = arith.constant dense<0.000000e+00> : vector<8x256xf32>
    %111 = tpu.matmul %63, %110, %cst_107 {dimension_numbers = #tpu.dot_dimension_numbers<[1], [0], [0], [1], [0, 0, 1, 1], [], []>} : vector<8x216xbf16>, vector<216x256xbf16>, vector<8x256xf32> -> vector<8x256xf32>
    %c0_108 = arith.constant 0 : index
    %c512_109 = arith.constant 512 : index
    %112 = vector.load %arg5[%c0_108, %c512_109] : memref<1x2048xbf16, #tpu.memory_space<vmem>>, vector<1x256xbf16>
    %113 = arith.extf %112 : vector<1x256xbf16> to vector<1x256xf32>
    %114 = vector.broadcast %113 : vector<1x256xf32> to vector<8x256xf32>
    %115 = arith.mulf %111, %114 : vector<8x256xf32>
    %c0_110 = arith.constant 0 : index
    %c0_111 = arith.constant 0 : index
    %c0_112 = arith.constant 0 : index
    %116 = vector.load %arg6[%c0_110, %c0_111, %c0_112] : memref<1x8x1xf32, #tpu.memory_space<vmem>>, vector<1x8x1xf32>
    %117 = vector.shape_cast %116 : vector<1x8x1xf32> to vector<8x1xf32>
    %cst_113 = arith.constant dense<0.000000e+00> : vector<8xf32>
    %118 = vector.multi_reduction <add>, %115, %cst_113 [1] : vector<8x256xf32> to vector<8xf32>
    %119 = vector.shape_cast %118 : vector<8xf32> to vector<8x1xf32>
    %120 = arith.addf %117, %119 : vector<8x1xf32>
    %c0_114 = arith.constant 0 : index
    %c0_115 = arith.constant 0 : index
    %c0_116 = arith.constant 0 : index
    %121 = vector.load %arg6[%c0_114, %c0_115, %c0_116] : memref<1x8x1xf32, #tpu.memory_space<vmem>>, vector<1x8x1xf32>
    %122 = vector.shape_cast %121 : vector<1x8x1xf32> to vector<8x1xf32>
    %123 = vector.shape_cast %120 : vector<8x1xf32> to vector<1x8x1xf32>
    tpu.vector_store %arg6[%c0_114, %c0_115, %c0_116], %123 {strides = array<i32>} : memref<1x8x1xf32, #tpu.memory_space<vmem>>, vector<1x8x1xf32>,
    %c0_117 = arith.constant 0 : index
    %c0_118 = arith.constant 0 : index
    %c0_119 = arith.constant 0 : index
    %124 = vector.load %arg7[%c0_117, %c0_118, %c0_119] : memref<1x8x1xf32, #tpu.memory_space<vmem>>, vector<1x8x1xf32>
    %125 = vector.shape_cast %124 : vector<1x8x1xf32> to vector<8x1xf32>
    %126 = arith.mulf %115, %111 : vector<8x256xf32>
    %cst_120 = arith.constant dense<0.000000e+00> : vector<8xf32>
    %127 = vector.multi_reduction <add>, %126, %cst_120 [1] : vector<8x256xf32> to vector<8xf32>
    %128 = vector.shape_cast %127 : vector<8xf32> to vector<8x1xf32>
    %129 = arith.addf %125, %128 : vector<8x1xf32>
    %c0_121 = arith.constant 0 : index
    %c0_122 = arith.constant 0 : index
    %c0_123 = arith.constant 0 : index
    %130 = vector.load %arg7[%c0_121, %c0_122, %c0_123] : memref<1x8x1xf32, #tpu.memory_space<vmem>>, vector<1x8x1xf32>
    %131 = vector.shape_cast %130 : vector<1x8x1xf32> to vector<8x1xf32>
    %132 = vector.shape_cast %129 : vector<8x1xf32> to vector<1x8x1xf32>
    tpu.vector_store %arg7[%c0_121, %c0_122, %c0_123], %132 {strides = array<i32>} : memref<1x8x1xf32, #tpu.memory_space<vmem>>, vector<1x8x1xf32>,
    %c0_124 = arith.constant 0 : index
    %c768 = arith.constant 768 : index
    %133 = vector.load %arg9[%c0_124, %c768] : memref<216x2048xbf16, #tpu.memory_space<vmem>>, vector<216x256xbf16>
    %cst_125 = arith.constant dense<0.000000e+00> : vector<8x256xf32>
    %134 = tpu.matmul %63, %133, %cst_125 {dimension_numbers = #tpu.dot_dimension_numbers<[1], [0], [0], [1], [0, 0, 1, 1], [], []>} : vector<8x216xbf16>, vector<216x256xbf16>, vector<8x256xf32> -> vector<8x256xf32>
    %c0_126 = arith.constant 0 : index
    %c768_127 = arith.constant 768 : index
    %135 = vector.load %arg5[%c0_126, %c768_127] : memref<1x2048xbf16, #tpu.memory_space<vmem>>, vector<1x256xbf16>
    %136 = arith.extf %135 : vector<1x256xbf16> to vector<1x256xf32>
    %137 = vector.broadcast %136 : vector<1x256xf32> to vector<8x256xf32>
    %138 = arith.mulf %134, %137 : vector<8x256xf32>
    %c0_128 = arith.constant 0 : index
    %c0_129 = arith.constant 0 : index
    %c0_130 = arith.constant 0 : index
    %139 = vector.load %arg6[%c0_128, %c0_129, %c0_130] : memref<1x8x1xf32, #tpu.memory_space<vmem>>, vector<1x8x1xf32>
    %140 = vector.shape_cast %139 : vector<1x8x1xf32> to vector<8x1xf32>
    %cst_131 = arith.constant dense<0.000000e+00> : vector<8xf32>
    %141 = vector.multi_reduction <add>, %138, %cst_131 [1] : vector<8x256xf32> to vector<8xf32>
    %142 = vector.shape_cast %141 : vector<8xf32> to vector<8x1xf32>
    %143 = arith.addf %140, %142 : vector<8x1xf32>
    %c0_132 = arith.constant 0 : index
    %c0_133 = arith.constant 0 : index
    %c0_134 = arith.constant 0 : index
    %144 = vector.load %arg6[%c0_132, %c0_133, %c0_134] : memref<1x8x1xf32, #tpu.memory_space<vmem>>, vector<1x8x1xf32>
    %145 = vector.shape_cast %144 : vector<1x8x1xf32> to vector<8x1xf32>
    %146 = vector.shape_cast %143 : vector<8x1xf32> to vector<1x8x1xf32>
    tpu.vector_store %arg6[%c0_132, %c0_133, %c0_134], %146 {strides = array<i32>} : memref<1x8x1xf32, #tpu.memory_space<vmem>>, vector<1x8x1xf32>,
    %c0_135 = arith.constant 0 : index
    %c0_136 = arith.constant 0 : index
    %c0_137 = arith.constant 0 : index
    %147 = vector.load %arg7[%c0_135, %c0_136, %c0_137] : memref<1x8x1xf32, #tpu.memory_space<vmem>>, vector<1x8x1xf32>
    %148 = vector.shape_cast %147 : vector<1x8x1xf32> to vector<8x1xf32>
    %149 = arith.mulf %138, %134 : vector<8x256xf32>
    %cst_138 = arith.constant dense<0.000000e+00> : vector<8xf32>
    %150 = vector.multi_reduction <add>, %149, %cst_138 [1] : vector<8x256xf32> to vector<8xf32>
    %151 = vector.shape_cast %150 : vector<8xf32> to vector<8x1xf32>
    %152 = arith.addf %148, %151 : vector<8x1xf32>
    %c0_139 = arith.constant 0 : index
    %c0_140 = arith.constant 0 : index
    %c0_141 = arith.constant 0 : index
    %153 = vector.load %arg7[%c0_139, %c0_140, %c0_141] : memref<1x8x1xf32, #tpu.memory_space<vmem>>, vector<1x8x1xf32>
    %154 = vector.shape_cast %153 : vector<1x8x1xf32> to vector<8x1xf32>
    %155 = vector.shape_cast %152 : vector<8x1xf32> to vector<1x8x1xf32>
    tpu.vector_store %arg7[%c0_139, %c0_140, %c0_141], %155 {strides = array<i32>} : memref<1x8x1xf32, #tpu.memory_space<vmem>>, vector<1x8x1xf32>,
    %c0_142 = arith.constant 0 : index
    %c1024 = arith.constant 1024 : index
    %156 = vector.load %arg9[%c0_142, %c1024] : memref<216x2048xbf16, #tpu.memory_space<vmem>>, vector<216x256xbf16>
    %cst_143 = arith.constant dense<0.000000e+00> : vector<8x256xf32>
    %157 = tpu.matmul %63, %156, %cst_143 {dimension_numbers = #tpu.dot_dimension_numbers<[1], [0], [0], [1], [0, 0, 1, 1], [], []>} : vector<8x216xbf16>, vector<216x256xbf16>, vector<8x256xf32> -> vector<8x256xf32>
    %c0_144 = arith.constant 0 : index
    %c1024_145 = arith.constant 1024 : index
    %158 = vector.load %arg5[%c0_144, %c1024_145] : memref<1x2048xbf16, #tpu.memory_space<vmem>>, vector<1x256xbf16>
    %159 = arith.extf %158 : vector<1x256xbf16> to vector<1x256xf32>
    %160 = vector.broadcast %159 : vector<1x256xf32> to vector<8x256xf32>
    %161 = arith.mulf %157, %160 : vector<8x256xf32>
    %c0_146 = arith.constant 0 : index
    %c0_147 = arith.constant 0 : index
    %c0_148 = arith.constant 0 : index
    %162 = vector.load %arg6[%c0_146, %c0_147, %c0_148] : memref<1x8x1xf32, #tpu.memory_space<vmem>>, vector<1x8x1xf32>
    %163 = vector.shape_cast %162 : vector<1x8x1xf32> to vector<8x1xf32>
    %cst_149 = arith.constant dense<0.000000e+00> : vector<8xf32>
    %164 = vector.multi_reduction <add>, %161, %cst_149 [1] : vector<8x256xf32> to vector<8xf32>
    %165 = vector.shape_cast %164 : vector<8xf32> to vector<8x1xf32>
    %166 = arith.addf %163, %165 : vector<8x1xf32>
    %c0_150 = arith.constant 0 : index
    %c0_151 = arith.constant 0 : index
    %c0_152 = arith.constant 0 : index
    %167 = vector.load %arg6[%c0_150, %c0_151, %c0_152] : memref<1x8x1xf32, #tpu.memory_space<vmem>>, vector<1x8x1xf32>
    %168 = vector.shape_cast %167 : vector<1x8x1xf32> to vector<8x1xf32>
    %169 = vector.shape_cast %166 : vector<8x1xf32> to vector<1x8x1xf32>
    tpu.vector_store %arg6[%c0_150, %c0_151, %c0_152], %169 {strides = array<i32>} : memref<1x8x1xf32, #tpu.memory_space<vmem>>, vector<1x8x1xf32>,
    %c0_153 = arith.constant 0 : index
    %c0_154 = arith.constant 0 : index
    %c0_155 = arith.constant 0 : index
    %170 = vector.load %arg7[%c0_153, %c0_154, %c0_155] : memref<1x8x1xf32, #tpu.memory_space<vmem>>, vector<1x8x1xf32>
    %171 = vector.shape_cast %170 : vector<1x8x1xf32> to vector<8x1xf32>
    %172 = arith.mulf %161, %157 : vector<8x256xf32>
    %cst_156 = arith.constant dense<0.000000e+00> : vector<8xf32>
    %173 = vector.multi_reduction <add>, %172, %cst_156 [1] : vector<8x256xf32> to vector<8xf32>
    %174 = vector.shape_cast %173 : vector<8xf32> to vector<8x1xf32>
    %175 = arith.addf %171, %174 : vector<8x1xf32>
    %c0_157 = arith.constant 0 : index
    %c0_158 = arith.constant 0 : index
    %c0_159 = arith.constant 0 : index
    %176 = vector.load %arg7[%c0_157, %c0_158, %c0_159] : memref<1x8x1xf32, #tpu.memory_space<vmem>>, vector<1x8x1xf32>
    %177 = vector.shape_cast %176 : vector<1x8x1xf32> to vector<8x1xf32>
    %178 = vector.shape_cast %175 : vector<8x1xf32> to vector<1x8x1xf32>
    tpu.vector_store %arg7[%c0_157, %c0_158, %c0_159], %178 {strides = array<i32>} : memref<1x8x1xf32, #tpu.memory_space<vmem>>, vector<1x8x1xf32>,
    %c0_160 = arith.constant 0 : index
    %c1280 = arith.constant 1280 : index
    %179 = vector.load %arg9[%c0_160, %c1280] : memref<216x2048xbf16, #tpu.memory_space<vmem>>, vector<216x256xbf16>
    %cst_161 = arith.constant dense<0.000000e+00> : vector<8x256xf32>
    %180 = tpu.matmul %63, %179, %cst_161 {dimension_numbers = #tpu.dot_dimension_numbers<[1], [0], [0], [1], [0, 0, 1, 1], [], []>} : vector<8x216xbf16>, vector<216x256xbf16>, vector<8x256xf32> -> vector<8x256xf32>
    %c0_162 = arith.constant 0 : index
    %c1280_163 = arith.constant 1280 : index
    %181 = vector.load %arg5[%c0_162, %c1280_163] : memref<1x2048xbf16, #tpu.memory_space<vmem>>, vector<1x256xbf16>
    %182 = arith.extf %181 : vector<1x256xbf16> to vector<1x256xf32>
    %183 = vector.broadcast %182 : vector<1x256xf32> to vector<8x256xf32>
    %184 = arith.mulf %180, %183 : vector<8x256xf32>
    %c0_164 = arith.constant 0 : index
    %c0_165 = arith.constant 0 : index
    %c0_166 = arith.constant 0 : index
    %185 = vector.load %arg6[%c0_164, %c0_165, %c0_166] : memref<1x8x1xf32, #tpu.memory_space<vmem>>, vector<1x8x1xf32>
    %186 = vector.shape_cast %185 : vector<1x8x1xf32> to vector<8x1xf32>
    %cst_167 = arith.constant dense<0.000000e+00> : vector<8xf32>
    %187 = vector.multi_reduction <add>, %184, %cst_167 [1] : vector<8x256xf32> to vector<8xf32>
    %188 = vector.shape_cast %187 : vector<8xf32> to vector<8x1xf32>
    %189 = arith.addf %186, %188 : vector<8x1xf32>
    %c0_168 = arith.constant 0 : index
    %c0_169 = arith.constant 0 : index
    %c0_170 = arith.constant 0 : index
    %190 = vector.load %arg6[%c0_168, %c0_169, %c0_170] : memref<1x8x1xf32, #tpu.memory_space<vmem>>, vector<1x8x1xf32>
    %191 = vector.shape_cast %190 : vector<1x8x1xf32> to vector<8x1xf32>
    %192 = vector.shape_cast %189 : vector<8x1xf32> to vector<1x8x1xf32>
    tpu.vector_store %arg6[%c0_168, %c0_169, %c0_170], %192 {strides = array<i32>} : memref<1x8x1xf32, #tpu.memory_space<vmem>>, vector<1x8x1xf32>,
    %c0_171 = arith.constant 0 : index
    %c0_172 = arith.constant 0 : index
    %c0_173 = arith.constant 0 : index
    %193 = vector.load %arg7[%c0_171, %c0_172, %c0_173] : memref<1x8x1xf32, #tpu.memory_space<vmem>>, vector<1x8x1xf32>
    %194 = vector.shape_cast %193 : vector<1x8x1xf32> to vector<8x1xf32>
    %195 = arith.mulf %184, %180 : vector<8x256xf32>
    %cst_174 = arith.constant dense<0.000000e+00> : vector<8xf32>
    %196 = vector.multi_reduction <add>, %195, %cst_174 [1] : vector<8x256xf32> to vector<8xf32>
    %197 = vector.shape_cast %196 : vector<8xf32> to vector<8x1xf32>
    %198 = arith.addf %194, %197 : vector<8x1xf32>
    %c0_175 = arith.constant 0 : index
    %c0_176 = arith.constant 0 : index
    %c0_177 = arith.constant 0 : index
    %199 = vector.load %arg7[%c0_175, %c0_176, %c0_177] : memref<1x8x1xf32, #tpu.memory_space<vmem>>, vector<1x8x1xf32>
    %200 = vector.shape_cast %199 : vector<1x8x1xf32> to vector<8x1xf32>
    %201 = vector.shape_cast %198 : vector<8x1xf32> to vector<1x8x1xf32>
    tpu.vector_store %arg7[%c0_175, %c0_176, %c0_177], %201 {strides = array<i32>} : memref<1x8x1xf32, #tpu.memory_space<vmem>>, vector<1x8x1xf32>,
    %c0_178 = arith.constant 0 : index
    %c1536 = arith.constant 1536 : index
    %202 = vector.load %arg9[%c0_178, %c1536] : memref<216x2048xbf16, #tpu.memory_space<vmem>>, vector<216x256xbf16>
    %cst_179 = arith.constant dense<0.000000e+00> : vector<8x256xf32>
    %203 = tpu.matmul %63, %202, %cst_179 {dimension_numbers = #tpu.dot_dimension_numbers<[1], [0], [0], [1], [0, 0, 1, 1], [], []>} : vector<8x216xbf16>, vector<216x256xbf16>, vector<8x256xf32> -> vector<8x256xf32>
    %c0_180 = arith.constant 0 : index
    %c1536_181 = arith.constant 1536 : index
    %204 = vector.load %arg5[%c0_180, %c1536_181] : memref<1x2048xbf16, #tpu.memory_space<vmem>>, vector<1x256xbf16>
    %205 = arith.extf %204 : vector<1x256xbf16> to vector<1x256xf32>
    %206 = vector.broadcast %205 : vector<1x256xf32> to vector<8x256xf32>
    %207 = arith.mulf %203, %206 : vector<8x256xf32>
    %c0_182 = arith.constant 0 : index
    %c0_183 = arith.constant 0 : index
    %c0_184 = arith.constant 0 : index
    %208 = vector.load %arg6[%c0_182, %c0_183, %c0_184] : memref<1x8x1xf32, #tpu.memory_space<vmem>>, vector<1x8x1xf32>
    %209 = vector.shape_cast %208 : vector<1x8x1xf32> to vector<8x1xf32>
    %cst_185 = arith.constant dense<0.000000e+00> : vector<8xf32>
    %210 = vector.multi_reduction <add>, %207, %cst_185 [1] : vector<8x256xf32> to vector<8xf32>
    %211 = vector.shape_cast %210 : vector<8xf32> to vector<8x1xf32>
    %212 = arith.addf %209, %211 : vector<8x1xf32>
    %c0_186 = arith.constant 0 : index
    %c0_187 = arith.constant 0 : index
    %c0_188 = arith.constant 0 : index
    %213 = vector.load %arg6[%c0_186, %c0_187, %c0_188] : memref<1x8x1xf32, #tpu.memory_space<vmem>>, vector<1x8x1xf32>
    %214 = vector.shape_cast %213 : vector<1x8x1xf32> to vector<8x1xf32>
    %215 = vector.shape_cast %212 : vector<8x1xf32> to vector<1x8x1xf32>
    tpu.vector_store %arg6[%c0_186, %c0_187, %c0_188], %215 {strides = array<i32>} : memref<1x8x1xf32, #tpu.memory_space<vmem>>, vector<1x8x1xf32>,
    %c0_189 = arith.constant 0 : index
    %c0_190 = arith.constant 0 : index
    %c0_191 = arith.constant 0 : index
    %216 = vector.load %arg7[%c0_189, %c0_190, %c0_191] : memref<1x8x1xf32, #tpu.memory_space<vmem>>, vector<1x8x1xf32>
    %217 = vector.shape_cast %216 : vector<1x8x1xf32> to vector<8x1xf32>
    %218 = arith.mulf %207, %203 : vector<8x256xf32>
    %cst_192 = arith.constant dense<0.000000e+00> : vector<8xf32>
    %219 = vector.multi_reduction <add>, %218, %cst_192 [1] : vector<8x256xf32> to vector<8xf32>
    %220 = vector.shape_cast %219 : vector<8xf32> to vector<8x1xf32>
    %221 = arith.addf %217, %220 : vector<8x1xf32>
    %c0_193 = arith.constant 0 : index
    %c0_194 = arith.constant 0 : index
    %c0_195 = arith.constant 0 : index
    %222 = vector.load %arg7[%c0_193, %c0_194, %c0_195] : memref<1x8x1xf32, #tpu.memory_space<vmem>>, vector<1x8x1xf32>
    %223 = vector.shape_cast %222 : vector<1x8x1xf32> to vector<8x1xf32>
    %224 = vector.shape_cast %221 : vector<8x1xf32> to vector<1x8x1xf32>
    tpu.vector_store %arg7[%c0_193, %c0_194, %c0_195], %224 {strides = array<i32>} : memref<1x8x1xf32, #tpu.memory_space<vmem>>, vector<1x8x1xf32>,
    %c0_196 = arith.constant 0 : index
    %c1792 = arith.constant 1792 : index
    %225 = vector.load %arg9[%c0_196, %c1792] : memref<216x2048xbf16, #tpu.memory_space<vmem>>, vector<216x256xbf16>
    %cst_197 = arith.constant dense<0.000000e+00> : vector<8x256xf32>
    %226 = tpu.matmul %63, %225, %cst_197 {dimension_numbers = #tpu.dot_dimension_numbers<[1], [0], [0], [1], [0, 0, 1, 1], [], []>} : vector<8x216xbf16>, vector<216x256xbf16>, vector<8x256xf32> -> vector<8x256xf32>
    %c0_198 = arith.constant 0 : index
    %c1792_199 = arith.constant 1792 : index
    %227 = vector.load %arg5[%c0_198, %c1792_199] : memref<1x2048xbf16, #tpu.memory_space<vmem>>, vector<1x256xbf16>
    %228 = arith.extf %227 : vector<1x256xbf16> to vector<1x256xf32>
    %229 = vector.broadcast %228 : vector<1x256xf32> to vector<8x256xf32>
    %230 = arith.mulf %226, %229 : vector<8x256xf32>
    %c0_200 = arith.constant 0 : index
    %c0_201 = arith.constant 0 : index
    %c0_202 = arith.constant 0 : index
    %231 = vector.load %arg6[%c0_200, %c0_201, %c0_202] : memref<1x8x1xf32, #tpu.memory_space<vmem>>, vector<1x8x1xf32>
    %232 = vector.shape_cast %231 : vector<1x8x1xf32> to vector<8x1xf32>
    %cst_203 = arith.constant dense<0.000000e+00> : vector<8xf32>
    %233 = vector.multi_reduction <add>, %230, %cst_203 [1] : vector<8x256xf32> to vector<8xf32>
    %234 = vector.shape_cast %233 : vector<8xf32> to vector<8x1xf32>
    %235 = arith.addf %232, %234 : vector<8x1xf32>
    %c0_204 = arith.constant 0 : index
    %c0_205 = arith.constant 0 : index
    %c0_206 = arith.constant 0 : index
    %236 = vector.load %arg6[%c0_204, %c0_205, %c0_206] : memref<1x8x1xf32, #tpu.memory_space<vmem>>, vector<1x8x1xf32>
    %237 = vector.shape_cast %236 : vector<1x8x1xf32> to vector<8x1xf32>
    %238 = vector.shape_cast %235 : vector<8x1xf32> to vector<1x8x1xf32>
    tpu.vector_store %arg6[%c0_204, %c0_205, %c0_206], %238 {strides = array<i32>} : memref<1x8x1xf32, #tpu.memory_space<vmem>>, vector<1x8x1xf32>,
    %c0_207 = arith.constant 0 : index
    %c0_208 = arith.constant 0 : index
    %c0_209 = arith.constant 0 : index
    %239 = vector.load %arg7[%c0_207, %c0_208, %c0_209] : memref<1x8x1xf32, #tpu.memory_space<vmem>>, vector<1x8x1xf32>
    %240 = vector.shape_cast %239 : vector<1x8x1xf32> to vector<8x1xf32>
    %241 = arith.mulf %230, %226 : vector<8x256xf32>
    %cst_210 = arith.constant dense<0.000000e+00> : vector<8xf32>
    %242 = vector.multi_reduction <add>, %241, %cst_210 [1] : vector<8x256xf32> to vector<8xf32>
    %243 = vector.shape_cast %242 : vector<8xf32> to vector<8x1xf32>
    %244 = arith.addf %240, %243 : vector<8x1xf32>
    %c0_211 = arith.constant 0 : index
    %c0_212 = arith.constant 0 : index
    %c0_213 = arith.constant 0 : index
    %245 = vector.load %arg7[%c0_211, %c0_212, %c0_213] : memref<1x8x1xf32, #tpu.memory_space<vmem>>, vector<1x8x1xf32>
    %246 = vector.shape_cast %245 : vector<1x8x1xf32> to vector<8x1xf32>
    %247 = vector.shape_cast %244 : vector<8x1xf32> to vector<1x8x1xf32>
    tpu.vector_store %arg7[%c0_211, %c0_212, %c0_213], %247 {strides = array<i32>} : memref<1x8x1xf32, #tpu.memory_space<vmem>>, vector<1x8x1xf32>,
    return
  }
  func.func @transform_0(%arg0: i32, %arg1: i32) -> (i32, i32, i32) {
    %c0_i32 = arith.constant 0 : i32
    %c0_i32_0 = arith.constant 0 : i32
    return %arg0, %c0_i32, %arg1 : i32, i32, i32
  }
  func.func @transform_1(%arg0: i32, %arg1: i32) -> (i32, i32, i32) {
    %c1_i32 = arith.constant 1 : i32
    %0 = arith.addi %arg1, %c1_i32 : i32
    %c8_i32 = arith.constant 8 : i32
    %1 = arith.muli %0, %c8_i32 : i32
    %c0_i32 = arith.constant 0 : i32
    %c0_i32_0 = arith.constant 0 : i32
    return %arg0, %c0_i32, %1 : i32, i32, i32
  }
  func.func @transform_2(%arg0: i32, %arg1: i32) -> (i32, i32) {
    %c0_i32 = arith.constant 0 : i32
    %c0_i32_0 = arith.constant 0 : i32
    %c0_i32_1 = arith.constant 0 : i32
    return %c0_i32, %c0_i32_0 : i32, i32
  }
  func.func @transform_3(%arg0: i32, %arg1: i32) -> (i32, i32) {
    %c0_i32 = arith.constant 0 : i32
    %c0_i32_0 = arith.constant 0 : i32
    return %c0_i32, %arg1 : i32, i32
  }
  func.func @transform_4(%arg0: i32, %arg1: i32) -> (i32, i32, i32) {
    %c0_i32 = arith.constant 0 : i32
    %c0_i32_0 = arith.constant 0 : i32
    %c0_i32_1 = arith.constant 0 : i32
    return %arg0, %c0_i32, %c0_i32_0 : i32, i32, i32
  }
  func.func @transform_5(%arg0: i32, %arg1: i32) -> (i32, i32, i32) {
    %c0_i32 = arith.constant 0 : i32
    %c0_i32_0 = arith.constant 0 : i32
    %c0_i32_1 = arith.constant 0 : i32
    return %arg0, %c0_i32, %c0_i32_0 : i32, i32, i32
  }
}

</mosaic_0001>

<bundles_post_ra>
// kernel: tpu_custom_call.1
= control target key start
LH: loop header
LB: loop body
LE: loop exit
PB: predicated region body
PF: predicated region fallthrough
CT: control target
= control target key end

     0   :  { %s7913_s0 = inlined_call_operand.hbm [shape: bf16[2,8,4096], index: 0, kind: input, shape index: {}]   ;;  %s7914_s1 = inlined_call_operand.hbm [shape: bf16[2,8,4096], index: 1, kind: input, shape index: {}]   ;;  %s7915_s2 = inlined_call_operand.hbm [shape: bf16[8,216], index: 2, kind: input, shape index: {}]   ;;  %s7916_s3 = inlined_call_operand.hbm [shape: bf16[1,2048], index: 3, kind: input, shape index: {}]   ;;  %s7917_s4 = inlined_call_operand.vmem [shape: f32[2,8,1], index: 4, kind: output, shape index: {0}]   ;;  %s7918_s5 = inlined_call_operand.vmem [shape: f32[2,8,1], index: 5, kind: output, shape index: {1}]  }
   0x1   :  { %8028 = sst [smem:[#allocation19_spill]] %s7913_s0 }
   0x2   :  { %8029 = sst [smem:[#allocation20_spill]] %s7914_s1 }
   0x3   :  { %8030 = sst [smem:[#allocation21_spill]] %s7915_s2 }
   0x4   :  { %8031 = sst [smem:[#allocation22_spill]] %s7916_s3 }
   0x5   :  { %11 = vsyncpa [#allocation5], 0 }
   0x6   :  { %13 = vsyncpa [#allocation5 + $0x1], 0 }
   0x7   :  { %14 = vsyncpa [#allocation7], 0 }
   0x8   :  { %16 = vsyncpa [#allocation7 + $0x1], 0 }
   0x9   :  { %17 = vsyncpa [#allocation10], 0  ;;  %s5181_s18 = smov 0   ;;  %s5183_s19 = smov 0  }
   0xa   :  { %s5185_s20 = smov 0   ;;  %s5187_s21 = smov 0  }
   0xb   :  { %s5189_s22 = smov 0   ;;  %s5191_s23 = smov 0  }
   0xc LB: > { %8032 = sst [smem:[#allocation15_spill]] %s5106_s20  ;;  %s7923_s24 = sadd.s32 4294967295, %s5118_s23   ;;  %s5118_s23 = sphi %s5191_s23, %s23_s23   ;;  %s5114_s22 = sphi %s5189_s22, %s8188_s22   ;;  %s5110_s21 = sphi %s5187_s21, %s8191_s21   ;;  %s5106_s20 = sphi %s5185_s20, %s8186_s20   ;;  %s5102_s19 = sphi %s5183_s19, %s8190_s19   ;;  %s5098_s18 = sphi %s5181_s18, %s8189_s18  }
   0xd   : > { %8033 = sst [smem:[#allocation16_spill]] %s5114_s22  ;;  %p57_p0 = scmp.ne.s32.totalorder %s5102_s19, %s5098_s18 }
   0xe   : > { %p5213_p1 = scmp.eq.s32.totalorder %s7923_s24, 0  ;;  %p4563_p2 = scmp.ge.s32.totalorder %s5118_s23, 1 }
   0xf   : > { %p199_p3 = scmp.lt.s32.totalorder %s5118_s23, 3  ;;  %s5120_s28 = smov [#allocation8]  }
  0x10   : > { %s8034_s25 = scalar_select %p5213_p1, 1, 0 }
  0x11   : > { %p5221_p4 = por %p5213_p1, %p57_p0  ;;  %p5225_p5 = pnand %p4563_p2, %p199_p3 }
  0x12   : > { %s212_s29 = sshll.u32 %s5120_s28, 4  ;;  %s5121_s30 = smov [#allocation9]   ;;  %s213_s29 = int_to_ptr.vmem [resolvable:$true] %s212_s29 }
  0x13   : > { %s8035_s26 = scalar_select %p5221_p4, 1, 0 }
  0x14   : > { %s8036_s27 = scalar_select %p5225_p5, 1, 0 }
  0x15   : > { %p4838_p6 = pneg %p5225_p5  ;;  %s226_s6 = sshll.u32 %s5121_s30, 4  ;;  %s5237_s6 = int_to_ptr.vmem [resolvable:$true] %s226_s6 }
  0x16   : > { %s8038_s2 = sld [smem:[#allocation21_spill]] }
  0x17   : > { %p5233_p7 = pnand %p4838_p6, %p5213_p1 }
  0x19   : > { %p4941_p9 = pneg %p5233_p7 }
  0x1c   : > { %s4939_s10 = scalar_lea.hbm %s8038_s2, 128 }
  0x1d   : > { %p4940_p8 = scmp.ne.s32.totalorder %s8038_s2, %s4939_s10  ;;  %p4946_p12 = scmp.lt.u32.totalorder %s4939_s10, %s8038_s2 }
  0x1f   : > { %p4942_p10 = pnand %p4941_p9, %p4940_p8 }
  0x21   : > { %p4943_p11 = pneg %p4942_p10 }
  0x23   : > { %p4948_p13 = pnand %p4946_p12, %p4943_p11 }
  0x25   : > { %4951 = shalt.err (!%p4948_p13)
}
  0x26   : > { %s4952_s15 = scalar_lea.vmem %s213_s29, 128  ;;  %p4960_p6 = scmp.lt.s32.totalorder %s213_s29, %s213_s29 }
  0x27   : > { %p4953_p0 = scmp.ne.s32.totalorder %s213_s29, %s4952_s15  ;;  %p4961_p1 = scmp.lt.s32.totalorder %s4952_s15, %s4952_s15 }
  0x29   : > { %p4955_p2 = pnand %p4953_p0, %p4941_p9  ;;  %p4962_p4 = por %p4961_p1, %p4960_p6 }
  0x2b   : > { %p4956_p3 = pneg %p4955_p2 }
  0x2d   : > { %p4963_p5 = pnand %p4962_p4, %p4956_p3 }
  0x2f   : > { %4966 = shalt.err (!%p4963_p5)
}
  0x30   : > { %4841 = dma.hbm_to_vmem [thread:$0]  (!%p5233_p7), %s8038_s2, 128, %s213_s29, [#allocation7]  }
  0x31   : > { %s8039_s3 = sld [smem:[#allocation22_spill]] }
  0x37   : > { %s4967_s30 = scalar_lea.hbm %s8039_s3, 256 }
  0x38   : > { %p4968_p8 = scmp.ne.s32.totalorder %s8039_s3, %s4967_s30  ;;  %p4974_p5 = scmp.lt.u32.totalorder %s4967_s30, %s8039_s3 }
  0x3a   : > { %p4970_p1 = pnand %p4968_p8, %p4941_p9 }
  0x3c   : > { %p4971_p4 = pneg %p4970_p1 }
  0x3e   : > { %p4976_p10 = pnand %p4974_p5, %p4971_p4 }
  0x40   : > { %4979 = shalt.err (!%p4976_p10)
}
  0x41   : > { %s4980_s29 = scalar_lea.vmem %s5237_s6, 256  ;;  %p4988_p0 = scmp.lt.s32.totalorder %s5237_s6, %s5237_s6 }
  0x42   : > { %p4981_p11 = scmp.ne.s32.totalorder %s5237_s6, %s4980_s29  ;;  %p4989_p2 = scmp.lt.s32.totalorder %s4980_s29, %s4980_s29 }
  0x44   : > { %p4983_p12 = pnand %p4981_p11, %p4941_p9  ;;  %p4990_p3 = por %p4989_p2, %p4988_p0 }
  0x46   : > { %p4984_p13 = pneg %p4983_p12 }
  0x48   : > { %p4991_p6 = pnand %p4990_p3, %p4984_p13 }
  0x4a   : > { %4994 = shalt.err (!%p4991_p6)
}
  0x4b   : > { %4844 = dma.hbm_to_vmem [thread:$0]  (!%p5233_p7), %s8039_s3, 256, %s5237_s6, [#allocation10]  }
  0x4c   : > { %s35_s14 = sadd.s32 1, %s5114_s22  ;;  %s44_s15 = sadd.s32 1, %s5106_s20 }
  0x4d   : > { %p37_p9 = scmp.ge.s32.totalorder %s35_s14, 2  ;;  %p51_p8 = scmp.ne.s32.totalorder %s5106_s20, %s5102_s19 }
  0x4e   : > { %p52_p1 = scmp.eq.s32.totalorder %s5118_s23, 0  ;;  %p4854_p4 = scmp.lt.s32.totalorder %s5118_s23, 2 }
  0x4f   : > { %s8193_s14 = smov (%p37_p9, %s35_s14), 0  ;;  %s5295_s7 = sand.u32 1, %s5106_s20  }
  0x50   : > { %8040 = sst [smem:[#allocation17_spill]] %s8193_s14  ;;  %p53_p5 = por %p52_p1, %p51_p8 }
  0x51   : > { %s39_s16 = ssub.s32 %s5114_s22, %s8193_s14  ;;  %s4567_s17 = sshll.u32 %s5295_s7, 6 }
  0x52   : > { %p42_p10 = scmp.eq.s32.totalorder %s39_s16, 0  ;;  %s4824_s6 = sshll.u32 %s5114_s22, 11 }
  0x53   : > { %s8042_s0 = sld [smem:[#allocation19_spill]]  ;;  %s241_s9 = scalar_lea.vmem [#allocation4], %s4567_s17 }
  0x54   : > { %s5302_s18 = scalar_select %p42_p10, %s5106_s20, %s44_s15  }
  0x55   : > { %s251_s10 = sshll.u32 %s241_s9, 4  ;;  %p5313_p7 = pnand %p4854_p4, %p53_p5  ;;  %s5309_s10 = int_to_ptr.vmem [resolvable:$true] %s251_s10 }
  0x56   : > { %8041 = sst [smem:[#allocation18_spill]] %s5302_s18  ;;  %s8044_s1 = sld [smem:[#allocation20_spill]] }
  0x57   : > { %s238_s16 = scalar_lea.sflag [#allocation5], %s5295_s7  ;;  %p4997_p12 = pneg %p5313_p7 }
  0x59   : > { %s5307_s8 = scalar_lea.hbm %s8042_s0, %s4824_s6  ;;  %s5000_s9 = scalar_lea.hbm %s8042_s0, 4096 }
  0x5a   : > { %s4995_s28 = scalar_lea.hbm %s5307_s8, 1024  ;;  %p5001_p2 = scmp.lt.u32.totalorder %s5307_s8, %s8042_s0 }
  0x5b   : > { %p4996_p11 = scmp.ne.s32.totalorder %s5307_s8, %s4995_s28  ;;  %p5002_p3 = scmp.lt.u32.totalorder %s5000_s9, %s4995_s28 }
  0x5c   : > { %s5321_s15 = scalar_lea.hbm %s8044_s1, %s4824_s6  ;;  %p5004_p9 = scmp.lt.u32.totalorder %s4995_s28, %s5307_s8 }
  0x5d   : > { %p4998_p13 = pnand %p4997_p12, %p4996_p11  ;;  %p5003_p6 = por %p5002_p3, %p5001_p2 }
  0x5f   : > { %p4999_p0 = pneg %p4998_p13  ;;  %p5005_p8 = por %p5004_p9, %p5003_p6 }
  0x61   : > { %p5006_p1 = pnand %p5005_p8, %p4999_p0 }
  0x63   : > { %5009 = shalt.err (!%p5006_p1)
}
  0x64   : > { %s5010_s6 = scalar_lea.vmem %s5309_s10, 1024  ;;  %s5122_s12 = smov [#allocation4]  }
  0x65   : > { %p5011_p4 = scmp.ne.s32.totalorder %s5309_s10, %s5010_s6  ;;  %s5015_s13 = sshll.u32 %s5122_s12, 4  ;;  %s5016_s13 = int_to_ptr.vmem [resolvable:$false] %s5015_s13 }
  0x66   : > { %s5017_s24 = scalar_lea.vmem %s5016_s13, 2048  ;;  %p5018_p11 = scmp.lt.s32.totalorder %s5309_s10, %s5016_s13 }
  0x67   : > { %p5013_p5 = pnand %p5011_p4, %p4997_p12  ;;  %p5019_p13 = scmp.lt.s32.totalorder %s5017_s24, %s5010_s6 }
  0x69   : > { %p5014_p10 = pneg %p5013_p5  ;;  %p5020_p2 = por %p5019_p13, %p5018_p11 }
  0x6b   : > { %p5021_p3 = pnand %p5020_p2, %p5014_p10 }
  0x6d   : > { %5024 = shalt.err (!%p5021_p3)
}
  0x6e   : > { %4848 = dma.hbm_to_vmem [thread:$0]  (!%p5313_p7), %s5307_s8, 1024, %s5309_s10, %s238_s16  }
  0x6f   : > { %s4570_s29 = sshll.u32 %s5295_s7, 3  ;;  %s5351_s28 = scalar_lea.hbm %s5321_s15, 1024 }
  0x70   : > { %s262_s17 = scalar_lea.vmem [#allocation6], %s4570_s29  ;;  %s8045_s9 = sand.u32 1, %s5118_s23  }
  0x71   : > { %s274_s30 = sshll.u32 %s262_s17, 4  ;;  %s259_s6 = scalar_lea.sflag [#allocation7], %s8045_s9  ;;  %s275_s30 = int_to_ptr.vmem [resolvable:$true] %s274_s30 }
  0x72   : > { %s5055_s12 = scalar_lea.hbm %s5321_s15, 1152  ;;  %s5030_s7 = scalar_lea.hbm %s8044_s1, 4096 }
  0x73   : > { %p5026_p0 = scmp.ne.s32.totalorder %s5351_s28, %s5055_s12  ;;  %p5031_p8 = scmp.lt.u32.totalorder %s5351_s28, %s8044_s1 }
  0x74   : > { %p5032_p1 = scmp.lt.u32.totalorder %s5030_s7, %s5055_s12  ;;  %p5034_p5 = scmp.lt.u32.totalorder %s5055_s12, %s5351_s28 }
  0x75   : > { %p5028_p6 = pnand %p5026_p0, %p4997_p12 }
  0x76   : > { %p5033_p4 = por %p5032_p1, %p5031_p8 }
  0x77   : > { %p5029_p9 = pneg %p5028_p6 }
  0x78   : > { %p5035_p10 = por %p5034_p5, %p5033_p4 }
  0x7a   : > { %p5036_p11 = pnand %p5035_p10, %p5029_p9 }
  0x7c   : > { %5039 = shalt.err (!%p5036_p11)
}
  0x7d   : > { %s5040_s15 = scalar_lea.vmem %s275_s30, 128  ;;  %s5123_s16 = smov [#allocation6]  }
  0x7e   : > { %p5041_p13 = scmp.ne.s32.totalorder %s275_s30, %s5040_s15  ;;  %s5045_s29 = sshll.u32 %s5123_s16, 4  ;;  %s5046_s29 = int_to_ptr.vmem [resolvable:$false] %s5045_s29 }
  0x7f   : > { %s5047_s17 = scalar_lea.vmem %s5046_s29, 256  ;;  %p5048_p0 = scmp.lt.s32.totalorder %s275_s30, %s5046_s29 }
  0x80   : > { %p5043_p2 = pnand %p5041_p13, %p4997_p12  ;;  %p5049_p6 = scmp.lt.s32.totalorder %s5047_s17, %s5040_s15 }
  0x82   : > { %p5044_p3 = pneg %p5043_p2  ;;  %p5050_p1 = por %p5049_p6, %p5048_p0 }
  0x84   : > { %p5051_p8 = pnand %p5050_p1, %p5044_p3 }
  0x86   : > { %5054 = shalt.err (!%p5051_p8)
}
  0x87   : > { %4851 = dma.hbm_to_vmem [thread:$0]  (!%p5313_p7), %s5351_s28, 128, %s275_s30, %s259_s6  }
  0x88   : > { %p8046_p9 = scmp.ne.s32.totalorder %s8036_s27, 0 }
  0x89   : > { %s285_s9 = sand.u32 (!%p8046_p9), 1, %s5102_s19   ;;  %p8047_p12 = scmp.ne.s32.totalorder (!%p8046_p9), %s8035_s26, 0 }
  0x8a   : > { %283 = sbr.rel (%p8046_p9) target bundleno = 1113 (0x459), region = 36  ;;  %s4574_s12 = sshll.u32 (!%p8046_p9), %s285_s9, 6 }
  0x8b   : > { %s286_s13 = scalar_lea.sflag (!%p8046_p9), [#allocation5], %s285_s9  ;;  %s5377_s24 = scalar_lea.vmem (!%p8046_p9), [#allocation4], %s4574_s12 }
  0x91   : > { %5081 = dma.done.wait (%p8047_p12), %s286_s13, 1024  }
  0x92   : > { %5083 = vsyncadd (%p8047_p12), %s286_s13, 4294966272  ;;  %s8048_s7 = sadd.s32 4294967295, %s5118_s23   ;;  %s4575_s28 = sshll.u32 %s285_s9, 3 }
  0x93   : > { %s294_s11 = sand.u32 1, %s8048_s7   ;;  %s5385_s27 = scalar_lea.vmem [#allocation6], %s4575_s28 }
  0x94   : > { %s295_s30 = scalar_lea.sflag [#allocation7], %s294_s11 }
  0x95   : > { %5085 = dma.done.wait (%p8047_p12), %s295_s30, 128  }
  0x96   : > { %5087 = vsyncadd (%p8047_p12), %s295_s30, 4294967168  ;;  %p8049_p7 = scmp.ne.s32.totalorder %s8034_s25, 0 }
  0x98   : > { %5089 = dma.done.wait (%p8049_p7), [#allocation7], 128  }
  0x99   : > { %5091 = vsyncadd (%p8049_p7), [#allocation7], 4294967168 }
  0x9a   : > { %5093 = dma.done.wait (%p8049_p7), [#allocation10], 256  }
  0x9b   : > { %5095 = vsyncadd (%p8049_p7), [#allocation10], 4294967040  ;;  %v5400_v0 = vld [vmem:[%s5377_s24] sm:$0xff]  ;;  %v5403_v1 = vld [vmem:[%s5377_s24 + $0x8] sm:$0xff]  ;;  %s7944_s26 = smov 126   ;;  %s7963_s6 = smov 127  }
  0x9c   : > { %v5406_v2 = vld [vmem:[%s5377_s24 + $0x10] sm:$0xff]  ;;  %370 = vst [vmem:[#allocation2] sm:$0xff] %v5400_v0  ;;  %493 = vrot.lane.b32.xlu1 %v5400_v0, %s7944_s26  ;;  %414 = vrot.lane.b32.xlu0 %v5400_v0, %s7963_s6  ;;  %371 = vst [vmem:[#allocation2 + $0x8] sm:$0xff] %v5403_v1  ;;  %v5416_v3 = vld [vmem:[%s5377_s24 + $0x18] sm:$0xff]  ;;  %s7959_s25 = smov 118   ;;  %s7948_s8 = smov 117  }
  0x9d   : > { %372 = vst [vmem:[#allocation2 + $0x10] sm:$0xff] %v5406_v2  ;;  %373 = vst [vmem:[#allocation2 + $0x18] sm:$0xff] %v5416_v3  ;;  %s7946_s10 = smov 116   ;;  %s7953_s15 = smov 108   ;;  %v5452_v4 = vld [vmem:[%s5377_s24 + $0x20] sm:$0xff]  ;;  %v5524_v7 = vld [vmem:[%s5377_s24 + $0x28] sm:$0xff] }
  0x9e   : > { %s7951_s16 = smov 107   ;;  %s7924_s29 = smov 106   ;;  %374 = vst [vmem:[#allocation2 + $0x20] sm:$0xff] %v5452_v4  ;;  %375 = vst [vmem:[#allocation2 + $0x28] sm:$0xff] %v5524_v7  ;;  %vm441_vm0 = vcmask 1043456   ;;  %vm443_vm1 = vcmask 1039360  }
  0x9f   : > { %s7955_s17 = smov 28   ;;  %s7926_s9 = smov 27   ;;  %vm7997_vm2 = vcmask 965632   ;;  %vm7998_vm3 = vcmask 1031168   ;;  %vm677_vm4 = vcmask 957440   ;;  %vm755_vm5 = vcmask 949248  }
  0xa0   : > { %495 = vrot.lane.b32.xlu1 %v5403_v1, %s7944_s26  ;;  %416 = vrot.lane.b32.xlu0 %v5403_v1, %s7963_s6  ;;  %s7928_s12 = smov 26   ;;  %s7930_s13 = smov 18   ;;  %v5614_v52 = vld [vmem:[#allocation8] sm:$0xff]  ;;  %vm2594_vm6 = vcmask 719872   ;;  %vm833_vm7 = vcmask 883712   ;;  %vm911_vm8 = vcmask 875520  }
  0xa1   : > { %s7932_s7 = smov 17   ;;  %s7934_s11 = smov 16   ;;  %v5620_v57 = vld [vmem:[%s5377_s24 + $0x30] sm:$0xff]  ;;  %v5629_v58 = vcombine.high %v5614_v52, %v5614_v52  ;;  %vm7979_vm9 = vcmask 867328   ;;  %vm7950_vm10 = vcmask 228352   ;;  %vm7958_vm11 = vcmask 220160  }
  0xa2   : > { %s7965_s28 = smov 8   ;;  %s7936_s30 = smov 7   ;;  %376 = vst [vmem:[#allocation2 + $0x30] sm:$0xff] %v5620_v57  ;;  %vm7957_vm12 = vcmask 211968   ;;  %vm7962_vm13 = vcmask 146432   ;;  %vm7961_vm14 = vcmask 138240  }
  0xa3   : > { %v5511_v5 = vld [vmem:[#allocation2 + $0x4] sm:$0xff]  ;;  %4611 = vmatprep.mubr.msk.bf16.mxu0 %vm2594_vm6, %v5629_v58  ;;  %4641 = vmatprep.mubr.msk.bf16.mxu1 %vm2594_vm6, %v5629_v58  ;;  %vm7967_vm15 = vcmask 130048   ;;  %s8072_s0 = smov 8   ;;  %s8081_s1 = smov 55  }
  0xa4   : > { %573 = vrot.lane.b32.xlu1 %v5403_v1, %s7959_s25  ;;  %571 = vrot.lane.b32.xlu0 %v5400_v0, %s7959_s25  ;;  %v5517_v6 = vld [vmem:[#allocation2 + $0xc] sm:$0xff]  ;;  %v5557_v16 = vld [vmem:[#allocation2 + $0x14] sm:$0xff]  ;;  %s8088_s2 = smov 46   ;;  %s8095_s3 = smov 44  }
  0xa5   : > { %s8096_s14 = smov 45   ;;  %s8100_s22 = smov 35  }
  0xa6   : > { %s8101_s18 = smov 36   ;;  %s8106_s20 = smov 34  }
  0xa7   : > { %p346_p4 = scmp.lt.s32.totalorder %s5110_s21, 1 }
  0xa8   : > { %651 = vrot.lane.b32.xlu1 %v5403_v1, %s7948_s8  ;;  %649 = vrot.lane.b32.xlu0 %v5400_v0, %s7948_s8 }
  0xa9   : > { %s8195_s21 = smov (!%p346_p4, %s5110_s21), 1 }
  0xac   : > { %729 = vrot.lane.b32.xlu1 %v5403_v1, %s7946_s10  ;;  %727 = vrot.lane.b32.xlu0 %v5400_v0, %s7946_s10 }
  0xb0   : > { %805 = vrot.lane.b32.xlu1 %v5400_v0, %s7953_s15  ;;  %418 = vrot.lane.b32.xlu0 %v5406_v2, %s7963_s6 }
  0xb4   : > { %883 = vrot.lane.b32.xlu1 %v5400_v0, %s7951_s16  ;;  %807 = vrot.lane.b32.xlu0 %v5403_v1, %s7953_s15 }
  0xb8   : > { %497 = vrot.lane.b32.xlu1 %v5406_v2, %s7944_s26  ;;  %885 = vrot.lane.b32.xlu0 %v5403_v1, %s7951_s16 }
  0xbc   : > { %961 = vrot.lane.b32.xlu1 %v5400_v0, %s7924_s29  ;;  %575 = vrot.lane.b32.xlu0 %v5406_v2, %s7959_s25 }
  0xc0   : > { %1039 = vrot.lane.b32.xlu1 %v5400_v0, %s7955_s17  ;;  %963 = vrot.lane.b32.xlu0 %v5403_v1, %s7924_s29 }
  0xc4   : > { %653 = vrot.lane.b32.xlu1 %v5406_v2, %s7948_s8  ;;  %1041 = vrot.lane.b32.xlu0 %v5403_v1, %s7955_s17 }
  0xc8   : > { %1117 = vrot.lane.b32.xlu1 %v5400_v0, %s7926_s9  ;;  %731 = vrot.lane.b32.xlu0 %v5406_v2, %s7946_s10 }
  0xcc   : > { %1195 = vrot.lane.b32.xlu1 %v5400_v0, %s7928_s12  ;;  %1119 = vrot.lane.b32.xlu0 %v5403_v1, %s7926_s9 }
  0xd0   : > { %809 = vrot.lane.b32.xlu1 %v5406_v2, %s7953_s15  ;;  %1197 = vrot.lane.b32.xlu0 %v5403_v1, %s7928_s12 }
  0xd4   : > { %1273 = vrot.lane.b32.xlu1 %v5400_v0, %s7930_s13  ;;  %887 = vrot.lane.b32.xlu0 %v5406_v2, %s7951_s16 }
  0xd8   : > { %1351 = vrot.lane.b32.xlu1 %v5400_v0, %s7932_s7  ;;  %1275 = vrot.lane.b32.xlu0 %v5403_v1, %s7930_s13 }
  0xdc   : > { %965 = vrot.lane.b32.xlu1 %v5406_v2, %s7924_s29  ;;  %1353 = vrot.lane.b32.xlu0 %v5403_v1, %s7932_s7  ;;  %s7940_s29 = smov 6  }
  0xe0   : > { %1429 = vrot.lane.b32.xlu1 %v5400_v0, %s7934_s11  ;;  %1043 = vrot.lane.b32.xlu0 %v5406_v2, %s7955_s17 }
  0xe4   : > { %1507 = vrot.lane.b32.xlu1 %v5400_v0, %s7965_s28  ;;  %1431 = vrot.lane.b32.xlu0 %v5403_v1, %s7934_s11 }
  0xe8   : > { %1121 = vrot.lane.b32.xlu1 %v5406_v2, %s7926_s9  ;;  %1509 = vrot.lane.b32.xlu0 %v5403_v1, %s7965_s28  ;;  %s7938_s9 = smov 56  }
  0xec   : > { %1585 = vrot.lane.b32.xlu1 %v5400_v0, %s7936_s30  ;;  %1199 = vrot.lane.b32.xlu0 %v5406_v2, %s7928_s12  ;;  %s7995_s12 = smov 55  }
  0xf0   : > { %1663 = vrot.lane.b32.xlu1 %v5400_v0, %s7940_s29  ;;  %1587 = vrot.lane.b32.xlu0 %v5403_v1, %s7936_s30 }
  0xf4   : > { %1277 = vrot.lane.b32.xlu1 %v5406_v2, %s7930_s13  ;;  %1665 = vrot.lane.b32.xlu0 %v5403_v1, %s7940_s29  ;;  %s7942_s13 = smov 54  }
  0xf8   : > { %1741 = vrot.lane.b32.xlu1 %v5511_v5, %s7938_s9  ;;  %1355 = vrot.lane.b32.xlu0 %v5406_v2, %s7932_s7  ;;  %s7993_s7 = smov 46  }
  0xfc   : > { %1819 = vrot.lane.b32.xlu1 %v5511_v5, %s7995_s12  ;;  %1743 = vrot.lane.b32.xlu0 %v5517_v6, %s7938_s9 }
 0x100   : > { %1433 = vrot.lane.b32.xlu1 %v5406_v2, %s7934_s11  ;;  %1821 = vrot.lane.b32.xlu0 %v5517_v6, %s7995_s12  ;;  %s7985_s11 = smov 45  }
 0x104   : > { %1897 = vrot.lane.b32.xlu1 %v5511_v5, %s7942_s13  ;;  %1511 = vrot.lane.b32.xlu0 %v5406_v2, %s7965_s28 }
 0x108   : > { %1975 = vrot.lane.b32.xlu1 %v5511_v5, %s7993_s7  ;;  %1899 = vrot.lane.b32.xlu0 %v5517_v6, %s7942_s13 }
 0x10c   : > { %1589 = vrot.lane.b32.xlu1 %v5406_v2, %s7936_s30  ;;  %1977 = vrot.lane.b32.xlu0 %v5517_v6, %s7993_s7  ;;  %s7991_s30 = smov 44  }
 0x10e   : > { %v494_v8 = vpop.permute.xlu1 %493  ;;  %v415_v9 = vpop.permute.xlu0 %414 }
 0x10f   : > { %v511_v10 = vrot.slane %v494_v8, 4  ;;  %v432_v13 = vrot.slane %v415_v9, 4 }
 0x110   : > { %2053 = vrot.lane.b32.xlu1 %v5511_v5, %s7985_s11  ;;  %1667 = vrot.lane.b32.xlu0 %v5406_v2, %s7940_s29  ;;  %s7983_s29 = smov 35  }
 0x112   : > { %v5547_v11 = vpop.permute.xlu1 %495  ;;  %v5549_v12 = vpop.permute.xlu0 %416 }
 0x113   : > { %v512_v14 = vrot.slane %v5547_v11, 4  ;;  %v433_v15 = vrot.slane %v5549_v12, 4 }
 0x114   : > { %2131 = vrot.lane.b32.xlu1 %v5511_v5, %s7991_s30  ;;  %2055 = vrot.lane.b32.xlu0 %v5517_v6, %s7985_s11 }
 0x115   : > { %v442_v17 = vsel %vm441_vm0, %v432_v13, %v433_v15  ;;  %v520_v21 = vsel %vm441_vm0, %v511_v10, %v512_v14 }
 0x116   : > { %v5560_v18 = vpop.permute.xlu1 %573  ;;  %v572_v19 = vpop.permute.xlu0 %571  ;;  %v444_v20 = vsel %vm443_vm1, %v415_v9, %v442_v17  ;;  %v522_v30 = vsel %vm7998_vm3, %v494_v8, %v520_v21 }
 0x117   : > { %v590_v22 = vrot.slane %v5560_v18, 4  ;;  %v589_v23 = vrot.slane %v572_v19, 4  ;;  %v4583_v24 = vcombine.high %v5400_v0, %v444_v20  ;;  %v4582_v25 = vcombine.low %v5400_v0, %v444_v20 }
 0x118   : > { %1745 = vrot.lane.b32.xlu1 %v5557_v16, %s7938_s9  ;;  %2133 = vrot.lane.b32.xlu0 %v5517_v6, %s7991_s30  ;;  %s7981_s9 = smov 36  }
 0x119   : > { %v598_v26 = vsel %vm441_vm0, %v589_v23, %v590_v22  ;;  %2605 = vmatprep.subr.bf16.mxu0 %v4583_v24 }
 0x11a   : > { %v600_v27 = vsel %vm7997_vm2, %v572_v19, %v598_v26  ;;  %v5577_v28 = vpop.permute.xlu1 %651  ;;  %v650_v29 = vpop.permute.xlu0 %649  ;;  %2606 = vmatpush1.bf16.msra.mxu0 %v4582_v25 }
 0x11b   : > { %v668_v31 = vrot.slane %v5577_v28, 4  ;;  %v667_v32 = vrot.slane %v650_v29, 4  ;;  %v4585_v33 = vcombine.high %v522_v30, %v600_v27  ;;  %v4584_v34 = vcombine.low %v522_v30, %v600_v27 }
 0x11c   : > { %2209 = vrot.lane.b32.xlu1 %v5511_v5, %s7981_s9  ;;  %1823 = vrot.lane.b32.xlu0 %v5557_v16, %s7995_s12 }
 0x11d   : > { %2607 = vmatprep.subr.bf16.mxu0 %v4585_v33  ;;  %v676_v37 = vsel %vm441_vm0, %v667_v32, %v668_v31 }
 0x11e   : > { %v5585_v35 = vpop.permute.xlu1 %729  ;;  %v728_v36 = vpop.permute.xlu0 %727  ;;  %2608 = vmatpush1.bf16.msra.mxu0 %v4584_v34  ;;  %v678_v41 = vsel %vm677_vm4, %v650_v29, %v676_v37 }
 0x11f   : > { %v746_v38 = vrot.slane %v5585_v35, 4  ;;  %v745_v39 = vrot.slane %v728_v36, 4 }
 0x120   : > { %2287 = vrot.lane.b32.xlu1 %v5511_v5, %s7983_s29  ;;  %2211 = vrot.lane.b32.xlu0 %v5517_v6, %s7981_s9 }
 0x121   : > { %v754_v40 = vsel %vm441_vm0, %v745_v39, %v746_v38 }
 0x122   : > { %v756_v42 = vsel %vm755_vm5, %v728_v36, %v754_v40  ;;  %v806_v43 = vpop.permute.xlu1 %805  ;;  %v5600_v44 = vpop.permute.xlu0 %418 }
 0x123   : > { %v434_v45 = vrot.slane %v5600_v44, 4  ;;  %v4587_v46 = vcombine.high %v678_v41, %v756_v42  ;;  %v4586_v47 = vcombine.low %v678_v41, %v756_v42  ;;  %v823_v53 = vrot.slane %v806_v43, 4 }
 0x124   : > { %1901 = vrot.lane.b32.xlu1 %v5557_v16, %s7942_s13  ;;  %2289 = vrot.lane.b32.xlu0 %v5517_v6, %s7983_s29  ;;  %s7989_s13 = smov 34  }
 0x125   : > { %2609 = vmatprep.subr.bf16.mxu0 %v4587_v46  ;;  %v445_v48 = vsel %vm441_vm0, %v433_v15, %v434_v45 }
 0x126   : > { %v884_v49 = vpop.permute.xlu1 %883  ;;  %v5610_v50 = vpop.permute.xlu0 %807  ;;  %2610 = vmatpush1.bf16.msra.mxu0 %v4586_v47  ;;  %v446_v51 = vsel %vm443_vm1, %v5549_v12, %v445_v48 }
 0x127   : > { %v824_v54 = vrot.slane %v5610_v50, 4  ;;  %v4613_v55 = vcombine.high %v5403_v1, %v446_v51  ;;  %v4612_v56 = vcombine.low %v5403_v1, %v446_v51  ;;  %v901_v59 = vrot.slane %v884_v49, 4 }
 0x128   : > { %2365 = vrot.lane.b32.xlu1 %v5511_v5, %s7989_s13  ;;  %1979 = vrot.lane.b32.xlu0 %v5557_v16, %s7993_s7 }
 0x129   : > { %2852 = vmatprep.subr.bf16.mxu1 %v4613_v55  ;;  %v832_v0 = vsel %vm441_vm0, %v823_v53, %v824_v54 }
 0x12a   : > { %v5631_v60 = vpop.permute.xlu1 %497  ;;  %2853 = vmatpush1.bf16.msra.mxu1 %v4612_v56  ;;  %v5633_v61 = vpop.permute.xlu0 %885  ;;  %v834_v8 = vsel %vm833_vm7, %v806_v43, %v832_v0 }
 0x12b   : > { %v513_v62 = vrot.slane %v5631_v60, 4  ;;  %v902_v63 = vrot.slane %v5633_v61, 4 }
 0x12c   : > { %2057 = vrot.lane.b32.xlu1 %v5557_v16, %s7985_s11  ;;  %2367 = vrot.lane.b32.xlu0 %v5517_v6, %s7989_s13 }
 0x12d   : > { %v910_v1 = vsel %vm441_vm0, %v901_v59, %v902_v63  ;;  %v523_v6 = vsel %vm441_vm0, %v512_v14, %v513_v62 }
 0x12e   : > { %v962_v2 = vpop.permute.xlu1 %961  ;;  %v5651_v5 = vpop.permute.xlu0 %575  ;;  %v912_v9 = vsel %vm911_vm8, %v884_v49, %v910_v1  ;;  %v524_v14 = vsel %vm7998_vm3, %v5547_v11, %v523_v6 }
 0x12f   : > { %v591_v10 = vrot.slane %v5651_v5, 4  ;;  %v4589_v12 = vcombine.high %v834_v8, %v912_v9  ;;  %v4588_v13 = vcombine.low %v834_v8, %v912_v9  ;;  %v979_v21 = vrot.slane %v962_v2, 4 }
 0x130   : > { %420 = vrot.lane.b32.xlu1 %v5416_v3, %s7963_s6  ;;  %2135 = vrot.lane.b32.xlu0 %v5557_v16, %s7991_s30 }
 0x131   : > { %2611 = vmatprep.subr.bf16.mxu0 %v4589_v12  ;;  %v601_v15 = vsel %vm441_vm0, %v590_v22, %v591_v10 }
 0x132   : > { %v1040_v17 = vpop.permute.xlu1 %1039  ;;  %v5670_v19 = vpop.permute.xlu0 %963  ;;  %2612 = vmatpush1.bf16.msra.mxu0 %v4588_v13  ;;  %v602_v20 = vsel %vm7997_vm2, %v5560_v18, %v601_v15 }
 0x133   : > { %v980_v23 = vrot.slane %v5670_v19, 4  ;;  %v4615_v24 = vcombine.high %v524_v14, %v602_v20  ;;  %v4614_v25 = vcombine.low %v524_v14, %v602_v20  ;;  %v1057_v22 = vrot.slane %v1040_v17, 4 }
 0x134   : > { %2291 = vrot.lane.b32.xlu1 %v5557_v16, %s7983_s29  ;;  %2213 = vrot.lane.b32.xlu0 %v5557_v16, %s7981_s9 }
 0x135   : > { %2854 = vmatprep.subr.bf16.mxu1 %v4615_v24  ;;  %v988_v29 = vsel %vm441_vm0, %v979_v21, %v980_v23 }
 0x136   : > { %v5681_v26 = vpop.permute.xlu1 %653  ;;  %2855 = vmatpush1.bf16.msra.mxu1 %v4614_v25  ;;  %v5683_v11 = vpop.permute.xlu0 %1041  ;;  %v990_v34 = vsel %vm7979_vm9, %v962_v2, %v988_v29 }
 0x137   : > { %v669_v18 = vrot.slane %v5681_v26, 4  ;;  %v1058_v27 = vrot.slane %v5683_v11, 4 }
 0x138   : > { %577 = vrot.lane.b32.xlu1 %v5416_v3, %s7959_s25  ;;  %499 = vrot.lane.b32.xlu0 %v5416_v3, %s7944_s26 }
 0x139   : > { %v1066_v30 = vsel %vm441_vm0, %v1057_v22, %v1058_v27  ;;  %v679_v41 = vsel %vm441_vm0, %v668_v31, %v669_v18 }
 0x13a   : > { %v1118_v32 = vpop.permute.xlu1 %1117  ;;  %v5697_v33 = vpop.permute.xlu0 %731  ;;  %v1068_v36 = vsel %vm7950_vm10, %v1040_v17, %v1066_v30  ;;  %v680_v31 = vsel %vm677_vm4, %v5577_v28, %v679_v41 }
 0x13b   : > { %v747_v37 = vrot.slane %v5697_v33, 4  ;;  %v4591_v39 = vcombine.high %v990_v34, %v1068_v36  ;;  %v4590_v40 = vcombine.low %v990_v34, %v1068_v36  ;;  %v1135_v48 = vrot.slane %v1118_v32, 4 }
 0x13c   : > { %655 = vrot.lane.b32.xlu1 %v5416_v3, %s7948_s8  ;;  %2369 = vrot.lane.b32.xlu0 %v5557_v16, %s7989_s13 }
 0x13d   : > { %2613 = vmatprep.subr.bf16.mxu0 %v4591_v39  ;;  %v757_v42 = vsel %vm441_vm0, %v746_v38, %v747_v37 }
 0x13e   : > { %v1196_v43 = vpop.permute.xlu1 %1195  ;;  %v5716_v46 = vpop.permute.xlu0 %1119  ;;  %2614 = vmatpush1.bf16.msra.mxu0 %v4590_v40  ;;  %v758_v47 = vsel %vm755_vm5, %v5585_v35, %v757_v42 }
 0x13f   : > { %v1136_v16 = vrot.slane %v5716_v46, 4  ;;  %v4617_v49 = vcombine.high %v680_v31, %v758_v47  ;;  %v4616_v51 = vcombine.low %v680_v31, %v758_v47  ;;  %v1213_v38 = vrot.slane %v1196_v43, 4 }
 0x140   : > { %422 = vrot.lane.b32.xlu1 %v5452_v4, %s7963_s6  ;;  %733 = vrot.lane.b32.xlu0 %v5416_v3, %s7946_s10  ;;  %s8058_s6 = smov 56  }
 0x141   : > { %2856 = vmatprep.subr.bf16.mxu1 %v4617_v49  ;;  %v1144_v56 = vsel %vm441_vm0, %v1135_v48, %v1136_v16 }
 0x142   : > { %v5727_v53 = vpop.permute.xlu1 %809  ;;  %2857 = vmatpush1.bf16.msra.mxu1 %v4616_v51  ;;  %v5729_v28 = vpop.permute.xlu0 %1197  ;;  %v1146_v2 = vsel %vm7958_vm11, %v1118_v32, %v1144_v56 }
 0x143   : > { %v825_v35 = vrot.slane %v5727_v53, 4  ;;  %v1214_v55 = vrot.slane %v5729_v28, 4 }
 0x144   : > { %889 = vrot.lane.b32.xlu1 %v5416_v3, %s7951_s16  ;;  %811 = vrot.lane.b32.xlu0 %v5416_v3, %s7953_s15 }
 0x145   : > { %v1222_v59 = vsel %vm441_vm0, %v1213_v38, %v1214_v55  ;;  %v835_v6 = vsel %vm441_vm0, %v824_v54, %v825_v35 }
 0x146   : > { %v1274_v0 = vpop.permute.xlu1 %1273  ;;  %v5743_v1 = vpop.permute.xlu0 %887  ;;  %v1224_v8 = vsel %vm7957_vm12, %v1196_v43, %v1222_v59  ;;  %v836_v54 = vsel %vm833_vm7, %v5610_v50, %v835_v6 }
 0x147   : > { %v903_v9 = vrot.slane %v5743_v1, 4  ;;  %v4593_v12 = vcombine.high %v1146_v2, %v1224_v8  ;;  %v4592_v13 = vcombine.low %v1146_v2, %v1224_v8  ;;  %v1291_v21 = vrot.slane %v1274_v0, 4 }
 0x148   : > { %579 = vrot.lane.b32.xlu1 %v5452_v4, %s7959_s25  ;;  %501 = vrot.lane.b32.xlu0 %v5452_v4, %s7944_s26  ;;  %s8050_s26 = smov 106   ;;  %s8057_s25 = smov 7  }
 0x149   : > { %2615 = vmatprep.subr.bf16.mxu0 %v4593_v12  ;;  %v913_v15 = vsel %vm441_vm0, %v902_v63, %v903_v9 }
 0x14a   : > { %v1352_v17 = vpop.permute.xlu1 %1351  ;;  %v5762_v14 = vpop.permute.xlu0 %1275  ;;  %2616 = vmatpush1.bf16.msra.mxu0 %v4592_v13  ;;  %v914_v20 = vsel %vm911_vm8, %v5633_v61, %v913_v15 }
 0x14b   : > { %v1292_v24 = vrot.slane %v5762_v14, 4  ;;  %v4619_v25 = vcombine.high %v836_v54, %v914_v20  ;;  %v4618_v22 = vcombine.low %v836_v54, %v914_v20  ;;  %v1369_v63 = vrot.slane %v1352_v17, 4 }
 0x14c   : > { %1045 = vrot.lane.b32.xlu1 %v5416_v3, %s7955_s17  ;;  %967 = vrot.lane.b32.xlu0 %v5416_v3, %s8050_s26 }
 0x14d   : > { %2858 = vmatprep.subr.bf16.mxu1 %v4619_v25  ;;  %v1300_v32 = vsel %vm441_vm0, %v1291_v21, %v1292_v24 }
 0x14e   : > { %v5773_v29 = vpop.permute.xlu1 %965  ;;  %2859 = vmatpush1.bf16.msra.mxu1 %v4618_v22  ;;  %v5775_v50 = vpop.permute.xlu0 %1353  ;;  %v1302_v40 = vsel %vm7962_vm13, %v1274_v0, %v1300_v32 }
 0x14f   : > { %v981_v61 = vrot.slane %v5773_v29, 4  ;;  %v1370_v30 = vrot.slane %v5775_v50, 4 }
 0x150   : > { %735 = vrot.lane.b32.xlu1 %v5452_v4, %s7946_s10  ;;  %657 = vrot.lane.b32.xlu0 %v5452_v4, %s7948_s8  ;;  %s8051_s10 = smov 26   ;;  %s8052_s8 = smov 27  }
 0x151   : > { %v1378_v34 = vsel %vm441_vm0, %v1369_v63, %v1370_v30  ;;  %v991_v47 = vsel %vm441_vm0, %v980_v23, %v981_v61 }
 0x152   : > { %v1430_v36 = vpop.permute.xlu1 %1429  ;;  %v5789_v39 = vpop.permute.xlu0 %1043  ;;  %v1380_v41 = vsel %vm7961_vm14, %v1352_v17, %v1378_v34  ;;  %v992_v23 = vsel %vm7979_vm9, %v5670_v19, %v991_v47  ;;  %vm2393_vm9 = vcmask 277504  }
 0x153   : > { %v1059_v42 = vrot.slane %v5789_v39, 4  ;;  %v4595_v43 = vcombine.high %v1302_v40, %v1380_v41  ;;  %v4594_v31 = vcombine.low %v1302_v40, %v1380_v41  ;;  %v1447_v56 = vrot.slane %v1430_v36, 4 }
 0x154   : > { %1201 = vrot.lane.b32.xlu1 %v5416_v3, %s8051_s10  ;;  %1123 = vrot.lane.b32.xlu0 %v5416_v3, %s8052_s8 }
 0x155   : > { %2617 = vmatprep.subr.bf16.mxu0 %v4595_v43  ;;  %v1069_v48 = vsel %vm441_vm0, %v1058_v27, %v1059_v42 }
 0x156   : > { %v1508_v49 = vpop.permute.xlu1 %1507  ;;  %v5808_v51 = vpop.permute.xlu0 %1431  ;;  %2618 = vmatpush1.bf16.msra.mxu0 %v4594_v31  ;;  %v1070_v38 = vsel %vm7950_vm10, %v5683_v11, %v1069_v48  ;;  %vm7968_vm10 = vcmask 64512  }
 0x157   : > { %v1448_v59 = vrot.slane %v5808_v51, 4  ;;  %v4621_v0 = vcombine.high %v992_v23, %v1070_v38  ;;  %v4620_v2 = vcombine.low %v992_v23, %v1070_v38  ;;  %v1525_v27 = vrot.slane %v1508_v49, 4  ;;  %v369_v38 = vld [vmem:[%s5377_s24 + $0x38] sm:$0xff]  ;;  %s8056_s24 = smov 6  }
 0x158   : > { %891 = vrot.lane.b32.xlu1 %v5452_v4, %s7951_s16  ;;  %813 = vrot.lane.b32.xlu0 %v5452_v4, %s7953_s15  ;;  %s8053_s16 = smov 17   ;;  %s8054_s15 = smov 18   ;;  %377 = vst [vmem:[#allocation2 + $0x38] sm:$0xff] %v369_v38 }
 0x159   : > { %2860 = vmatprep.subr.bf16.mxu1 %v4621_v0  ;;  %v1456_v13 = vsel %vm441_vm0, %v1447_v56, %v1448_v59 }
 0x15a   : > { %v5819_v8 = vpop.permute.xlu1 %1121  ;;  %2861 = vmatpush1.bf16.msra.mxu1 %v4620_v2  ;;  %v5821_v19 = vpop.permute.xlu0 %1509  ;;  %v1458_v54 = vsel %vm7967_vm15, %v1430_v36, %v1456_v13 }
 0x15b   : > { %v1137_v11 = vrot.slane %v5819_v8, 4  ;;  %v1526_v12 = vrot.slane %v5821_v19, 4 }
 0x15c   : > { %1357 = vrot.lane.b32.xlu1 %v5416_v3, %s8053_s16  ;;  %1279 = vrot.lane.b32.xlu0 %v5416_v3, %s8054_s15 }
 0x15d   : > { %v1534_v6 = vsel %vm441_vm0, %v1525_v27, %v1526_v12  ;;  %v1147_v63 = vsel %vm441_vm0, %v1136_v16, %v1137_v11 }
 0x15e   : > { %v1586_v15 = vpop.permute.xlu1 %1585  ;;  %v5835_v17 = vpop.permute.xlu0 %1199  ;;  %v1536_v20 = vsel %vm7968_vm10, %v1508_v49, %v1534_v6  ;;  %v1148_v16 = vsel %vm7958_vm11, %v5716_v46, %v1147_v63  ;;  %vm7969_vm11 = vcmask 48128  }
 0x15f   : > { %v1215_v21 = vrot.slane %v5835_v17, 4  ;;  %v4597_v25 = vcombine.high %v1458_v54, %v1536_v20  ;;  %v4596_v22 = vcombine.low %v1458_v54, %v1536_v20  ;;  %v1603_v41 = vrot.slane %v1586_v15, 4 }
 0x160   : > { %1047 = vrot.lane.b32.xlu1 %v5452_v4, %s7955_s17  ;;  %969 = vrot.lane.b32.xlu0 %v5452_v4, %s8050_s26  ;;  %s8055_s17 = smov 16  }
 0x161   : > { %2619 = vmatprep.subr.bf16.mxu0 %v4597_v25  ;;  %v1225_v32 = vsel %vm441_vm0, %v1214_v55, %v1215_v21 }
 0x162   : > { %v1664_v34 = vpop.permute.xlu1 %1663  ;;  %v5854_v36 = vpop.permute.xlu0 %1587  ;;  %2620 = vmatpush1.bf16.msra.mxu0 %v4596_v22  ;;  %v1226_v40 = vsel %vm7957_vm12, %v5729_v28, %v1225_v32  ;;  %vm7970_vm12 = vcmask 56320  }
 0x163   : > { %v1604_v43 = vrot.slane %v5854_v36, 4  ;;  %v4623_v31 = vcombine.high %v1148_v16, %v1226_v40  ;;  %v4622_v47 = vcombine.low %v1148_v16, %v1226_v40  ;;  %v1681_v55 = vrot.slane %v1664_v34, 4 }
 0x164   : > { %1513 = vrot.lane.b32.xlu1 %v5416_v3, %s7965_s28  ;;  %1435 = vrot.lane.b32.xlu0 %v5416_v3, %s8055_s17 }
 0x165   : > { %2862 = vmatprep.subr.bf16.mxu1 %v4623_v31  ;;  %v1612_v23 = vsel %vm441_vm0, %v1603_v41, %v1604_v43  ;;  %v5912_v41 = vld [vmem:[#allocation2 + $0x1c] sm:$0xff] }
 0x166   : > { %v5865_v48 = vpop.permute.xlu1 %1277  ;;  %2863 = vmatpush1.bf16.msra.mxu1 %v4622_v47  ;;  %v5867_v46 = vpop.permute.xlu0 %1665  ;;  %v1614_v27 = vsel %vm7970_vm12, %v1586_v15, %v1612_v23 }
 0x167   : > { %v1293_v28 = vrot.slane %v5865_v48, 4  ;;  %v1682_v49 = vrot.slane %v5867_v46, 4 }
 0x168   : > { %1203 = vrot.lane.b32.xlu1 %v5452_v4, %s8051_s10  ;;  %1125 = vrot.lane.b32.xlu0 %v5452_v4, %s8052_s8 }
 0x169   : > { %v1690_v56 = vsel %vm441_vm0, %v1681_v55, %v1682_v49  ;;  %v1303_v25 = vsel %vm441_vm0, %v1292_v24, %v1293_v28 }
 0x16a   : > { %v1742_v0 = vpop.permute.xlu1 %1741  ;;  %v5882_v2 = vpop.permute.xlu0 %1355  ;;  %v1692_v13 = vsel %vm7969_vm11, %v1664_v34, %v1690_v56  ;;  %v1304_v24 = vsel %vm7962_vm13, %v5762_v14, %v1303_v25  ;;  %vm7975_vm13 = vcmask 449536  }
 0x16b   : > { %v1371_v6 = vrot.slane %v5882_v2, 4  ;;  %v4599_v54 = vcombine.high %v1614_v27, %v1692_v13  ;;  %v4598_v20 = vcombine.low %v1614_v27, %v1692_v13  ;;  %v1759_v34 = vrot.slane %v1742_v0, 4 }
 0x16c   : > { %1669 = vrot.lane.b32.xlu1 %v5416_v3, %s8056_s24  ;;  %1591 = vrot.lane.b32.xlu0 %v5416_v3, %s8057_s25 }
 0x16d   : > { %2621 = vmatprep.subr.bf16.mxu0 %v4599_v54  ;;  %v1381_v15 = vsel %vm441_vm0, %v1370_v30, %v1371_v6 }
 0x16e   : > { %v1820_v22 = vpop.permute.xlu1 %1819  ;;  %v5901_v63 = vpop.permute.xlu0 %1743  ;;  %2622 = vmatpush1.bf16.msra.mxu0 %v4598_v20  ;;  %v1382_v32 = vsel %vm7961_vm14, %v5775_v50, %v1381_v15  ;;  %vm7974_vm14 = vcmask 457728  }
 0x16f   : > { %v1760_v3 = vrot.slane %v5901_v63, 4  ;;  %v4625_v16 = vcombine.high %v1304_v24, %v1382_v32  ;;  %v4624_v40 = vcombine.low %v1304_v24, %v1382_v32  ;;  %v1837_v30 = vrot.slane %v1820_v22, 4 }
 0x170   : > { %1359 = vrot.lane.b32.xlu1 %v5452_v4, %s8053_s16  ;;  %1281 = vrot.lane.b32.xlu0 %v5452_v4, %s8054_s15 }
 0x171   : > { %2864 = vmatprep.subr.bf16.mxu1 %v4625_v16  ;;  %v1768_v55 = vsel %vm441_vm0, %v1759_v34, %v1760_v3 }
 0x172   : > { %v5914_v31 = vpop.permute.xlu1 %1433  ;;  %2865 = vmatpush1.bf16.msra.mxu1 %v4624_v40  ;;  %v5916_v14 = vpop.permute.xlu0 %1821  ;;  %v1770_v27 = vsel %vm7974_vm14, %v1742_v0, %v1768_v55 }
 0x173   : > { %v7978_v50 = vrot.slane %v5914_v31, 4  ;;  %v1838_v47 = vrot.slane %v5916_v14, 4 }
 0x174   : > { %1825 = vrot.lane.b32.xlu1 %v5912_v41, %s7995_s12  ;;  %1747 = vrot.lane.b32.xlu0 %v5912_v41, %s8058_s6 }
 0x175   : > { %v1846_v23 = vsel %vm441_vm0, %v1837_v30, %v1838_v47  ;;  %v1459_v15 = vsel %vm441_vm0, %v1448_v59, %v7978_v50 }
 0x176   : > { %v1898_v38 = vpop.permute.xlu1 %1897  ;;  %v5930_v56 = vpop.permute.xlu0 %1511  ;;  %v1848_v13 = vsel %vm7975_vm13, %v1820_v22, %v1846_v23  ;;  %v1460_v59 = vsel %vm7967_vm15, %v5808_v51, %v1459_v15  ;;  %vm1925_vm15 = vcmask 441344  }
 0x177   : > { %v7973_v54 = vrot.slane %v5930_v56, 4  ;;  %v4601_v20 = vcombine.high %v1770_v27, %v1848_v13  ;;  %v4600_v25 = vcombine.low %v1770_v27, %v1848_v13  ;;  %v1915_v34 = vrot.slane %v1898_v38, 4 }
 0x178   : > { %1515 = vrot.lane.b32.xlu1 %v5452_v4, %s7965_s28  ;;  %1437 = vrot.lane.b32.xlu0 %v5452_v4, %s8055_s17  ;;  %s8059_s28 = smov 54  }
 0x179   : > { %2623 = vmatprep.subr.bf16.mxu0 %v4601_v20  ;;  %v1537_v0 = vsel %vm441_vm0, %v1526_v12, %v7973_v54 }
 0x17a   : > { %v1976_v22 = vpop.permute.xlu1 %1975  ;;  %v5949_v24 = vpop.permute.xlu0 %1899  ;;  %2624 = vmatpush1.bf16.msra.mxu0 %v4600_v25  ;;  %v1538_v32 = vsel %vm7968_vm10, %v5821_v19, %v1537_v0  ;;  %vm2003_vm10 = vcmask 375808  }
 0x17b   : > { %v1916_v16 = vrot.slane %v5949_v24, 4  ;;  %v4627_v40 = vcombine.high %v1460_v59, %v1538_v32  ;;  %v4626_v30 = vcombine.low %v1460_v59, %v1538_v32  ;;  %v1993_v12 = vrot.slane %v1976_v22, 4 }
 0x17c   : > { %1981 = vrot.lane.b32.xlu1 %v5912_v41, %s7993_s7  ;;  %1903 = vrot.lane.b32.xlu0 %v5912_v41, %s8059_s28 }
 0x17d   : > { %2866 = vmatprep.subr.bf16.mxu1 %v4627_v40  ;;  %v1924_v27 = vsel %vm441_vm0, %v1915_v34, %v1916_v16 }
 0x17e   : > { %v5960_v55 = vpop.permute.xlu1 %1589  ;;  %2867 = vmatpush1.bf16.msra.mxu1 %v4626_v30  ;;  %v5962_v51 = vpop.permute.xlu0 %1977  ;;  %v1926_v15 = vsel %vm1925_vm15, %v1898_v38, %v1924_v27  ;;  %v5990_v38 = vld [vmem:[#allocation2 + $0x24] sm:$0xff] }
 0x17f   : > { %v7972_v19 = vrot.slane %v5960_v55, 4  ;;  %v1994_v23 = vrot.slane %v5962_v51, 4 }
 0x180   : > { %1671 = vrot.lane.b32.xlu1 %v5452_v4, %s8056_s24  ;;  %1593 = vrot.lane.b32.xlu0 %v5452_v4, %s8057_s25 }
 0x181   : > { %v2002_v13 = vsel %vm441_vm0, %v1993_v12, %v1994_v23  ;;  %v1615_v4 = vsel %vm441_vm0, %v1604_v43, %v7972_v19 }
 0x182   : > { %v2054_v20 = vpop.permute.xlu1 %2053  ;;  %v5976_v25 = vpop.permute.xlu0 %1667  ;;  %v2004_v0 = vsel %vm2003_vm10, %v1976_v22, %v2002_v13  ;;  %v1616_v43 = vsel %vm7970_vm12, %v5854_v36, %v1615_v4  ;;  %vm2159_vm12 = vcmask 359424  }
 0x183   : > { %v7971_v59 = vrot.slane %v5976_v25, 4  ;;  %v4603_v32 = vcombine.high %v1926_v15, %v2004_v0  ;;  %v4602_v34 = vcombine.low %v1926_v15, %v2004_v0  ;;  %v2071_v27 = vrot.slane %v2054_v20, 4 }
 0x184   : > { %2137 = vrot.lane.b32.xlu1 %v5912_v41, %s7991_s30  ;;  %2059 = vrot.lane.b32.xlu0 %v5912_v41, %s7985_s11 }
 0x185   : > { %2625 = vmatprep.subr.bf16.mxu0 %v4603_v32  ;;  %v1693_v22 = vsel %vm441_vm0, %v1682_v49, %v7971_v59  ;;  %v378_v49 = vld [vmem:[%s5385_s27] sm:$0xff]  ;;  %s8060_s27 = smov 127  }
 0x186   : > { %v2132_v40 = vpop.permute.xlu1 %2131  ;;  %v5997_v30 = vpop.permute.xlu0 %2055  ;;  %2626 = vmatpush1.bf16.msra.mxu0 %v4602_v34  ;;  %v1694_v12 = vsel %vm7969_vm11, %v5867_v46, %v1693_v22  ;;  %379 = vst [vmem:[#allocation2 + $0x40] sm:$0xff] %v378_v49  ;;  %vm2081_vm11 = vcmask 367616  }
 0x187   : > { %v2072_v13 = vrot.slane %v5997_v30, 4  ;;  %v4629_v15 = vcombine.high %v1616_v43, %v1694_v12  ;;  %v4628_v0 = vcombine.low %v1616_v43, %v1694_v12  ;;  %v2149_v32 = vrot.slane %v2132_v40, 4 }
 0x188   : > { %1827 = vrot.lane.b32.xlu1 %v5990_v38, %s7995_s12  ;;  %1749 = vrot.lane.b32.xlu0 %v5990_v38, %s8058_s6  ;;  %s8067_s12 = smov 28  }
 0x189   : > { %2868 = vmatprep.subr.bf16.mxu1 %v4629_v15  ;;  %v2080_v22 = vsel %vm441_vm0, %v2071_v27, %v2072_v13 }
 0x18a   : > { %v6009_v34 = vpop.permute.xlu1 %1745  ;;  %2869 = vmatpush1.bf16.msra.mxu1 %v4628_v0  ;;  %v6011_v36 = vpop.permute.xlu0 %2133  ;;  %v2082_v0 = vsel %vm2081_vm11, %v2054_v20, %v2080_v22 }
 0x18b   : > { %v7977_v46 = vrot.slane %v6009_v34, 4  ;;  %v2150_v4 = vrot.slane %v6011_v36, 4 }
 0x18c   : > { %2293 = vrot.lane.b32.xlu1 %v5912_v41, %s7983_s29  ;;  %2215 = vrot.lane.b32.xlu0 %v5912_v41, %s7981_s9 }
 0x18d   : > { %v2158_v43 = vsel %vm441_vm0, %v2149_v32, %v2150_v4  ;;  %v1771_v54 = vsel %vm441_vm0, %v1760_v3, %v7977_v46 }
 0x18e   : > { %v2210_v12 = vpop.permute.xlu1 %2209  ;;  %v6025_v15 = vpop.permute.xlu0 %1823  ;;  %v2160_v49 = vsel %vm2159_vm12, %v2132_v40, %v2158_v43  ;;  %v1772_v3 = vsel %vm7974_vm14, %v5901_v63, %v1771_v54  ;;  %vm2237_vm14 = vcmask 293888  }
 0x18f   : > { %v7976_v27 = vrot.slane %v6025_v15, 4  ;;  %v4605_v59 = vcombine.high %v2082_v0, %v2160_v49  ;;  %v4604_v19 = vcombine.low %v2082_v0, %v2160_v49  ;;  %v2227_v43 = vrot.slane %v2210_v12, 4 }
 0x190   : > { %1983 = vrot.lane.b32.xlu1 %v5990_v38, %s7993_s7  ;;  %1905 = vrot.lane.b32.xlu0 %v5990_v38, %s8059_s28  ;;  %s8066_s7 = smov 108  }
 0x191   : > { %2627 = vmatprep.subr.bf16.mxu0 %v4605_v59  ;;  %v1849_v20 = vsel %vm441_vm0, %v1838_v47, %v7976_v27 }
 0x192   : > { %v2288_v40 = vpop.permute.xlu1 %2287  ;;  %v6044_v32 = vpop.permute.xlu0 %2211  ;;  %2628 = vmatpush1.bf16.msra.mxu0 %v4604_v19  ;;  %v1850_v22 = vsel %vm7975_vm13, %v5916_v14, %v1849_v20  ;;  %vm2315_vm13 = vcmask 285696  }
 0x193   : > { %v2228_v0 = vrot.slane %v6044_v32, 4  ;;  %v4631_v59 = vcombine.high %v1772_v3, %v1850_v22  ;;  %v4630_v49 = vcombine.low %v1772_v3, %v1850_v22  ;;  %v2305_v47 = vrot.slane %v2288_v40, 4 }
 0x194   : > { %2061 = vrot.lane.b32.xlu1 %v5990_v38, %s7985_s11  ;;  %2371 = vrot.lane.b32.xlu0 %v5912_v41, %s7989_s13  ;;  %s8063_s11 = smov 117  }
 0x195   : > { %2870 = vmatprep.subr.bf16.mxu1 %v4631_v59  ;;  %v2236_v20 = vsel %vm441_vm0, %v2227_v43, %v2228_v0 }
 0x196   : > { %v6055_v19 = vpop.permute.xlu1 %1901  ;;  %2871 = vmatpush1.bf16.msra.mxu1 %v4630_v49  ;;  %v6057_v63 = vpop.permute.xlu0 %2289  ;;  %v2238_v59 = vsel %vm2237_vm14, %v2210_v12, %v2236_v20 }
 0x197   : > { %v7980_v14 = vrot.slane %v6055_v19, 4  ;;  %v2306_v54 = vrot.slane %v6057_v63, 4 }
 0x198   : > { %424 = vrot.lane.b32.xlu1 %v5524_v7, %s8060_s27  ;;  %2139 = vrot.lane.b32.xlu0 %v5990_v38, %s7991_s30  ;;  %s8065_s30 = smov 107  }
 0x199   : > { %v2314_v41 = vsel %vm441_vm0, %v2305_v47, %v2306_v54  ;;  %v1927_v50 = vsel %vm441_vm0, %v1916_v16, %v7980_v14 }
 0x19a   : > { %v2366_v3 = vpop.permute.xlu1 %2365  ;;  %v6071_v22 = vpop.permute.xlu0 %1979  ;;  %v2316_v49 = vsel %vm2315_vm13, %v2288_v40, %v2314_v41  ;;  %v1928_v16 = vsel %vm1925_vm15, %v5949_v24, %v1927_v50 }
 0x19b   : > { %v1995_v43 = vrot.slane %v6071_v22, 4  ;;  %v4607_v27 = vcombine.high %v2238_v59, %v2316_v49  ;;  %v4606_v46 = vcombine.low %v2238_v59, %v2316_v49  ;;  %v2383_v47 = vrot.slane %v2366_v3, 4 }
 0x19c   : > { %2295 = vrot.lane.b32.xlu1 %v5990_v38, %s7983_s29  ;;  %2217 = vrot.lane.b32.xlu0 %v5990_v38, %s7981_s9  ;;  %s8061_s9 = smov 118   ;;  %s8062_s29 = smov 126  }
 0x19d   : > { %2629 = vmatprep.subr.bf16.mxu0 %v4607_v27  ;;  %v2005_v12 = vsel %vm441_vm0, %v1994_v23, %v1995_v43 }
 0x19e   : > { %v6090_v40 = vpop.permute.xlu1 %2057  ;;  %v6092_v20 = vpop.permute.xlu0 %2367  ;;  %2630 = vmatpush1.bf16.msra.mxu0 %v4606_v46  ;;  %v2006_v41 = vsel %vm2003_vm10, %v5962_v51, %v2005_v12 }
 0x19f   : > { %v7988_v27 = vrot.slane %v6090_v40, 4  ;;  %v2384_v59 = vrot.slane %v6092_v20, 4  ;;  %v4633_v49 = vcombine.high %v1928_v16, %v2006_v41  ;;  %v4632_v14 = vcombine.low %v1928_v16, %v2006_v41 }
 0x1a0   : > { %581 = vrot.lane.b32.xlu1 %v5524_v7, %s8061_s9  ;;  %503 = vrot.lane.b32.xlu0 %v5524_v7, %s8062_s29 }
 0x1a1   : > { %v2392_v50 = vsel %vm441_vm0, %v2383_v47, %v2384_v59  ;;  %2872 = vmatprep.subr.bf16.mxu1 %v4633_v49  ;;  %v2083_v46 = vsel %vm441_vm0, %v2072_v13, %v7988_v27 }
 0x1a2   : > { %v6107_v24 = vpop.permute.xlu1 %420  ;;  %2873 = vmatpush1.bf16.msra.mxu1 %v4632_v14  ;;  %v6109_v51 = vpop.permute.xlu0 %2135  ;;  %v2394_v23 = vsel %vm2393_vm9, %v2366_v3, %v2392_v50  ;;  %v382_v14 = vld [vmem:[#allocation2 + $0x10] sm:$0xff] }
 0x1a3   : > { %v435_v12 = vrot.slane %v6107_v24, 4  ;;  %v7987_v16 = vrot.slane %v6109_v51, 4  ;;  %v4609_v41 = vcombine.high %v2394_v23, %v2394_v23  ;;  %v4608_v47 = vcombine.low %v2394_v23, %v2394_v23 }
 0x1a4   : > { %659 = vrot.lane.b32.xlu1 %v5524_v7, %s8063_s11  ;;  %2373 = vrot.lane.b32.xlu0 %v5990_v38, %s7989_s13  ;;  %v6137_v38 = vcombine.low %v5614_v52, %v5614_v52  ;;  %s8064_s13 = smov 116  }
 0x1a5   : > { %4610 = vmatprep.subr.msk.bf16.mxu0 %vm441_vm0, %v4609_v41  ;;  %v2600_v3 = vsel %vm441_vm0, %v4608_v47, 0  ;;  %v2161_v13 = vsel %vm441_vm0, %v2150_v4, %v7987_v16  ;;  %v447_v49 = vsel %vm441_vm0, %v434_v45, %v435_v12  ;;  %v2084_v41 = vsel %vm2081_vm11, %v5997_v30, %v2083_v46 }
 0x1a6   : > { %v6139_v50 = vpop.permute.xlu1 %2291  ;;  %v6141_v23 = vpop.permute.xlu0 %2213  ;;  %2632 = vmatpush1.bf16.msra.mxu0 %v2600_v3  ;;  %v2162_v4 = vsel %vm2159_vm12, %v6011_v36, %v2161_v13  ;;  %v448_v47 = vsel %vm443_vm1, %v5600_v44, %v447_v49 }
 0x1a7   : > { %v2307_v45 = vrot.slane %v6139_v50, 4  ;;  %v2229_v16 = vrot.slane %v6141_v23, 4  ;;  %v4635_v52 = vcombine.high %v2084_v41, %v2162_v4  ;;  %v4642_v27 = vcombine.low %v382_v14, %v448_v47 }
 0x1a8   : > { %426 = vrot.lane.b32.xlu1 %v5620_v57, %s8060_s27  ;;  %737 = vrot.lane.b32.xlu0 %v5524_v7, %s8064_s13  ;;  %v4643_v3 = vcombine.high %v382_v14, %v448_v47  ;;  %v4634_v30 = vcombine.low %v2084_v41, %v2162_v4 }
 0x1a9   : > { %2874 = vmatprep.subr.bf16.mxu1 %v4635_v52  ;;  %2638 = vmatmul.mubr.bf16.vlgmr.msra.gmra.mrb[0].mxu0 %v6137_v38  ;;  %v2239_v44 = vsel %vm441_vm0, %v2228_v0, %v2229_v16  ;;  %v2317_v36 = vsel %vm441_vm0, %v2306_v54, %v2307_v45  ;;  %v6178_v54 = vld [vmem:[#allocation2 + $0x28] sm:$0xff] }
 0x1aa   : > { %3098 = vmatprep.subr.bf16.mxu0 %v4643_v3  ;;  %v6166_v46 = vpop.permute.xlu1 %577  ;;  %2875 = vmatpush1.bf16.msra.mxu1 %v4634_v30  ;;  %v6168_v7 = vpop.permute.xlu0 %499  ;;  %v2240_v14 = vsel %vm2237_vm14, %v6044_v32, %v2239_v44  ;;  %v2318_v13 = vsel %vm2315_vm13, %v6057_v63, %v2317_v36 }
 0x1ab   : > { %v592_v0 = vrot.slane %v6166_v46, 4  ;;  %v514_v49 = vrot.slane %v6168_v7, 4  ;;  %3099 = vmatpush1.bf16.msra.mxu0 %v4642_v27  ;;  %v4637_v41 = vcombine.high %v2240_v14, %v2318_v13  ;;  %v4636_v4 = vcombine.low %v2240_v14, %v2318_v13  ;;  %4671 = vmatprep.mubr.msk.bf16.mxu0 %vm2594_vm6, %v5629_v58 }
 0x1ac   : > { %893 = vrot.lane.b32.xlu1 %v6178_v54, %s8065_s30  ;;  %815 = vrot.lane.b32.xlu0 %v6178_v54, %s8066_s7 }
 0x1ad   : > { %2876 = vmatprep.subr.bf16.mxu1 %v4637_v41  ;;  %v525_v32 = vsel %vm441_vm0, %v513_v62, %v514_v49  ;;  %v603_v63 = vsel %vm441_vm0, %v591_v10, %v592_v0 }
 0x1ae   : > { %v6194_v27 = vpop.permute.xlu1 %655  ;;  %2877 = vmatpush1.bf16.msra.mxu1 %v4636_v4  ;;  %v6196_v47 = vpop.permute.xlu0 %2369  ;;  %v526_v52 = vsel %vm7998_vm3, %v5631_v60, %v525_v32  ;;  %v604_v3 = vsel %vm7997_vm2, %v5651_v5, %v603_v63  ;;  %v383_v63 = vld [vmem:[#allocation2 + $0x18] sm:$0xff] }
 0x1af   : > { %v670_v30 = vrot.slane %v6194_v27, 4  ;;  %v2385_v62 = vrot.slane %v6196_v47, 4  ;;  %v4644_v44 = vcombine.low %v526_v52, %v604_v3  ;;  %v4645_v36 = vcombine.high %v526_v52, %v604_v3 }
 0x1b0   : > { %583 = vrot.lane.b32.xlu1 %v5620_v57, %s8061_s9  ;;  %505 = vrot.lane.b32.xlu0 %v5620_v57, %s8062_s29 }
 0x1b1   : > { %v2395_v60 = vsel %vm441_vm0, %v2384_v59, %v2385_v62  ;;  %3100 = vmatprep.subr.bf16.mxu0 %v4645_v36  ;;  %v681_v13 = vsel %vm441_vm0, %v669_v18, %v670_v30 }
 0x1b2   : > { %v6213_v5 = vpop.permute.xlu1 %422  ;;  %v6215_v10 = vpop.permute.xlu0 %733  ;;  %3101 = vmatpush1.bf16.msra.mxu0 %v4644_v44  ;;  %v2396_v14 = vsel %vm2393_vm9, %v6092_v20, %v2395_v60  ;;  %v682_v36 = vsel %vm677_vm4, %v5681_v26, %v681_v13 }
 0x1b3   : > { %v436_v41 = vrot.slane %v6213_v5, 4  ;;  %v748_v4 = vrot.slane %v6215_v10, 4  ;;  %v4639_v59 = vcombine.high %v2396_v14, %v2396_v14  ;;  %v4638_v32 = vcombine.low %v2396_v14, %v2396_v14 }
 0x1b4   : > { %1049 = vrot.lane.b32.xlu1 %v6178_v54, %s8067_s12  ;;  %971 = vrot.lane.b32.xlu0 %v6178_v54, %s8050_s26 }
 0x1b5   : > { %4640 = vmatprep.subr.msk.bf16.mxu1 %vm441_vm0, %v4639_v59  ;;  %v2847_v20 = vsel %vm441_vm0, %v4638_v32, 0  ;;  %v759_v18 = vsel %vm441_vm0, %v747_v37, %v748_v4  ;;  %v449_v52 = vsel %vm441_vm0, %v435_v12, %v436_v41 }
 0x1b6   : > { %v6242_v3 = vpop.permute.xlu1 %889  ;;  %2879 = vmatpush1.bf16.msra.mxu1 %v2847_v20  ;;  %v6244_v44 = vpop.permute.xlu0 %811  ;;  %v760_v60 = vsel %vm755_vm5, %v5697_v33, %v759_v18  ;;  %v450_v37 = vsel %vm443_vm1, %v6107_v24, %v449_v52 }
 0x1b7   : > { %v904_v14 = vrot.slane %v6242_v3, 4  ;;  %v826_v59 = vrot.slane %v6244_v44, 4  ;;  %v4646_v32 = vcombine.low %v682_v36, %v760_v60  ;;  %v4647_v12 = vcombine.high %v682_v36, %v760_v60 }
 0x1b8   : > { %739 = vrot.lane.b32.xlu1 %v5620_v57, %s8064_s13  ;;  %661 = vrot.lane.b32.xlu0 %v5620_v57, %s8063_s11  ;;  %v4672_v20 = vcombine.low %v383_v63, %v450_v37  ;;  %v4673_v26 = vcombine.high %v383_v63, %v450_v37 }
 0x1b9   : > { %3102 = vmatprep.subr.bf16.mxu0 %v4647_v12  ;;  %2885 = vmatmul.mubr.bf16.vlgmr.msra.gmra.mrb[0].mxu1 %v6137_v38  ;;  %v837_v33 = vsel %vm441_vm0, %v825_v35, %v826_v59  ;;  %v915_v24 = vsel %vm441_vm0, %v903_v9, %v904_v14 }
 0x1ba   : > { %3344 = vmatprep.subr.bf16.mxu1 %v4673_v26  ;;  %v6269_v13 = vpop.permute.xlu1 %579  ;;  %v6271_v18 = vpop.permute.xlu0 %501  ;;  %3103 = vmatpush1.bf16.msra.mxu0 %v4646_v32  ;;  %v838_v63 = vsel %vm833_vm7, %v5727_v53, %v837_v33  ;;  %v916_v52 = vsel %vm911_vm8, %v5743_v1, %v915_v24 }
 0x1bb   : > { %v593_v35 = vrot.slane %v6269_v13, 4  ;;  %3345 = vmatpush1.bf16.msra.mxu1 %v4672_v20  ;;  %v515_v36 = vrot.slane %v6271_v18, 4  ;;  %v4648_v60 = vcombine.low %v838_v63, %v916_v52  ;;  %v4649_v37 = vcombine.high %v838_v63, %v916_v52  ;;  %4701 = vmatprep.mubr.msk.bf16.mxu1 %vm2594_vm6, %v5629_v58 }
 0x1bc   : > { %1205 = vrot.lane.b32.xlu1 %v6178_v54, %s8051_s10  ;;  %1127 = vrot.lane.b32.xlu0 %v6178_v54, %s8052_s8 }
 0x1bd   : > { %3104 = vmatprep.subr.bf16.mxu0 %v4649_v37  ;;  %v527_v53 = vsel %vm441_vm0, %v514_v49, %v515_v36  ;;  %v605_v1 = vsel %vm441_vm0, %v592_v0, %v593_v35 }
 0x1be   : > { %v6295_v9 = vpop.permute.xlu1 %1045  ;;  %v6297_v32 = vpop.permute.xlu0 %967  ;;  %3105 = vmatpush1.bf16.msra.mxu0 %v4648_v60  ;;  %v528_v12 = vsel %vm7998_vm3, %v6168_v7, %v527_v53  ;;  %v606_v20 = vsel %vm7997_vm2, %v6166_v46, %v605_v1  ;;  %vm8068_vm2 = vcmask 867328   ;;  %vm8069_vm3 = vcmask 228352  }
 0x1bf   : > { %v1060_v26 = vrot.slane %v6295_v9, 4  ;;  %v982_v49 = vrot.slane %v6297_v32, 4  ;;  %v4674_v33 = vcombine.low %v528_v12, %v606_v20  ;;  %v4675_v24 = vcombine.high %v528_v12, %v606_v20 }
 0x1c0   : > { %895 = vrot.lane.b32.xlu1 %v5620_v57, %s8065_s30  ;;  %817 = vrot.lane.b32.xlu0 %v5620_v57, %s8066_s7 }
 0x1c1   : > { %3346 = vmatprep.subr.bf16.mxu1 %v4675_v24  ;;  %v993_v7 = vsel %vm441_vm0, %v981_v61, %v982_v49  ;;  %v1071_v46 = vsel %vm441_vm0, %v1059_v42, %v1060_v26 }
 0x1c2   : > { %v6319_v0 = vpop.permute.xlu1 %735  ;;  %3347 = vmatpush1.bf16.msra.mxu1 %v4674_v33  ;;  %v6321_v63 = vpop.permute.xlu0 %657  ;;  %v994_v57 = vsel %vm8068_vm2, %v5773_v29, %v993_v7  ;;  %v1072_v52 = vsel %vm8069_vm3, %v5789_v39, %v1071_v46  ;;  %v6353_v46 = vld [vmem:[#allocation2 + $0x30] sm:$0xff]  ;;  %vm8070_vm2 = vcmask 220160   ;;  %vm8071_vm3 = vcmask 211968  }
 0x1c3   : > { %v749_v60 = vrot.slane %v6319_v0, 4  ;;  %v671_v61 = vrot.slane %v6321_v63, 4  ;;  %v4650_v37 = vcombine.low %v994_v57, %v1072_v52  ;;  %v4651_v53 = vcombine.high %v994_v57, %v1072_v52 }
 0x1c4   : > { %1361 = vrot.lane.b32.xlu1 %v6178_v54, %s8053_s16  ;;  %1283 = vrot.lane.b32.xlu0 %v6178_v54, %s8054_s15 }
 0x1c5   : > { %3106 = vmatprep.subr.bf16.mxu0 %v4651_v53  ;;  %v683_v29 = vsel %vm441_vm0, %v670_v30, %v671_v61  ;;  %v761_v39 = vsel %vm441_vm0, %v748_v4, %v749_v60 }
 0x1c6   : > { %v6343_v42 = vpop.permute.xlu1 %1201  ;;  %v6345_v1 = vpop.permute.xlu0 %1123  ;;  %3107 = vmatpush1.bf16.msra.mxu0 %v4650_v37  ;;  %v684_v12 = vsel %vm677_vm4, %v6194_v27, %v683_v29  ;;  %v762_v20 = vsel %vm755_vm5, %v6215_v10, %v761_v39 }
 0x1c7   : > { %v1216_v33 = vrot.slane %v6343_v42, 4  ;;  %v1138_v30 = vrot.slane %v6345_v1, 4  ;;  %v4676_v24 = vcombine.low %v684_v12, %v762_v20  ;;  %v4677_v7 = vcombine.high %v684_v12, %v762_v20 }
 0x1c8   : > { %1051 = vrot.lane.b32.xlu1 %v6353_v46, %s8067_s12  ;;  %973 = vrot.lane.b32.xlu0 %v6353_v46, %s8050_s26 }
 0x1c9   : > { %3348 = vmatprep.subr.bf16.mxu1 %v4677_v7  ;;  %v1149_v27 = vsel %vm441_vm0, %v1137_v11, %v1138_v30  ;;  %v1227_v10 = vsel %vm441_vm0, %v1215_v21, %v1216_v33 }
 0x1ca   : > { %v6369_v4 = vpop.permute.xlu1 %891  ;;  %3349 = vmatpush1.bf16.msra.mxu1 %v4676_v24  ;;  %v6371_v57 = vpop.permute.xlu0 %813  ;;  %v1150_v52 = vsel %vm8070_vm2, %v5819_v8, %v1149_v27  ;;  %v1228_v37 = vsel %vm8071_vm3, %v5835_v17, %v1227_v10  ;;  %vm8073_vm2 = vcmask 146432   ;;  %vm8074_vm3 = vcmask 138240  }
 0x1cb   : > { %v905_v53 = vrot.slane %v6369_v4, 4  ;;  %v827_v11 = vrot.slane %v6371_v57, 4  ;;  %v4652_v29 = vcombine.low %v1150_v52, %v1228_v37  ;;  %v4653_v39 = vcombine.high %v1150_v52, %v1228_v37 }
 0x1cc   : > { %1517 = vrot.lane.b32.xlu1 %v6178_v54, %s8072_s0  ;;  %1439 = vrot.lane.b32.xlu0 %v6178_v54, %s8055_s17 }
 0x1cd   : > { %3108 = vmatprep.subr.bf16.mxu0 %v4653_v39  ;;  %v839_v8 = vsel %vm441_vm0, %v826_v59, %v827_v11  ;;  %v917_v17 = vsel %vm441_vm0, %v904_v14, %v905_v53 }
 0x1ce   : > { %v6393_v21 = vpop.permute.xlu1 %1357  ;;  %v6395_v12 = vpop.permute.xlu0 %1279  ;;  %3109 = vmatpush1.bf16.msra.mxu0 %v4652_v29  ;;  %v840_v20 = vsel %vm833_vm7, %v6244_v44, %v839_v8  ;;  %v918_v24 = vsel %vm911_vm8, %v6242_v3, %v917_v17 }
 0x1cf   : > { %v1372_v7 = vrot.slane %v6393_v21, 4  ;;  %v1294_v59 = vrot.slane %v6395_v12, 4  ;;  %v4678_v27 = vcombine.low %v840_v20, %v918_v24  ;;  %v4679_v10 = vcombine.high %v840_v20, %v918_v24 }
 0x1d0   : > { %1207 = vrot.lane.b32.xlu1 %v6353_v46, %s8051_s10  ;;  %1129 = vrot.lane.b32.xlu0 %v6353_v46, %s8052_s8 }
 0x1d1   : > { %3350 = vmatprep.subr.bf16.mxu1 %v4679_v10  ;;  %v1305_v44 = vsel %vm441_vm0, %v1293_v28, %v1294_v59  ;;  %v1383_v3 = vsel %vm441_vm0, %v1371_v6, %v1372_v7 }
 0x1d2   : > { %v6417_v14 = vpop.permute.xlu1 %1047  ;;  %3351 = vmatpush1.bf16.msra.mxu1 %v4678_v27  ;;  %v6419_v52 = vpop.permute.xlu0 %969  ;;  %v1306_v37 = vsel %vm8073_vm2, %v5865_v48, %v1305_v44  ;;  %v1384_v29 = vsel %vm8074_vm3, %v5882_v2, %v1383_v3  ;;  %vm8075_vm2 = vcmask 867328   ;;  %vm8076_vm3 = vcmask 228352  }
 0x1d3   : > { %v1061_v39 = vrot.slane %v6417_v14, 4  ;;  %v983_v28 = vrot.slane %v6419_v52, 4  ;;  %v4654_v8 = vcombine.low %v1306_v37, %v1384_v29  ;;  %v4655_v17 = vcombine.high %v1306_v37, %v1384_v29 }
 0x1d4   : > { %1673 = vrot.lane.b32.xlu1 %v6178_v54, %s8056_s24  ;;  %1595 = vrot.lane.b32.xlu0 %v6178_v54, %s8057_s25  ;;  %v8078_v3 = vrot.slane %v5930_v56, 4 }
 0x1d5   : > { %3110 = vmatprep.subr.bf16.mxu0 %v4655_v17  ;;  %v995_v48 = vsel %vm441_vm0, %v982_v49, %v983_v28  ;;  %v1073_v2 = vsel %vm441_vm0, %v1060_v26, %v1061_v39  ;;  %v6455_v26 = vld [vmem:[#allocation2 + $0x2c] sm:$0xff] }
 0x1d6   : > { %v6441_v6 = vpop.permute.xlu1 %1513  ;;  %v6443_v20 = vpop.permute.xlu0 %1435  ;;  %3111 = vmatpush1.bf16.msra.mxu0 %v4654_v8  ;;  %v996_v54 = vsel %vm8075_vm2, %v6297_v32, %v995_v48  ;;  %v1074_v24 = vsel %vm8076_vm3, %v6295_v9, %v1073_v2  ;;  %v8077_v32 = vrot.slane %v5914_v31, 4  ;;  %vm8079_vm2 = vcmask 130048  }
 0x1d7   : > { %v1528_v27 = vrot.slane %v6441_v6, 4  ;;  %v1450_v49 = vrot.slane %v6443_v20, 4  ;;  %v4680_v10 = vcombine.low %v996_v54, %v1074_v24  ;;  %v4681_v44 = vcombine.high %v996_v54, %v1074_v24 }
 0x1d8   : > { %1363 = vrot.lane.b32.xlu1 %v6353_v46, %s8053_s16  ;;  %1285 = vrot.lane.b32.xlu0 %v6353_v46, %s8054_s15  ;;  %vm8080_vm3 = vcmask 64512  }
 0x1d9   : > { %3352 = vmatprep.subr.bf16.mxu1 %v4681_v44  ;;  %v1461_v9 = vsel %vm441_vm0, %v8077_v32, %v1450_v49  ;;  %v1539_v37 = vsel %vm441_vm0, %v8078_v3, %v1528_v27 }
 0x1da   : > { %v6467_v29 = vpop.permute.xlu1 %1203  ;;  %3353 = vmatpush1.bf16.msra.mxu1 %v4680_v10  ;;  %v6469_v8 = vpop.permute.xlu0 %1125  ;;  %v1462_v17 = vsel %vm8079_vm2, %v5914_v31, %v1461_v9  ;;  %v1540_v48 = vsel %vm8080_vm3, %v5930_v56, %v1539_v37  ;;  %vm8082_vm2 = vcmask 220160   ;;  %vm8083_vm3 = vcmask 211968  }
 0x1db   : > { %v7999_v2 = vrot.slane %v6467_v29, 4  ;;  %v1139_v54 = vrot.slane %v6469_v8, 4  ;;  %v4656_v24 = vcombine.low %v1462_v17, %v1540_v48  ;;  %v4657_v44 = vcombine.high %v1462_v17, %v1540_v48 }
 0x1dc   : > { %1829 = vrot.lane.b32.xlu1 %v6455_v26, %s8081_s1  ;;  %1751 = vrot.lane.b32.xlu0 %v6455_v26, %s8058_s6 }
 0x1dd   : > { %3112 = vmatprep.subr.bf16.mxu0 %v4657_v44  ;;  %v1151_v31 = vsel %vm441_vm0, %v1138_v30, %v1139_v54  ;;  %v1229_v56 = vsel %vm441_vm0, %v1216_v33, %v7999_v2 }
 0x1de   : > { %v6491_v10 = vpop.permute.xlu1 %1669  ;;  %v6493_v32 = vpop.permute.xlu0 %1591  ;;  %3113 = vmatpush1.bf16.msra.mxu0 %v4656_v24  ;;  %v1152_v9 = vsel %vm8082_vm2, %v6345_v1, %v1151_v31  ;;  %v1230_v3 = vsel %vm8083_vm3, %v6343_v42, %v1229_v56  ;;  %v8084_v1 = vrot.slane %v5960_v55, 4  ;;  %v8085_v42 = vrot.slane %v5976_v25, 4 }
 0x1df   : > { %v1684_v37 = vrot.slane %v6491_v10, 4  ;;  %v1606_v30 = vrot.slane %v6493_v32, 4  ;;  %v4682_v17 = vcombine.low %v1152_v9, %v1230_v3  ;;  %v4683_v48 = vcombine.high %v1152_v9, %v1230_v3 }
 0x1e0   : > { %1519 = vrot.lane.b32.xlu1 %v6353_v46, %s8072_s0  ;;  %1441 = vrot.lane.b32.xlu0 %v6353_v46, %s8055_s17  ;;  %vm8086_vm2 = vcmask 56320   ;;  %vm8087_vm3 = vcmask 48128  }
 0x1e1   : > { %3354 = vmatprep.subr.bf16.mxu1 %v4683_v48  ;;  %v1617_v33 = vsel %vm441_vm0, %v8084_v1, %v1606_v30  ;;  %v1695_v24 = vsel %vm441_vm0, %v8085_v42, %v1684_v37 }
 0x1e2   : > { %v6515_v44 = vpop.permute.xlu1 %1359  ;;  %3355 = vmatpush1.bf16.msra.mxu1 %v4682_v17  ;;  %v6517_v31 = vpop.permute.xlu0 %1281  ;;  %v1618_v56 = vsel %vm8086_vm2, %v5960_v55, %v1617_v33  ;;  %v1696_v9 = vsel %vm8087_vm3, %v5976_v25, %v1695_v24  ;;  %vm8089_vm2 = vcmask 146432   ;;  %vm8090_vm3 = vcmask 138240  }
 0x1e3   : > { %v8000_v3 = vrot.slane %v6515_v44, 4  ;;  %v1295_v48 = vrot.slane %v6517_v31, 4  ;;  %v4658_v1 = vcombine.low %v1618_v56, %v1696_v9  ;;  %v4659_v2 = vcombine.high %v1618_v56, %v1696_v9 }
 0x1e4   : > { %1985 = vrot.lane.b32.xlu1 %v6455_v26, %s8088_s2  ;;  %1907 = vrot.lane.b32.xlu0 %v6455_v26, %s8059_s28 }
 0x1e5   : > { %3114 = vmatprep.subr.bf16.mxu0 %v4659_v2  ;;  %v1307_v55 = vsel %vm441_vm0, %v1294_v59, %v1295_v48  ;;  %v1385_v25 = vsel %vm441_vm0, %v1372_v7, %v8000_v3 }
 0x1e6   : > { %v6539_v17 = vpop.permute.xlu1 %1825  ;;  %v6541_v33 = vpop.permute.xlu0 %1747  ;;  %3115 = vmatpush1.bf16.msra.mxu0 %v4658_v1  ;;  %v1308_v2 = vsel %vm8089_vm2, %v6395_v12, %v1307_v55  ;;  %v1386_v42 = vsel %vm8090_vm3, %v6393_v21, %v1385_v25  ;;  %v8091_v12 = vrot.slane %v6009_v34, 4  ;;  %v8092_v21 = vrot.slane %v6025_v15, 4 }
 0x1e7   : > { %v1840_v24 = vrot.slane %v6539_v17, 4  ;;  %v1762_v59 = vrot.slane %v6541_v33, 4  ;;  %v4684_v56 = vcombine.low %v1308_v2, %v1386_v42  ;;  %v4685_v9 = vcombine.high %v1308_v2, %v1386_v42 }
 0x1e8   : > { %1675 = vrot.lane.b32.xlu1 %v6353_v46, %s8056_s24  ;;  %1597 = vrot.lane.b32.xlu0 %v6353_v46, %s8057_s25  ;;  %vm8093_vm2 = vcmask 457728   ;;  %vm8094_vm3 = vcmask 449536  }
 0x1e9   : > { %3356 = vmatprep.subr.bf16.mxu1 %v4685_v9  ;;  %v1773_v7 = vsel %vm441_vm0, %v8091_v12, %v1762_v59  ;;  %v1851_v1 = vsel %vm441_vm0, %v8092_v21, %v1840_v24 }
 0x1ea   : > { %v6563_v55 = vpop.permute.xlu1 %1515  ;;  %3357 = vmatpush1.bf16.msra.mxu1 %v4684_v56  ;;  %v6565_v25 = vpop.permute.xlu0 %1437  ;;  %v1774_v46 = vsel %vm8093_vm2, %v6009_v34, %v1773_v7  ;;  %v1852_v2 = vsel %vm8094_vm3, %v6025_v15, %v1851_v1  ;;  %v6577_v56 = vld [vmem:[#allocation2 + $0x34] sm:$0xff]  ;;  %vm8097_vm2 = vcmask 130048   ;;  %vm8098_vm3 = vcmask 64512  }
 0x1eb   : > { %v8003_v42 = vrot.slane %v6563_v55, 4  ;;  %v8002_v9 = vrot.slane %v6565_v25, 4  ;;  %v4660_v12 = vcombine.low %v1774_v46, %v1852_v2  ;;  %v4661_v3 = vcombine.high %v1774_v46, %v1852_v2 }
 0x1ec   : > { %2141 = vrot.lane.b32.xlu1 %v6455_v26, %s8095_s3  ;;  %2063 = vrot.lane.b32.xlu0 %v6455_v26, %s8096_s14 }
 0x1ed   : > { %3116 = vmatprep.subr.bf16.mxu0 %v4661_v3  ;;  %v1463_v34 = vsel %vm441_vm0, %v1450_v49, %v8002_v9  ;;  %v1541_v15 = vsel %vm441_vm0, %v1528_v27, %v8003_v42 }
 0x1ee   : > { %v6589_v7 = vpop.permute.xlu1 %1981  ;;  %v6591_v21 = vpop.permute.xlu0 %1903  ;;  %3117 = vmatpush1.bf16.msra.mxu0 %v4660_v12  ;;  %v1464_v3 = vsel %vm8097_vm2, %v6443_v20, %v1463_v34  ;;  %v1542_v1 = vsel %vm8098_vm3, %v6441_v6, %v1541_v15  ;;  %v8099_v20 = vrot.slane %v6055_v19, 4  ;;  %vm8102_vm2 = vcmask 56320  }
 0x1ef   : > { %v1996_v46 = vrot.slane %v6589_v7, 4  ;;  %v1918_v49 = vrot.slane %v6591_v21, 4  ;;  %v4686_v2 = vcombine.low %v1464_v3, %v1542_v1  ;;  %v4687_v9 = vcombine.high %v1464_v3, %v1542_v1 }
 0x1f0   : > { %1831 = vrot.lane.b32.xlu1 %v6577_v56, %s8081_s1  ;;  %1753 = vrot.lane.b32.xlu0 %v6577_v56, %s8058_s6  ;;  %vm8103_vm3 = vcmask 48128  }
 0x1f1   : > { %3358 = vmatprep.subr.bf16.mxu1 %v4687_v9  ;;  %v1929_v27 = vsel %vm441_vm0, %v8099_v20, %v1918_v49  ;;  %v2007_v6 = vsel %vm441_vm0, %v1995_v43, %v1996_v46 }
 0x1f2   : > { %v6613_v12 = vpop.permute.xlu1 %1671  ;;  %3359 = vmatpush1.bf16.msra.mxu1 %v4686_v2  ;;  %v6615_v34 = vpop.permute.xlu0 %1593  ;;  %v1930_v9 = vsel %vm1925_vm15, %v6055_v19, %v1929_v27  ;;  %v2008_v15 = vsel %vm2003_vm10, %v6071_v22, %v2007_v6 }
 0x1f3   : > { %v8006_v3 = vrot.slane %v6613_v12, 4  ;;  %v8005_v1 = vrot.slane %v6615_v34, 4  ;;  %v4662_v20 = vcombine.low %v1930_v9, %v2008_v15  ;;  %v4663_v42 = vcombine.high %v1930_v9, %v2008_v15 }
 0x1f4   : > { %2297 = vrot.lane.b32.xlu1 %v6455_v26, %s8100_s22  ;;  %2219 = vrot.lane.b32.xlu0 %v6455_v26, %s8101_s18 }
 0x1f5   : > { %3118 = vmatprep.subr.bf16.mxu0 %v4663_v42  ;;  %v1619_v19 = vsel %vm441_vm0, %v1606_v30, %v8005_v1  ;;  %v1697_v22 = vsel %vm441_vm0, %v1684_v37, %v8006_v3 }
 0x1f6   : > { %v6637_v43 = vpop.permute.xlu1 %2137  ;;  %v6639_v2 = vpop.permute.xlu0 %2059  ;;  %3119 = vmatpush1.bf16.msra.mxu0 %v4662_v20  ;;  %v1620_v42 = vsel %vm8102_vm2, %v6493_v32, %v1619_v19  ;;  %v1698_v27 = vsel %vm8103_vm3, %v6491_v10, %v1697_v22  ;;  %v8104_v32 = vrot.slane %v6090_v40, 4  ;;  %v8105_v10 = vrot.slane %v6109_v51, 4 }
 0x1f7   : > { %v2152_v6 = vrot.slane %v6637_v43, 4  ;;  %v2074_v30 = vrot.slane %v6639_v2, 4  ;;  %v4688_v9 = vcombine.low %v1620_v42, %v1698_v27  ;;  %v4689_v15 = vcombine.high %v1620_v42, %v1698_v27 }
 0x1f8   : > { %1987 = vrot.lane.b32.xlu1 %v6577_v56, %s8088_s2  ;;  %1909 = vrot.lane.b32.xlu0 %v6577_v56, %s8059_s28  ;;  %vm8107_vm2 = vcmask 457728   ;;  %vm8108_vm3 = vcmask 449536  }
 0x1f9   : > { %3360 = vmatprep.subr.bf16.mxu1 %v4689_v15  ;;  %v2085_v37 = vsel %vm441_vm0, %v8104_v32, %v2074_v30  ;;  %v2163_v20 = vsel %vm441_vm0, %v8105_v10, %v2152_v6 }
 0x1fa   : > { %v6661_v19 = vpop.permute.xlu1 %1827  ;;  %3361 = vmatpush1.bf16.msra.mxu1 %v4688_v9  ;;  %v6663_v22 = vpop.permute.xlu0 %1749  ;;  %v2086_v42 = vsel %vm2081_vm11, %v6090_v40, %v2085_v37  ;;  %v2164_v27 = vsel %vm2159_vm12, %v6109_v51, %v2163_v20 }
 0x1fb   : > { %v1841_v15 = vrot.slane %v6661_v19, 4  ;;  %v1763_v32 = vrot.slane %v6663_v22, 4  ;;  %v4664_v1 = vcombine.low %v2086_v42, %v2164_v27  ;;  %v4665_v3 = vcombine.high %v2086_v42, %v2164_v27  ;;  %v6695_v27 = vld [vmem:[#allocation2 + $0x38] sm:$0xff] }
 0x1fc   : > { %2065 = vrot.lane.b32.xlu1 %v6577_v56, %s8096_s14  ;;  %2375 = vrot.lane.b32.xlu0 %v6455_v26, %s8106_s20 }
 0x1fd   : > { %3120 = vmatprep.subr.bf16.mxu0 %v4665_v3  ;;  %v1775_v40 = vsel %vm441_vm0, %v1762_v59, %v1763_v32  ;;  %v1853_v51 = vsel %vm441_vm0, %v1840_v24, %v1841_v15 }
 0x1fe   : > { %v6685_v9 = vpop.permute.xlu1 %2293  ;;  %v6687_v37 = vpop.permute.xlu0 %2215  ;;  %3121 = vmatpush1.bf16.msra.mxu0 %v4664_v1  ;;  %v1776_v26 = vsel %vm8107_vm2, %v6541_v33, %v1775_v40  ;;  %v1854_v3 = vsel %vm8108_vm3, %v6539_v17, %v1853_v51  ;;  %vm8109_vm2 = vcmask 1031168   ;;  %vm8110_vm3 = vcmask 965632  }
 0x1ff   : > { %v2308_v10 = vrot.slane %v6685_v9, 4  ;;  %v2230_v59 = vrot.slane %v6687_v37, 4  ;;  %v4690_v20 = vcombine.low %v1776_v26, %v1854_v3  ;;  %v4691_v42 = vcombine.high %v1776_v26, %v1854_v3 }
 0x200   : > { %428 = vrot.lane.b32.xlu1 %v6695_v27, %s8060_s27  ;;  %2143 = vrot.lane.b32.xlu0 %v6577_v56, %s8095_s3 }
 0x201   : > { %3362 = vmatprep.subr.bf16.mxu1 %v4691_v42  ;;  %v2241_v17 = vsel %vm441_vm0, %v2229_v16, %v2230_v59  ;;  %v2319_v33 = vsel %vm441_vm0, %v2307_v45, %v2308_v10 }
 0x202   : > { %v6711_v24 = vpop.permute.xlu1 %1983  ;;  %3363 = vmatpush1.bf16.msra.mxu1 %v4690_v20  ;;  %v6713_v1 = vpop.permute.xlu0 %1905  ;;  %v2242_v40 = vsel %vm2237_vm14, %v6141_v23, %v2241_v17  ;;  %v2320_v51 = vsel %vm2315_vm13, %v6139_v50, %v2319_v33 }
 0x203   : > { %v8011_v26 = vrot.slane %v6711_v24, 4  ;;  %v8010_v16 = vrot.slane %v6713_v1, 4  ;;  %v4666_v3 = vcombine.low %v2242_v40, %v2320_v51  ;;  %v4667_v42 = vcombine.high %v2242_v40, %v2320_v51 }
 0x204   : > { %2299 = vrot.lane.b32.xlu1 %v6577_v56, %s8100_s22  ;;  %2221 = vrot.lane.b32.xlu0 %v6577_v56, %s8101_s18 }
 0x205   : > { %3122 = vmatprep.subr.bf16.mxu0 %v4667_v42  ;;  %v1931_v23 = vsel %vm441_vm0, %v1918_v49, %v8010_v16  ;;  %v2009_v50 = vsel %vm441_vm0, %v1996_v46, %v8011_v26 }
 0x206   : > { %v6735_v45 = vpop.permute.xlu1 %2061  ;;  %v6737_v20 = vpop.permute.xlu0 %2371  ;;  %3123 = vmatpush1.bf16.msra.mxu0 %v4666_v3  ;;  %v1932_v17 = vsel %vm1925_vm15, %v6591_v21, %v1931_v23  ;;  %v2010_v33 = vsel %vm2003_vm10, %v6589_v7, %v2009_v50 }
 0x207   : > { %v8008_v40 = vrot.slane %v6735_v45, 4  ;;  %v2386_v49 = vrot.slane %v6737_v20, 4  ;;  %v4692_v51 = vcombine.low %v1932_v17, %v2010_v33  ;;  %v4693_v42 = vcombine.high %v1932_v17, %v2010_v33 }
 0x208   : > { %585 = vrot.lane.b32.xlu1 %v6695_v27, %s8061_s9  ;;  %507 = vrot.lane.b32.xlu0 %v6695_v27, %s8062_s29 }
 0x209   : > { %v2397_v21 = vsel %vm441_vm0, %v2385_v62, %v2386_v49  ;;  %3364 = vmatprep.subr.bf16.mxu1 %v4693_v42  ;;  %v2087_v23 = vsel %vm441_vm0, %v2074_v30, %v8008_v40  ;;  %v384_v42 = vld [vmem:[#allocation2 + $0x20] sm:$0xff] }
 0x20a   : > { %v6754_v7 = vpop.permute.xlu1 %424  ;;  %3365 = vmatpush1.bf16.msra.mxu1 %v4692_v51  ;;  %v6756_v46 = vpop.permute.xlu0 %2139  ;;  %v2398_v3 = vsel %vm2393_vm9, %v6196_v47, %v2397_v21  ;;  %v404_v51 = vld [vmem:[#allocation2 + $0x40] sm:$0xf] }
 0x20b   : > { %v437_v50 = vrot.slane %v6754_v7, 4  ;;  %v8009_v17 = vrot.slane %v6756_v46, 4  ;;  %v4669_v62 = vcombine.high %v2398_v3, %v2398_v3  ;;  %v4668_v33 = vcombine.low %v2398_v3, %v2398_v3 }
 0x20c   : > { %663 = vrot.lane.b32.xlu1 %v6695_v27, %s8063_s11  ;;  %2377 = vrot.lane.b32.xlu0 %v6577_v56, %s8106_s20 }
 0x20d   : > { %4670 = vmatprep.subr.msk.bf16.mxu0 %vm441_vm0, %v4669_v62  ;;  %v3093_v47 = vsel %vm441_vm0, %v4668_v33, 0  ;;  %v2165_v30 = vsel %vm441_vm0, %v2152_v6, %v8009_v17  ;;  %v451_v21 = vsel %vm441_vm0, %v436_v41, %v437_v50  ;;  %v2088_v62 = vsel %vm2081_vm11, %v6639_v2, %v2087_v23 }
 0x20e   : > { %v6783_v3 = vpop.permute.xlu1 %2295  ;;  %v6785_v56 = vpop.permute.xlu0 %2217  ;;  %3125 = vmatpush1.bf16.msra.mxu0 %v3093_v47  ;;  %v2166_v33 = vsel %vm2159_vm12, %v6637_v43, %v2165_v30  ;;  %v452_v6 = vsel %vm443_vm1, %v6213_v5, %v451_v21 }
 0x20f   : > { %v2309_v40 = vrot.slane %v6783_v3, 4  ;;  %v2231_v17 = vrot.slane %v6785_v56, 4  ;;  %v4694_v16 = vcombine.low %v2088_v62, %v2166_v33  ;;  %v4695_v41 = vcombine.high %v2088_v62, %v2166_v33 }
 0x210   : > { %430 = vrot.lane.b32.xlu1 %v404_v51, %s8060_s27  ;;  %741 = vrot.lane.b32.xlu0 %v6695_v27, %s8064_s13  ;;  %v4702_v47 = vcombine.low %v384_v42, %v452_v6  ;;  %v4703_v26 = vcombine.high %v384_v42, %v452_v6 }
 0x211   : > { %3366 = vmatprep.subr.bf16.mxu1 %v4695_v41  ;;  %3131 = vmatmul.mubr.bf16.vlgmr.msra.gmra.mrb[4].mxu0 %v6137_v38  ;;  %v2243_v5 = vsel %vm441_vm0, %v2230_v59, %v2231_v17  ;;  %v2321_v43 = vsel %vm441_vm0, %v2308_v10, %v2309_v40  ;;  %v483_v10 = vld [vmem:[#allocation2 + $0x40] sm:$0xf] }
 0x212   : > { %3590 = vmatprep.subr.bf16.mxu0 %v4703_v26  ;;  %v6809_v2 = vpop.permute.xlu1 %581  ;;  %3367 = vmatpush1.bf16.msra.mxu1 %v4694_v16  ;;  %v6811_v23 = vpop.permute.xlu0 %503  ;;  %v2244_v51 = vsel %vm2237_vm14, %v6687_v37, %v2243_v5  ;;  %v2322_v30 = vsel %vm2315_vm13, %v6685_v9, %v2321_v43  ;;  %v561_v37 = vld [vmem:[#allocation2 + $0x40] sm:$0xf] }
 0x213   : > { %v594_v59 = vrot.slane %v6809_v2, 4  ;;  %v516_v42 = vrot.slane %v6811_v23, 4  ;;  %3591 = vmatpush1.bf16.msra.mxu0 %v4702_v47  ;;  %v4696_v21 = vcombine.low %v2244_v51, %v2322_v30  ;;  %v4697_v62 = vcombine.high %v2244_v51, %v2322_v30  ;;  %4731 = vmatprep.mubr.msk.bf16.mxu0 %vm2594_vm6, %v5629_v58 }
 0x214   : > { %897 = vrot.lane.b32.xlu1 %v6695_v27, %s8065_s30  ;;  %819 = vrot.lane.b32.xlu0 %v6695_v27, %s8066_s7 }
 0x215   : > { %3368 = vmatprep.subr.bf16.mxu1 %v4697_v62  ;;  %v529_v9 = vsel %vm441_vm0, %v515_v36, %v516_v42  ;;  %v607_v26 = vsel %vm441_vm0, %v593_v35, %v594_v59 }
 0x216   : > { %v6835_v16 = vpop.permute.xlu1 %659  ;;  %3369 = vmatpush1.bf16.msra.mxu1 %v4696_v21  ;;  %v6837_v33 = vpop.permute.xlu0 %2373  ;;  %v530_v6 = vsel %vm8109_vm2, %v6271_v18, %v529_v9  ;;  %v608_v41 = vsel %vm8110_vm3, %v6269_v13, %v607_v26  ;;  %v639_v9 = vld [vmem:[#allocation2 + $0x40] sm:$0xf]  ;;  %v385_v26 = vld [vmem:[#allocation2 + $0x28] sm:$0xff] }
 0x217   : > { %v672_v47 = vrot.slane %v6835_v16, 4  ;;  %v2387_v36 = vrot.slane %v6837_v33, 4  ;;  %v4704_v5 = vcombine.low %v530_v6, %v608_v41  ;;  %v4705_v43 = vcombine.high %v530_v6, %v608_v41 }
 0x218   : > { %587 = vrot.lane.b32.xlu1 %v561_v37, %s8061_s9  ;;  %509 = vrot.lane.b32.xlu0 %v483_v10, %s8062_s29  ;;  %v717_v10 = vld [vmem:[#allocation2 + $0x40] sm:$0xf] }
 0x219   : > { %v2399_v35 = vsel %vm441_vm0, %v2386_v49, %v2387_v36  ;;  %3592 = vmatprep.subr.bf16.mxu0 %v4705_v43  ;;  %v685_v30 = vsel %vm441_vm0, %v671_v61, %v672_v47 }
 0x21a   : > { %v6852_v18 = vpop.permute.xlu1 %426  ;;  %v6854_v13 = vpop.permute.xlu0 %737  ;;  %3593 = vmatpush1.bf16.msra.mxu0 %v4704_v5  ;;  %v2400_v51 = vsel %vm2393_vm9, %v6737_v20, %v2399_v35  ;;  %v686_v43 = vsel %vm677_vm4, %v6321_v63, %v685_v30 }
 0x21b   : > { %v8012_v21 = vrot.slane %v6852_v18, 4  ;;  %v750_v62 = vrot.slane %v6854_v13, 4  ;;  %v4699_v49 = vcombine.high %v2400_v51, %v2400_v51  ;;  %v4698_v37 = vcombine.low %v2400_v51, %v2400_v51 }
 0x21c   : > { %1053 = vrot.lane.b32.xlu1 %v6695_v27, %s8067_s12  ;;  %975 = vrot.lane.b32.xlu0 %v6695_v27, %s8050_s26 }
 0x21d   : > { %4700 = vmatprep.subr.msk.bf16.mxu1 %vm441_vm0, %v4699_v49  ;;  %v3339_v20 = vsel %vm441_vm0, %v4698_v37, 0  ;;  %v763_v61 = vsel %vm441_vm0, %v749_v60, %v750_v62  ;;  %v453_v6 = vsel %vm441_vm0, %v437_v50, %v8012_v21 }
 0x21e   : > { %v6881_v41 = vpop.permute.xlu1 %893  ;;  %3371 = vmatpush1.bf16.msra.mxu1 %v3339_v20  ;;  %v6883_v5 = vpop.permute.xlu0 %815  ;;  %v764_v35 = vsel %vm755_vm5, %v6319_v0, %v763_v61  ;;  %v454_v60 = vsel %vm443_vm1, %v6754_v7, %v453_v6 }
 0x21f   : > { %v906_v51 = vrot.slane %v6881_v41, 4  ;;  %v828_v49 = vrot.slane %v6883_v5, 4  ;;  %v4706_v37 = vcombine.low %v686_v43, %v764_v35  ;;  %v4707_v50 = vcombine.high %v686_v43, %v764_v35 }
 0x220   : > { %743 = vrot.lane.b32.xlu1 %v717_v10, %s8064_s13  ;;  %665 = vrot.lane.b32.xlu0 %v639_v9, %s8063_s11  ;;  %v4732_v20 = vcombine.low %v385_v26, %v454_v60  ;;  %v4733_v21 = vcombine.high %v385_v26, %v454_v60 }
 0x221   : > { %3594 = vmatprep.subr.bf16.mxu0 %v4707_v50  ;;  %3377 = vmatmul.mubr.bf16.vlgmr.msra.gmra.mrb[4].mxu1 %v6137_v38  ;;  %v841_v0 = vsel %vm441_vm0, %v827_v11, %v828_v49  ;;  %v919_v63 = vsel %vm441_vm0, %v905_v53, %v906_v51  ;;  %v795_v53 = vld [vmem:[#allocation2 + $0x40] sm:$0xf] }
 0x222   : > { %3836 = vmatprep.subr.bf16.mxu1 %v4733_v21  ;;  %v6906_v7 = vpop.permute.xlu1 %583  ;;  %v6908_v30 = vpop.permute.xlu0 %505  ;;  %3595 = vmatpush1.bf16.msra.mxu0 %v4706_v37  ;;  %v842_v10 = vsel %vm833_vm7, %v6371_v57, %v841_v0  ;;  %v920_v9 = vsel %vm911_vm8, %v6369_v4, %v919_v63  ;;  %v873_v57 = vld [vmem:[#allocation2 + $0x40] sm:$0xf] }
 0x223   : > { %v595_v11 = vrot.slane %v6906_v7, 4  ;;  %3837 = vmatpush1.bf16.msra.mxu1 %v4732_v20  ;;  %v517_v61 = vrot.slane %v6908_v30, 4  ;;  %v4708_v26 = vcombine.low %v842_v10, %v920_v9  ;;  %v4709_v6 = vcombine.high %v842_v10, %v920_v9  ;;  %4761 = vmatprep.mubr.msk.bf16.mxu1 %vm2594_vm6, %v5629_v58 }
 0x224   : > { %1209 = vrot.lane.b32.xlu1 %v6695_v27, %s8051_s10  ;;  %1131 = vrot.lane.b32.xlu0 %v6695_v27, %s8052_s8 }
 0x225   : > { %3596 = vmatprep.subr.bf16.mxu0 %v4709_v6  ;;  %v531_v4 = vsel %vm441_vm0, %v516_v42, %v517_v61  ;;  %v609_v21 = vsel %vm441_vm0, %v594_v59, %v595_v11 }
 0x226   : > { %v6932_v43 = vpop.permute.xlu1 %1049  ;;  %v6934_v35 = vpop.permute.xlu0 %971  ;;  %3597 = vmatpush1.bf16.msra.mxu0 %v4708_v26  ;;  %v532_v60 = vsel %vm8109_vm2, %v6811_v23, %v531_v4  ;;  %v610_v37 = vsel %vm8110_vm3, %v6809_v2, %v609_v21  ;;  %vm8111_vm2 = vcmask 867328   ;;  %vm8112_vm3 = vcmask 228352  }
 0x227   : > { %v1062_v50 = vrot.slane %v6932_v43, 4  ;;  %v984_v42 = vrot.slane %v6934_v35, 4  ;;  %v4734_v20 = vcombine.low %v532_v60, %v610_v37  ;;  %v4735_v0 = vcombine.high %v532_v60, %v610_v37 }
 0x228   : > { %899 = vrot.lane.b32.xlu1 %v873_v57, %s8065_s30  ;;  %821 = vrot.lane.b32.xlu0 %v795_v53, %s8066_s7  ;;  %v951_v53 = vld [vmem:[#allocation2 + $0x40] sm:$0xf] }
 0x229   : > { %3838 = vmatprep.subr.bf16.mxu1 %v4735_v0  ;;  %v997_v23 = vsel %vm441_vm0, %v983_v28, %v984_v42  ;;  %v1075_v2 = vsel %vm441_vm0, %v1061_v39, %v1062_v50  ;;  %v1029_v39 = vld [vmem:[#allocation2 + $0x40] sm:$0xf] }
 0x22a   : > { %v6954_v59 = vpop.permute.xlu1 %739  ;;  %3839 = vmatpush1.bf16.msra.mxu1 %v4734_v20  ;;  %v6956_v63 = vpop.permute.xlu0 %661  ;;  %v998_v10 = vsel %vm8111_vm2, %v6419_v52, %v997_v23  ;;  %v1076_v9 = vsel %vm8112_vm3, %v6417_v14, %v1075_v2  ;;  %vm8114_vm2 = vcmask 220160   ;;  %vm8115_vm3 = vcmask 211968  }
 0x22b   : > { %v751_v26 = vrot.slane %v6954_v59, 4  ;;  %v673_v28 = vrot.slane %v6956_v63, 4  ;;  %v4710_v6 = vcombine.low %v998_v10, %v1076_v9  ;;  %v4711_v57 = vcombine.high %v998_v10, %v1076_v9 }
 0x22c   : > { %1365 = vrot.lane.b32.xlu1 %v6695_v27, %s8053_s16  ;;  %1287 = vrot.lane.b32.xlu0 %v6695_v27, %s8054_s15 }
 0x22d   : > { %3598 = vmatprep.subr.bf16.mxu0 %v4711_v57  ;;  %v687_v14 = vsel %vm441_vm0, %v672_v47, %v673_v28  ;;  %v765_v52 = vsel %vm441_vm0, %v750_v62, %v751_v26 }
 0x22e   : > { %v6978_v4 = vpop.permute.xlu1 %1205  ;;  %v6980_v21 = vpop.permute.xlu0 %1127  ;;  %3599 = vmatpush1.bf16.msra.mxu0 %v4710_v6  ;;  %v688_v60 = vsel %vm677_vm4, %v6835_v16, %v687_v14  ;;  %v766_v37 = vsel %vm755_vm5, %v6854_v13, %v765_v52  ;;  %v8113_v13 = vrot.slane %v6467_v29, 4  ;;  %v1185_v14 = vld [vmem:[#allocation2 + $0x40] sm:$0xf] }
 0x22f   : > { %v1218_v20 = vrot.slane %v6978_v4, 4  ;;  %v1140_v47 = vrot.slane %v6980_v21, 4  ;;  %v4736_v0 = vcombine.low %v688_v60, %v766_v37  ;;  %v4737_v23 = vcombine.high %v688_v60, %v766_v37  ;;  %v1107_v52 = vld [vmem:[#allocation2 + $0x40] sm:$0xf] }
 0x230   : > { %1055 = vrot.lane.b32.xlu1 %v1029_v39, %s8067_s12  ;;  %977 = vrot.lane.b32.xlu0 %v951_v53, %s8050_s26 }
 0x231   : > { %3840 = vmatprep.subr.bf16.mxu1 %v4737_v23  ;;  %v1153_v16 = vsel %vm441_vm0, %v1139_v54, %v1140_v47  ;;  %v1231_v62 = vsel %vm441_vm0, %v8113_v13, %v1218_v20 }
 0x232   : > { %v7000_v2 = vpop.permute.xlu1 %895  ;;  %3841 = vmatpush1.bf16.msra.mxu1 %v4736_v0  ;;  %v7002_v10 = vpop.permute.xlu0 %817  ;;  %v1154_v9 = vsel %vm8114_vm2, %v6469_v8, %v1153_v16  ;;  %v1232_v6 = vsel %vm8115_vm3, %v6467_v29, %v1231_v62  ;;  %vm8117_vm2 = vcmask 146432   ;;  %vm8118_vm3 = vcmask 138240  }
 0x233   : > { %v907_v57 = vrot.slane %v7000_v2, 4  ;;  %v829_v54 = vrot.slane %v7002_v10, 4  ;;  %v4712_v39 = vcombine.low %v1154_v9, %v1232_v6  ;;  %v4713_v53 = vcombine.high %v1154_v9, %v1232_v6 }
 0x234   : > { %1521 = vrot.lane.b32.xlu1 %v6695_v27, %s8072_s0  ;;  %1443 = vrot.lane.b32.xlu0 %v6695_v27, %s8055_s17 }
 0x235   : > { %3600 = vmatprep.subr.bf16.mxu0 %v4713_v53  ;;  %v843_v29 = vsel %vm441_vm0, %v828_v49, %v829_v54  ;;  %v921_v8 = vsel %vm441_vm0, %v906_v51, %v907_v57 }
 0x236   : > { %v7024_v60 = vpop.permute.xlu1 %1361  ;;  %v7026_v37 = vpop.permute.xlu0 %1283  ;;  %3601 = vmatpush1.bf16.msra.mxu0 %v4712_v39  ;;  %v844_v0 = vsel %vm833_vm7, %v6883_v5, %v843_v29  ;;  %v922_v23 = vsel %vm911_vm8, %v6881_v41, %v921_v8  ;;  %v8116_v41 = vrot.slane %v6515_v44, 4  ;;  %v1263_v8 = vld [vmem:[#allocation2 + $0x40] sm:$0xf] }
 0x237   : > { %v1374_v16 = vrot.slane %v7024_v60, 4  ;;  %v1296_v49 = vrot.slane %v7026_v37, 4  ;;  %v4738_v13 = vcombine.low %v844_v0, %v922_v23  ;;  %v4739_v62 = vcombine.high %v844_v0, %v922_v23 }
 0x238   : > { %1211 = vrot.lane.b32.xlu1 %v1185_v14, %s8051_s10  ;;  %1133 = vrot.lane.b32.xlu0 %v1107_v52, %s8052_s8 }
 0x239   : > { %3842 = vmatprep.subr.bf16.mxu1 %v4739_v62  ;;  %v1309_v5 = vsel %vm441_vm0, %v1295_v48, %v1296_v49  ;;  %v1387_v51 = vsel %vm441_vm0, %v8116_v41, %v1374_v16 }
 0x23a   : > { %v7046_v9 = vpop.permute.xlu1 %1051  ;;  %3843 = vmatpush1.bf16.msra.mxu1 %v4738_v13  ;;  %v7048_v6 = vpop.permute.xlu0 %973  ;;  %v1310_v39 = vsel %vm8117_vm2, %v6517_v31, %v1309_v5  ;;  %v1388_v53 = vsel %vm8118_vm3, %v6515_v44, %v1387_v51  ;;  %v1341_v44 = vld [vmem:[#allocation2 + $0x40] sm:$0xf]  ;;  %vm8119_vm2 = vcmask 867328   ;;  %vm8120_vm3 = vcmask 228352  }
 0x23b   : > { %v1063_v14 = vrot.slane %v7046_v9, 4  ;;  %v985_v48 = vrot.slane %v7048_v6, 4  ;;  %v4714_v52 = vcombine.low %v1310_v39, %v1388_v53  ;;  %v4715_v29 = vcombine.high %v1310_v39, %v1388_v53 }
 0x23c   : > { %1677 = vrot.lane.b32.xlu1 %v6695_v27, %s8056_s24  ;;  %1599 = vrot.lane.b32.xlu0 %v6695_v27, %s8057_s25 }
 0x23d   : > { %v1077_v31 = vsel %vm441_vm0, %v1062_v50, %v1063_v14  ;;  %3602 = vmatprep.subr.bf16.mxu0 %v4715_v29  ;;  %v999_v0 = vsel %vm441_vm0, %v984_v42, %v985_v48  ;;  %v8121_v42 = vrot.slane %v6563_v55, 4 }
 0x23e   : > { %v7070_v23 = vpop.permute.xlu1 %1517  ;;  %v7072_v13 = vpop.permute.xlu0 %1439  ;;  %3603 = vmatpush1.bf16.msra.mxu0 %v4714_v52  ;;  %v1000_v27 = vsel %vm8119_vm2, %v6934_v35, %v999_v0  ;;  %v1078_v50 = vsel %vm8120_vm3, %v6932_v43, %v1077_v31  ;;  %v7087_v35 = vld [vmem:[#allocation2 + $0x3c] sm:$0xff]  ;;  %v8122_v43 = vrot.slane %v6565_v25, 4  ;;  %vm8123_vm2 = vcmask 130048  }
 0x23f   : > { %v1530_v62 = vrot.slane %v7070_v23, 4  ;;  %v1452_v5 = vrot.slane %v7072_v13, 4  ;;  %v4740_v41 = vcombine.low %v1000_v27, %v1078_v50  ;;  %v4741_v51 = vcombine.high %v1000_v27, %v1078_v50 }
 0x240   : > { %1367 = vrot.lane.b32.xlu1 %v1341_v44, %s8053_s16  ;;  %1289 = vrot.lane.b32.xlu0 %v1263_v8, %s8054_s15  ;;  %vm8124_vm3 = vcmask 64512  }
 0x241   : > { %v1543_v39 = vsel %vm441_vm0, %v8121_v42, %v1530_v62  ;;  %3844 = vmatprep.subr.bf16.mxu1 %v4741_v51  ;;  %v1465_v53 = vsel %vm441_vm0, %v8122_v43, %v1452_v5  ;;  %v1419_v51 = vld [vmem:[#allocation2 + $0x40] sm:$0xf] }
 0x242   : > { %v7094_v52 = vpop.permute.xlu1 %1207  ;;  %3845 = vmatpush1.bf16.msra.mxu1 %v4740_v41  ;;  %v7096_v29 = vpop.permute.xlu0 %1129  ;;  %v1466_v31 = vsel %vm8123_vm2, %v6565_v25, %v1465_v53  ;;  %v1544_v44 = vsel %vm8124_vm3, %v6563_v55, %v1543_v39  ;;  %v1497_v41 = vld [vmem:[#allocation2 + $0x40] sm:$0xf]  ;;  %vm8125_vm2 = vcmask 220160   ;;  %vm8126_vm3 = vcmask 211968  }
 0x243   : > { %v8026_v8 = vrot.slane %v7094_v52, 4  ;;  %v8013_v0 = vrot.slane %v7096_v29, 4  ;;  %v4716_v27 = vcombine.low %v1466_v31, %v1544_v44  ;;  %v4717_v50 = vcombine.high %v1466_v31, %v1544_v44 }
 0x244   : > { %1833 = vrot.lane.b32.xlu1 %v7087_v35, %s8081_s1  ;;  %1755 = vrot.lane.b32.xlu0 %v7087_v35, %s8058_s6 }
 0x245   : > { %v1233_v25 = vsel %vm441_vm0, %v1218_v20, %v8026_v8  ;;  %v1155_v55 = vsel %vm441_vm0, %v1140_v47, %v8013_v0  ;;  %3604 = vmatprep.subr.bf16.mxu0 %v4717_v50 }
 0x246   : > { %v7118_v42 = vpop.permute.xlu1 %1673  ;;  %v7120_v39 = vpop.permute.xlu0 %1595  ;;  %3605 = vmatpush1.bf16.msra.mxu0 %v4716_v27  ;;  %v1156_v43 = vsel %vm8125_vm2, %v6980_v21, %v1155_v55  ;;  %v1234_v20 = vsel %vm8126_vm3, %v6978_v4, %v1233_v25  ;;  %v8127_v27 = vrot.slane %v6613_v12, 4  ;;  %v8128_v4 = vrot.slane %v6615_v34, 4 }
 0x247   : > { %v1686_v53 = vrot.slane %v7118_v42, 4  ;;  %v1608_v31 = vrot.slane %v7120_v39, 4  ;;  %v4742_v44 = vcombine.low %v1156_v43, %v1234_v20  ;;  %v4743_v47 = vcombine.high %v1156_v43, %v1234_v20 }
 0x248   : > { %1523 = vrot.lane.b32.xlu1 %v1497_v41, %s8072_s0  ;;  %1445 = vrot.lane.b32.xlu0 %v1419_v51, %s8055_s17  ;;  %vm8129_vm2 = vcmask 56320   ;;  %vm8130_vm3 = vcmask 48128   ;;  %s4578_s0 = sshll.u32 %s8195_s21, 3 }
 0x249   : > { %v1699_v50 = vsel %vm441_vm0, %v8127_v27, %v1686_v53  ;;  %v1621_v21 = vsel %vm441_vm0, %v8128_v4, %v1608_v31  ;;  %3846 = vmatprep.subr.bf16.mxu1 %v4743_v47  ;;  %v1575_v47 = vld [vmem:[#allocation2 + $0x40] sm:$0xf] }
 0x24a   : > { %v7140_v25 = vpop.permute.xlu1 %1363  ;;  %3847 = vmatpush1.bf16.msra.mxu1 %v4742_v44  ;;  %v7142_v55 = vpop.permute.xlu0 %1285  ;;  %v1622_v41 = vsel %vm8129_vm2, %v6615_v34, %v1621_v21  ;;  %v1700_v51 = vsel %vm8130_vm3, %v6613_v12, %v1699_v50  ;;  %v1653_v44 = vld [vmem:[#allocation2 + $0x40] sm:$0xf]  ;;  %vm8131_vm2 = vcmask 146432   ;;  %vm8132_vm3 = vcmask 138240  }
 0x24b   : > { %v8014_v43 = vrot.slane %v7140_v25, 4  ;;  %v8025_v20 = vrot.slane %v7142_v55, 4  ;;  %v4718_v27 = vcombine.low %v1622_v41, %v1700_v51  ;;  %v4719_v0 = vcombine.high %v1622_v41, %v1700_v51 }
 0x24c   : > { %1989 = vrot.lane.b32.xlu1 %v7087_v35, %s8088_s2  ;;  %1911 = vrot.lane.b32.xlu0 %v7087_v35, %s8059_s28 }
 0x24d   : > { %v1389_v34 = vsel %vm441_vm0, %v1374_v16, %v8014_v43  ;;  %v1311_v12 = vsel %vm441_vm0, %v1296_v49, %v8025_v20  ;;  %3606 = vmatprep.subr.bf16.mxu0 %v4719_v0 }
 0x24e   : > { %v7164_v50 = vpop.permute.xlu1 %1829  ;;  %v7166_v4 = vpop.permute.xlu0 %1751  ;;  %3607 = vmatpush1.bf16.msra.mxu0 %v4718_v27  ;;  %v1312_v21 = vsel %vm8131_vm2, %v7026_v37, %v1311_v12  ;;  %v1390_v16 = vsel %vm8132_vm3, %v7024_v60, %v1389_v34  ;;  %vm8133_vm2 = vcmask 457728   ;;  %vm8134_vm3 = vcmask 449536  }
 0x24f   : > { %v1842_v41 = vrot.slane %v7164_v50, 4  ;;  %v1764_v51 = vrot.slane %v7166_v4, 4  ;;  %v4744_v43 = vcombine.low %v1312_v21, %v1390_v16  ;;  %v4745_v49 = vcombine.high %v1312_v21, %v1390_v16 }
 0x250   : > { %1679 = vrot.lane.b32.xlu1 %v1653_v44, %s8056_s24  ;;  %1601 = vrot.lane.b32.xlu0 %v1575_v47, %s8057_s25 }
 0x251   : > { %v1855_v0 = vsel %vm441_vm0, %v1841_v15, %v1842_v41  ;;  %v1777_v60 = vsel %vm441_vm0, %v1763_v32, %v1764_v51  ;;  %3848 = vmatprep.subr.bf16.mxu1 %v4745_v49  ;;  %v1809_v32 = vld [vmem:[#allocation2 + $0x44] sm:$0xf] }
 0x252   : > { %v7186_v37 = vpop.permute.xlu1 %1519  ;;  %3849 = vmatpush1.bf16.msra.mxu1 %v4744_v43  ;;  %v7188_v27 = vpop.permute.xlu0 %1441  ;;  %v1778_v34 = vsel %vm8133_vm2, %v6663_v22, %v1777_v60  ;;  %v1856_v12 = vsel %vm8134_vm3, %v6661_v19, %v1855_v0  ;;  %v1731_v43 = vld [vmem:[#allocation2 + $0x44] sm:$0xf]  ;;  %vm8135_vm2 = vcmask 130048   ;;  %vm8136_vm3 = vcmask 64512  }
 0x253   : > { %v8018_v15 = vrot.slane %v7186_v37, 4  ;;  %v8015_v44 = vrot.slane %v7188_v27, 4  ;;  %v4720_v47 = vcombine.low %v1778_v34, %v1856_v12  ;;  %v4721_v21 = vcombine.high %v1778_v34, %v1856_v12 }
 0x254   : > { %2145 = vrot.lane.b32.xlu1 %v7087_v35, %s8095_s3  ;;  %2067 = vrot.lane.b32.xlu0 %v7087_v35, %s8096_s14 }
 0x255   : > { %v1545_v22 = vsel %vm441_vm0, %v1530_v62, %v8018_v15  ;;  %v1467_v19 = vsel %vm441_vm0, %v1452_v5, %v8015_v44  ;;  %3608 = vmatprep.subr.bf16.mxu0 %v4721_v21 }
 0x256   : > { %v7210_v16 = vpop.permute.xlu1 %1985  ;;  %v7212_v49 = vpop.permute.xlu0 %1907  ;;  %3609 = vmatpush1.bf16.msra.mxu0 %v4720_v47  ;;  %v1468_v0 = vsel %vm8135_vm2, %v7072_v13, %v1467_v19  ;;  %v1546_v62 = vsel %vm8136_vm3, %v7070_v23, %v1545_v22  ;;  %v8137_v47 = vrot.slane %v6711_v24, 4  ;;  %v8138_v23 = vrot.slane %v6713_v1, 4 }
 0x257   : > { %v1998_v60 = vrot.slane %v7210_v16, 4  ;;  %v1920_v34 = vrot.slane %v7212_v49, 4  ;;  %v4746_v12 = vcombine.low %v1468_v0, %v1546_v62  ;;  %v4747_v5 = vcombine.high %v1468_v0, %v1546_v62 }
 0x258   : > { %1835 = vrot.lane.b32.xlu1 %v1809_v32, %s8081_s1  ;;  %1757 = vrot.lane.b32.xlu0 %v1731_v43, %s8058_s6  ;;  %vm8139_vm2 = vcmask 56320   ;;  %vm8140_vm3 = vcmask 48128  }
 0x259   : > { %v2011_v21 = vsel %vm441_vm0, %v8137_v47, %v1998_v60  ;;  %v1933_v13 = vsel %vm441_vm0, %v8138_v23, %v1920_v34  ;;  %3850 = vmatprep.subr.bf16.mxu1 %v4747_v5  ;;  %v1887_v5 = vld [vmem:[#allocation2 + $0x44] sm:$0xf] }
 0x25a   : > { %v7232_v22 = vpop.permute.xlu1 %1675  ;;  %3851 = vmatpush1.bf16.msra.mxu1 %v4746_v12  ;;  %v7234_v19 = vpop.permute.xlu0 %1597  ;;  %v1934_v32 = vsel %vm1925_vm15, %v6713_v1, %v1933_v13  ;;  %v2012_v43 = vsel %vm2003_vm10, %v6711_v24, %v2011_v21  ;;  %v1965_v12 = vld [vmem:[#allocation2 + $0x44] sm:$0xf] }
 0x25b   : > { %v8016_v0 = vrot.slane %v7232_v22, 4  ;;  %v8017_v62 = vrot.slane %v7234_v19, 4  ;;  %v4722_v47 = vcombine.low %v1934_v32, %v2012_v43  ;;  %v4723_v44 = vcombine.high %v1934_v32, %v2012_v43 }
 0x25c   : > { %2301 = vrot.lane.b32.xlu1 %v7087_v35, %s8100_s22  ;;  %2223 = vrot.lane.b32.xlu0 %v7087_v35, %s8101_s18 }
 0x25d   : > { %v1701_v1 = vsel %vm441_vm0, %v1686_v53, %v8016_v0  ;;  %v1623_v24 = vsel %vm441_vm0, %v1608_v31, %v8017_v62  ;;  %3610 = vmatprep.subr.bf16.mxu0 %v4723_v44  ;;  %v8141_v44 = vrot.slane %v6756_v46, 4 }
 0x25e   : > { %v7256_v21 = vpop.permute.xlu1 %2141  ;;  %v7258_v23 = vpop.permute.xlu0 %2063  ;;  %3611 = vmatpush1.bf16.msra.mxu0 %v4722_v47  ;;  %v1624_v13 = vsel %vm8139_vm2, %v7120_v39, %v1623_v24  ;;  %v1702_v53 = vsel %vm8140_vm3, %v7118_v42, %v1701_v1  ;;  %v8142_v42 = vrot.slane %v6735_v45, 4  ;;  %v2043_v1 = vld [vmem:[#allocation2 + $0x44] sm:$0xf]  ;;  %vm8143_vm2 = vcmask 457728  }
 0x25f   : > { %v2154_v32 = vrot.slane %v7256_v21, 4  ;;  %v2076_v43 = vrot.slane %v7258_v23, 4  ;;  %v4748_v0 = vcombine.low %v1624_v13, %v1702_v53  ;;  %v4749_v31 = vcombine.high %v1624_v13, %v1702_v53 }
 0x260   : > { %1991 = vrot.lane.b32.xlu1 %v1965_v12, %s8088_s2  ;;  %1913 = vrot.lane.b32.xlu0 %v1887_v5, %s8059_s28  ;;  %vm8144_vm3 = vcmask 449536  }
 0x261   : > { %v2167_v47 = vsel %vm441_vm0, %v8141_v44, %v2154_v32  ;;  %v2089_v39 = vsel %vm441_vm0, %v8142_v42, %v2076_v43  ;;  %3852 = vmatprep.subr.bf16.mxu1 %v4749_v31  ;;  %v2121_v31 = vld [vmem:[#allocation2 + $0x44] sm:$0xf] }
 0x262   : > { %v7278_v24 = vpop.permute.xlu1 %1831  ;;  %3853 = vmatpush1.bf16.msra.mxu1 %v4748_v0  ;;  %v7280_v12 = vpop.permute.xlu0 %1753  ;;  %v2090_v5 = vsel %vm2081_vm11, %v6735_v45, %v2089_v39  ;;  %v2168_v13 = vsel %vm2159_vm12, %v6756_v46, %v2167_v47  ;;  %v2199_v0 = vld [vmem:[#allocation2 + $0x44] sm:$0xf] }
 0x263   : > { %v8024_v53 = vrot.slane %v7278_v24, 4  ;;  %v8023_v44 = vrot.slane %v7280_v12, 4  ;;  %v4724_v62 = vcombine.low %v2090_v5, %v2168_v13  ;;  %v4725_v15 = vcombine.high %v2090_v5, %v2168_v13 }
 0x264   : > { %2069 = vrot.lane.b32.xlu1 %v2043_v1, %s8096_s14  ;;  %2379 = vrot.lane.b32.xlu0 %v7087_v35, %s8106_s20  ;;  %s7820_s14 = scalar_lea.vmem %s7917_s4, %s4578_s0 }
 0x265   : > { %v1857_v45 = vsel %vm441_vm0, %v1842_v41, %v8024_v53  ;;  %v1779_v46 = vsel %vm441_vm0, %v1764_v51, %v8023_v44  ;;  %3612 = vmatprep.subr.bf16.mxu0 %v4725_v15 }
 0x266   : > { %v7301_v47 = vpop.permute.xlu1 %2297  ;;  %v7303_v42 = vpop.permute.xlu0 %2219  ;;  %3613 = vmatpush1.bf16.msra.mxu0 %v4724_v62  ;;  %v1780_v35 = vsel %vm8143_vm2, %v7166_v4, %v1779_v46  ;;  %v1858_v41 = vsel %vm8144_vm3, %v7164_v50, %v1857_v45  ;;  %v2355_v4 = vld [vmem:[#allocation2 + $0x44] sm:$0xf]  ;;  %vm8146_vm2 = vcmask 1031168   ;;  %vm8147_vm3 = vcmask 965632  }
 0x267   : > { %v2310_v39 = vrot.slane %v7301_v47, 4  ;;  %v2232_v1 = vrot.slane %v7303_v42, 4  ;;  %v4750_v5 = vcombine.low %v1780_v35, %v1858_v41  ;;  %v4751_v51 = vcombine.high %v1780_v35, %v1858_v41  ;;  %v2277_v62 = vld [vmem:[#allocation2 + $0x44] sm:$0xf] }
 0x268   : > { %2225 = vrot.lane.b32.xlu1 %v2199_v0, %s8101_s18  ;;  %2147 = vrot.lane.b32.xlu0 %v2121_v31, %s8095_s3  ;;  %s7815_s3 = scalar_lea.vmem %s7918_s5, %s4578_s0 }
 0x269   : > { %v2323_v15 = vsel %vm441_vm0, %v2309_v40, %v2310_v39  ;;  %v2245_v50 = vsel %vm441_vm0, %v2231_v17, %v2232_v1  ;;  %3854 = vmatprep.subr.bf16.mxu1 %v4751_v51 }
 0x26a   : > { %v7323_v13 = vpop.permute.xlu1 %1987  ;;  %3855 = vmatpush1.bf16.msra.mxu1 %v4750_v5  ;;  %v7325_v45 = vpop.permute.xlu0 %1909  ;;  %v2246_v46 = vsel %vm2237_vm14, %v6785_v56, %v2245_v50  ;;  %v2324_v40 = vsel %vm2315_vm13, %v6783_v3, %v2323_v15  ;;  %v2649_v56 = vlaneseq }
 0x26b   : > { %v8021_v0 = vrot.slane %v7323_v13, 4  ;;  %v8020_v31 = vrot.slane %v7325_v45, 4  ;;  %v4726_v35 = vcombine.low %v2246_v46, %v2324_v40  ;;  %v4727_v17 = vcombine.high %v2246_v46, %v2324_v40 }
 0x26c   : > { %2381 = vrot.lane.b32.xlu1 %v2355_v4, %s8106_s20  ;;  %2303 = vrot.lane.b32.xlu0 %v2277_v62, %s8100_s22  ;;  %v2650_v40 = vshrl.u32 %v2649_v56, 7 }
 0x26d   : > { %v2013_v41 = vsel %vm441_vm0, %v1998_v60, %v8021_v0  ;;  %v1935_v3 = vsel %vm441_vm0, %v1920_v34, %v8020_v31  ;;  %3614 = vmatprep.subr.bf16.mxu0 %v4727_v17  ;;  %v2646_v60 = vld [vmem:[#allocation9] sm:$0x3] }
 0x26e   : > { %v7345_v5 = vpop.permute.xlu1 %2065  ;;  %v7347_v51 = vpop.permute.xlu0 %2375  ;;  %3615 = vmatpush1.bf16.msra.mxu0 %v4726_v35  ;;  %v1936_v15 = vsel %vm1925_vm15, %v7212_v49, %v1935_v3  ;;  %v2014_v50 = vsel %vm2003_vm10, %v7210_v16, %v2013_v41  ;;  %v2647_v17 = vunpack.c.l.bf16 %v2646_v60  ;;  %v7371_v56 = vsub.s32 0, %v2650_v40 }
 0x26f   : > { %v8019_v4 = vrot.slane %v7345_v5, 4  ;;  %v2388_v62 = vrot.slane %v7347_v51, 4  ;;  %v4752_v46 = vcombine.low %v1936_v15, %v2014_v50  ;;  %v4753_v34 = vcombine.high %v1936_v15, %v2014_v50 }
 0x270   : > { %v7373_v15 = vsub.s32 2, %v2650_v40 }
 0x271   : > { %v2401_v35 = vsel %vm441_vm0, %v2387_v36, %v2388_v62  ;;  %3856 = vmatprep.subr.bf16.mxu1 %v4753_v34  ;;  %v2091_v16 = vsel %vm441_vm0, %v2076_v43, %v8019_v4  ;;  %v8145_v43 = vrot.slane %v6852_v18, 4  ;;  %v2652_v4 = vrot.slane %v2647_v17, %v7371_v56 }
 0x272   : > { %v7365_v49 = vpop.permute.xlu1 %428  ;;  %3857 = vmatpush1.bf16.msra.mxu1 %v4752_v46  ;;  %v7367_v41 = vpop.permute.xlu0 %2143  ;;  %v2402_v3 = vsel %vm2393_vm9, %v6837_v33, %v2401_v35  ;;  %v386_v35 = vld [vmem:[#allocation2 + $0x30] sm:$0xff] }
 0x273   : > { %v439_v36 = vrot.slane %v7365_v49, 4  ;;  %v8022_v50 = vrot.slane %v7367_v41, 4  ;;  %v4729_v60 = vcombine.high %v2402_v3, %v2402_v3  ;;  %v4728_v34 = vcombine.low %v2402_v3, %v2402_v3 }
 0x275   : > { %v455_v46 = vsel %vm441_vm0, %v8145_v43, %v439_v36  ;;  %v2169_v33 = vsel %vm441_vm0, %v2154_v32, %v8022_v50  ;;  %4730 = vmatprep.subr.msk.bf16.mxu0 %vm441_vm0, %v4729_v60  ;;  %v3585_v40 = vsel %vm441_vm0, %v4728_v34, 0  ;;  %v2092_v43 = vsel %vm2081_vm11, %v7258_v23, %v2091_v16 }
 0x276   : > { %v7390_v3 = vpop.permute.xlu1 %2299  ;;  %v7392_v31 = vpop.permute.xlu0 %2221  ;;  %3617 = vmatpush1.bf16.msra.mxu0 %v3585_v40  ;;  %v2170_v0 = vsel %vm2159_vm12, %v7256_v21, %v2169_v33  ;;  %v456_v32 = vsel %vm443_vm1, %v6852_v18, %v455_v46  ;;  %v2656_v60 = vrot.slane %v2647_v17, %v7373_v15  ;;  %v2662_v21 = vrot.slane %v2652_v4, %v7371_v56 }
 0x277   : > { %v2311_v34 = vrot.slane %v7390_v3, 4  ;;  %v8027_v50 = vrot.slane %v7392_v31, 4  ;;  %v4754_v44 = vcombine.low %v2092_v43, %v2170_v0  ;;  %v4755_v53 = vcombine.high %v2092_v43, %v2170_v0 }
 0x278   : > { %v4762_v20 = vcombine.low %v386_v35, %v456_v32  ;;  %v4763_v8 = vcombine.high %v386_v35, %v456_v32  ;;  %v2666_v46 = vrot.slane %v2656_v60, %v7371_v56  ;;  %v2893_v60 = vld [vmem:[#allocation9 + $0x2] sm:$0x3] }
 0x279   : > { %v2325_v23 = vsel %vm441_vm0, %v2310_v39, %v2311_v34  ;;  %v2247_v18 = vsel %vm441_vm0, %v2232_v1, %v8027_v50  ;;  %3623 = vmatmul.mubr.bf16.vlgmr.msra.gmra.mrb[8].mxu0 %v6137_v38  ;;  %3858 = vmatprep.subr.bf16.mxu1 %v4755_v53 }
 0x27a   : > { %4082 = vmatprep.subr.bf16.mxu0 %v4763_v8  ;;  %v7415_v0 = vpop.permute.xlu1 %585  ;;  %3859 = vmatpush1.bf16.msra.mxu1 %v4754_v44  ;;  %v7417_v17 = vpop.permute.xlu0 %507  ;;  %v2248_v39 = vsel %vm2237_vm14, %v7303_v42, %v2247_v18  ;;  %v2326_v16 = vsel %vm2315_vm13, %v7301_v47, %v2325_v23 }
 0x27b   : > { %v596_v1 = vrot.slane %v7415_v0, 4  ;;  %v518_v53 = vrot.slane %v7417_v17, 4  ;;  %4083 = vmatpush1.bf16.msra.mxu0 %v4762_v20  ;;  %v4756_v4 = vcombine.low %v2248_v39, %v2326_v16  ;;  %v4757_v8 = vcombine.high %v2248_v39, %v2326_v16  ;;  %4791 = vmatprep.mubr.msk.bf16.mxu0 %vm2594_vm6, %v5629_v58 }
 0x27c   : > { %v2639_v44 = vpop.f32.mrb[0].mxu0 }
 0x27d   : > { %v611_v42 = vsel %vm441_vm0, %v595_v11, %v596_v1  ;;  %v533_v47 = vsel %vm441_vm0, %v517_v61, %v518_v53  ;;  %3860 = vmatprep.subr.bf16.mxu1 %v4757_v8  ;;  %v2667_v20 = vmul.f32 %v2662_v21, %v2639_v44  ;;  %v2641_v33 = vpop.f32.mrb[1].mxu0 }
 0x27e   : > { %v7438_v40 = vpop.permute.xlu1 %663  ;;  %3861 = vmatpush1.bf16.msra.mxu1 %v4756_v4  ;;  %v7440_v35 = vpop.permute.xlu0 %2377  ;;  %v534_v43 = vsel %vm8146_vm2, %v6908_v30, %v533_v47  ;;  %v612_v11 = vsel %vm8147_vm3, %v6906_v7, %v611_v42  ;;  %v2668_v32 = vmul.f32 %v2666_v46, %v2641_v33  ;;  %v2894_v7 = vunpack.c.l.bf16 %v2893_v60 }
 0x27f   : > { %v674_v23 = vrot.slane %v7438_v40, 4  ;;  %v2389_v61 = vrot.slane %v7440_v35, 4  ;;  %v4764_v18 = vcombine.low %v534_v43, %v612_v11  ;;  %v4765_v21 = vcombine.high %v534_v43, %v612_v11  ;;  %v2643_v39 = vpop.f32.mrb[2].mxu0 }
 0x280   : > { %v2677_v16 = vmul.f32 %v2667_v20, %v2639_v44  ;;  %v2670_v8 = vadd.f32 %v2668_v32, %v2667_v20  ;;  %v2678_v4 = vmul.f32 %v2668_v32, %v2641_v33  ;;  %v2644_v50 = vpop.f32.mrb[3].mxu0  ;;  %v387_v32 = vld [vmem:[#allocation2 + $0x38] sm:$0xff]  ;;  %v2899_v60 = vrot.slane %v2894_v7, %v7371_v56 }
 0x281   : > { %v2403_v30 = vsel %vm441_vm0, %v2388_v62, %v2389_v61  ;;  %4084 = vmatprep.subr.bf16.mxu0 %v4765_v21  ;;  %v689_v46 = vsel %vm441_vm0, %v673_v28, %v674_v23 }
 0x282   : > { %v431_v42 = vpop.permute.xlu1 %430  ;;  %v7458_v47 = vpop.permute.xlu0 %741  ;;  %4085 = vmatpush1.bf16.msra.mxu0 %v4764_v18  ;;  %v2404_v50 = vsel %vm2393_vm9, %v7347_v51, %v2403_v30  ;;  %v2679_v44 = vadd.f32 %v2678_v4, %v2677_v16  ;;  %v2903_v16 = vrot.slane %v2894_v7, %v7373_v15 }
 0x283   : > { %v440_v20 = vrot.slane %v431_v42, 4  ;;  %v752_v33 = vrot.slane %v7458_v47, 4  ;;  %v4759_v62 = vcombine.high %v2404_v50, %v2404_v50  ;;  %v4758_v43 = vcombine.low %v2404_v50, %v2404_v50 }
 0x285   : > { %v457_v11 = vsel %vm441_vm0, %v439_v36, %v440_v20  ;;  %v767_v28 = vsel %vm441_vm0, %v751_v26, %v752_v33  ;;  %4760 = vmatprep.subr.msk.bf16.mxu1 %vm441_vm0, %v4759_v62  ;;  %v3831_v51 = vsel %vm441_vm0, %v4758_v43, 0  ;;  %v690_v36 = vsel %vm677_vm4, %v6956_v63, %v689_v46 }
 0x286   : > { %v7474_v18 = vpop.permute.xlu1 %897  ;;  %3863 = vmatpush1.bf16.msra.mxu1 %v3831_v51  ;;  %v7476_v21 = vpop.permute.xlu0 %819  ;;  %v768_v39 = vsel %vm755_vm5, %v6954_v59, %v767_v28  ;;  %v458_v26 = vsel %vm443_vm1, %v7365_v49, %v457_v11  ;;  %v2909_v49 = vrot.slane %v2899_v60, %v7371_v56  ;;  %v2913_v11 = vrot.slane %v2903_v16, %v7371_v56  ;;  %vm8148_vm1 = vmmov %vm8146_vm2 }
 0x287   : > { %v908_v4 = vrot.slane %v7474_v18, 4  ;;  %v830_v30 = vrot.slane %v7476_v21, 4  ;;  %v4766_v42 = vcombine.low %v690_v36, %v768_v39  ;;  %v4767_v50 = vcombine.high %v690_v36, %v768_v39 }
 0x288   : > { %v4792_v20 = vcombine.low %v387_v32, %v458_v26  ;;  %v4793_v62 = vcombine.high %v387_v32, %v458_v26  ;;  %vm8150_vm2 = vcmask 867328  }
 0x289   : > { %v923_v63 = vsel %vm441_vm0, %v907_v57, %v908_v4  ;;  %v845_v59 = vsel %vm441_vm0, %v829_v54, %v830_v30  ;;  %3869 = vmatmul.mubr.bf16.vlgmr.msra.gmra.mrb[8].mxu1 %v6137_v38  ;;  %4086 = vmatprep.subr.bf16.mxu0 %v4767_v50 }
 0x28a   : > { %4328 = vmatprep.subr.bf16.mxu1 %v4793_v62  ;;  %v588_v7 = vpop.permute.xlu1 %587  ;;  %v510_v46 = vpop.permute.xlu0 %509  ;;  %4087 = vmatpush1.bf16.msra.mxu0 %v4766_v42  ;;  %v846_v43 = vsel %vm833_vm7, %v7002_v10, %v845_v59  ;;  %v924_v57 = vsel %vm911_vm8, %v7000_v2, %v923_v63 }
 0x28b   : > { %v597_v28 = vrot.slane %v588_v7, 4  ;;  %4329 = vmatpush1.bf16.msra.mxu1 %v4792_v20  ;;  %v519_v54 = vrot.slane %v510_v46, 4  ;;  %v4768_v51 = vcombine.low %v846_v43, %v924_v57  ;;  %v4769_v32 = vcombine.high %v846_v43, %v924_v57  ;;  %4821 = vmatprep.mubr.msk.bf16.mxu1 %vm2594_vm6, %v5629_v58  ;;  %vm8149_vm6 = vmmov %vm8147_vm3 }
 0x28c   : > { %v2886_v60 = vpop.f32.mrb[0].mxu1  ;;  %2671 = vadd.xlane.f32.xlu0 %v2670_v8  ;;  %vm8151_vm3 = vcmask 228352  }
 0x28d   : > { %v613_v36 = vsel %vm441_vm0, %v596_v1, %v597_v28  ;;  %v535_v2 = vsel %vm441_vm0, %v518_v53, %v519_v54  ;;  %4088 = vmatprep.subr.bf16.mxu0 %v4769_v32  ;;  %v2914_v10 = vmul.f32 %v2909_v49, %v2886_v60  ;;  %v2888_v39 = vpop.f32.mrb[1].mxu1 }
 0x28e   : > { %v7512_v26 = vpop.permute.xlu1 %1053  ;;  %v7514_v16 = vpop.permute.xlu0 %975  ;;  %4089 = vmatpush1.bf16.msra.mxu0 %v4768_v51  ;;  %v536_v58 = vsel %vm8148_vm1, %v7417_v17, %v535_v2  ;;  %v614_v8 = vsel %vm8149_vm6, %v7415_v0, %v613_v36  ;;  %v2915_v42 = vmul.f32 %v2913_v11, %v2888_v39  ;;  %vm8160_vm1 = vmmov %vm8150_vm2 }
 0x28f   : > { %v1064_v1 = vrot.slane %v7512_v26, 4  ;;  %v986_v50 = vrot.slane %v7514_v16, 4  ;;  %v4794_v53 = vcombine.low %v536_v58, %v614_v8  ;;  %v4795_v20 = vcombine.high %v536_v58, %v614_v8  ;;  %v2890_v62 = vpop.f32.mrb[2].mxu1  ;;  %vm8161_vm6 = vmmov %vm8151_vm3 }
 0x290   : > { %v2923_v63 = vmul.f32 %v2914_v10, %v2886_v60  ;;  %2680 = vadd.xlane.f32.xlu1 %v2679_v44  ;;  %v2917_v59 = vadd.f32 %v2915_v42, %v2914_v10  ;;  %v2924_v49 = vmul.f32 %v2915_v42, %v2888_v39  ;;  %v2891_v7 = vpop.f32.mrb[3].mxu1 }
 0x291   : > { %v1079_v17 = vsel %vm441_vm0, %v1063_v14, %v1064_v1  ;;  %v1001_v0 = vsel %vm441_vm0, %v985_v48, %v986_v50  ;;  %4330 = vmatprep.subr.bf16.mxu1 %v4795_v20 }
 0x292   : > { %v744_v46 = vpop.permute.xlu1 %743  ;;  %4331 = vmatpush1.bf16.msra.mxu1 %v4794_v53  ;;  %v666_v43 = vpop.permute.xlu0 %665  ;;  %v1002_v44 = vsel %vm8150_vm2, %v7048_v6, %v1001_v0  ;;  %v1080_v57 = vsel %vm8151_vm3, %v7046_v9, %v1079_v17  ;;  %v2925_v11 = vadd.f32 %v2924_v49, %v2923_v63  ;;  %2918 = vadd.xlane.f32.xlu0 %v2917_v59  ;;  %vm8164_vm2 = vcmask 130048  }
 0x293   : > { %v753_v28 = vrot.slane %v744_v46, 4  ;;  %v675_v14 = vrot.slane %v666_v43, 4  ;;  %v4770_v54 = vcombine.low %v1002_v44, %v1080_v57  ;;  %v4771_v51 = vcombine.high %v1002_v44, %v1080_v57 }
 0x294   : > { %vm8165_vm3 = vcmask 64512  }
 0x295   : > { %v769_v48 = vsel %vm441_vm0, %v752_v33, %v753_v28  ;;  %v691_v32 = vsel %vm441_vm0, %v674_v23, %v675_v14  ;;  %4090 = vmatprep.subr.bf16.mxu0 %v4771_v51  ;;  %v8152_v23 = vrot.slane %v7094_v52, 4  ;;  %v8157_v28 = vrot.slane %v7142_v55, 4 }
 0x296   : > { %v7542_v60 = vpop.permute.xlu1 %1209  ;;  %v7544_v6 = vpop.permute.xlu0 %1131  ;;  %4091 = vmatpush1.bf16.msra.mxu0 %v4770_v54  ;;  %v692_v9 = vsel %vm677_vm4, %v7438_v40, %v691_v32  ;;  %v770_v36 = vsel %vm755_vm5, %v7458_v47, %v769_v48  ;;  %2926 = vadd.xlane.f32.xlu0 %v2925_v11  ;;  %v8153_v40 = vrot.slane %v7096_v29, 4  ;;  %vm8154_vm4 = vcmask 220160  }
 0x297   : > { %v1220_v2 = vrot.slane %v7542_v60, 4  ;;  %v1142_v33 = vrot.slane %v7544_v6, 4  ;;  %v4796_v10 = vcombine.low %v692_v9, %v770_v36  ;;  %v4797_v39 = vcombine.high %v692_v9, %v770_v36 }
 0x298   : > { %vm8155_vm5 = vcmask 211968  }
 0x299   : > { %v1235_v58 = vsel %vm441_vm0, %v8152_v23, %v1220_v2  ;;  %v1157_v8 = vsel %vm441_vm0, %v8153_v40, %v1142_v33  ;;  %4332 = vmatprep.subr.bf16.mxu1 %v4797_v39 }
 0x29a   : > { %v900_v47 = vpop.permute.xlu1 %899  ;;  %4333 = vmatpush1.bf16.msra.mxu1 %v4796_v10  ;;  %v822_v42 = vpop.permute.xlu0 %821  ;;  %v1158_v53 = vsel %vm8154_vm4, %v7096_v29, %v1157_v8  ;;  %v1236_v20 = vsel %vm8155_vm5, %v7094_v52, %v1235_v58 }
 0x29b   : > { %v909_v62 = vrot.slane %v900_v47, 4  ;;  %v831_v63 = vrot.slane %v822_v42, 4  ;;  %v4772_v59 = vcombine.low %v1158_v53, %v1236_v20  ;;  %v4773_v49 = vcombine.high %v1158_v53, %v1236_v20 }
 0x29c   : > { %v8163_v53 = vrot.slane %v7188_v27, 4 }
 0x29d   : > { %v925_v7 = vsel %vm441_vm0, %v908_v4, %v909_v62  ;;  %v847_v17 = vsel %vm441_vm0, %v830_v30, %v831_v63  ;;  %4092 = vmatprep.subr.bf16.mxu0 %v4773_v49  ;;  %v8156_v30 = vrot.slane %v7140_v25, 4 }
 0x29e   : > { %v7572_v0 = vpop.permute.xlu1 %1365  ;;  %v7574_v46 = vpop.permute.xlu0 %1287  ;;  %4093 = vmatpush1.bf16.msra.mxu0 %v4772_v59  ;;  %v848_v52 = vsel %vm833_vm7, %v7476_v21, %v847_v17  ;;  %v926_v29 = vsel %vm911_vm8, %v7474_v18, %v925_v7  ;;  %vm8158_vm7 = vcmask 146432   ;;  %vm8159_vm8 = vcmask 138240  }
 0x29f   : > { %v1376_v43 = vrot.slane %v7572_v0, 4  ;;  %v1298_v4 = vrot.slane %v7574_v46, 4  ;;  %v4798_v44 = vcombine.low %v848_v52, %v926_v29  ;;  %v4799_v57 = vcombine.high %v848_v52, %v926_v29 }
 0x2a1   : > { %v1391_v11 = vsel %vm441_vm0, %v8156_v30, %v1376_v43  ;;  %v1313_v21 = vsel %vm441_vm0, %v8157_v28, %v1298_v4  ;;  %4334 = vmatprep.subr.bf16.mxu1 %v4799_v57 }
 0x2a2   : > { %v1056_v18 = vpop.permute.xlu1 %1055  ;;  %4335 = vmatpush1.bf16.msra.mxu1 %v4798_v44  ;;  %v978_v14 = vpop.permute.xlu0 %977  ;;  %v1314_v54 = vsel %vm8158_vm7, %v7142_v55, %v1313_v21  ;;  %v1392_v51 = vsel %vm8159_vm8, %v7140_v25, %v1391_v11  ;;  %vm8168_vm7 = vcmask 56320   ;;  %vm8169_vm8 = vcmask 48128  }
 0x2a3   : > { %v1065_v48 = vrot.slane %v1056_v18, 4  ;;  %v987_v32 = vrot.slane %v978_v14, 4  ;;  %v4774_v9 = vcombine.low %v1314_v54, %v1392_v51  ;;  %v4775_v36 = vcombine.high %v1314_v54, %v1392_v51 }
 0x2a4   : > { %v8167_v18 = vrot.slane %v7234_v19, 4 }
 0x2a5   : > { %v1081_v10 = vsel %vm441_vm0, %v1064_v1, %v1065_v48  ;;  %v1003_v39 = vsel %vm441_vm0, %v986_v50, %v987_v32  ;;  %4094 = vmatprep.subr.bf16.mxu0 %v4775_v36  ;;  %v8162_v50 = vrot.slane %v7186_v37, 4 }
 0x2a6   : > { %v7602_v23 = vpop.permute.xlu1 %1521  ;;  %v7604_v58 = vpop.permute.xlu0 %1443  ;;  %4095 = vmatpush1.bf16.msra.mxu0 %v4774_v9  ;;  %v1004_v25 = vsel %vm8160_vm1, %v7514_v16, %v1003_v39  ;;  %v1082_v55 = vsel %vm8161_vm6, %v7512_v26, %v1081_v10  ;;  %vm8170_vm1 = vcmask 146432   ;;  %vm8171_vm6 = vcmask 138240  }
 0x2a7   : > { %v1532_v40 = vrot.slane %v7602_v23, 4  ;;  %v1454_v1 = vrot.slane %v7604_v58, 4  ;;  %v4800_v8 = vcombine.low %v1004_v25, %v1082_v55  ;;  %v4801_v47 = vcombine.high %v1004_v25, %v1082_v55 }
 0x2a9   : > { %v1547_v42 = vsel %vm441_vm0, %v8162_v50, %v1532_v40  ;;  %v1469_v16 = vsel %vm441_vm0, %v8163_v53, %v1454_v1  ;;  %4336 = vmatprep.subr.bf16.mxu1 %v4801_v47  ;;  %v8173_v53 = vrot.slane %v7280_v12, 4 }
 0x2aa   : > { %v1212_v26 = vpop.permute.xlu1 %1211  ;;  %4337 = vmatpush1.bf16.msra.mxu1 %v4800_v8  ;;  %v1134_v20 = vpop.permute.xlu0 %1133  ;;  %v1470_v62 = vsel %vm8164_vm2, %v7188_v27, %v1469_v16  ;;  %v1548_v63 = vsel %vm8165_vm3, %v7186_v37, %v1547_v42  ;;  %vm8174_vm2 = vcmask 457728   ;;  %vm8175_vm3 = vcmask 449536  }
 0x2ab   : > { %v1221_v59 = vrot.slane %v1212_v26, 4  ;;  %v1143_v49 = vrot.slane %v1134_v20, 4  ;;  %v4776_v7 = vcombine.low %v1470_v62, %v1548_v63  ;;  %v4777_v17 = vcombine.high %v1470_v62, %v1548_v63 }
 0x2ad   : > { %v1237_v52 = vsel %vm441_vm0, %v1220_v2, %v1221_v59  ;;  %v1159_v29 = vsel %vm441_vm0, %v1142_v33, %v1143_v49  ;;  %4096 = vmatprep.subr.bf16.mxu0 %v4777_v17  ;;  %v8166_v33 = vrot.slane %v7232_v22, 4 }
 0x2ae   : > { %v7632_v44 = vpop.permute.xlu1 %1677  ;;  %v7634_v57 = vpop.permute.xlu0 %1599  ;;  %4097 = vmatpush1.bf16.msra.mxu0 %v4776_v7  ;;  %v1160_v37 = vsel %vm8154_vm4, %v7544_v6, %v1159_v29  ;;  %v1238_v27 = vsel %vm8155_vm5, %v7542_v60, %v1237_v52  ;;  %vm8176_vm4 = vcmask 130048   ;;  %vm8177_vm5 = vcmask 64512  }
 0x2af   : > { %v1688_v30 = vrot.slane %v7632_v44, 4  ;;  %v1610_v2 = vrot.slane %v7634_v57, 4  ;;  %v4802_v11 = vcombine.low %v1160_v37, %v1238_v27  ;;  %v4803_v28 = vcombine.high %v1160_v37, %v1238_v27 }
 0x2b1   : > { %v1703_v21 = vsel %vm441_vm0, %v8166_v33, %v1688_v30  ;;  %v1625_v6 = vsel %vm441_vm0, %v8167_v18, %v1610_v2  ;;  %4338 = vmatprep.subr.bf16.mxu1 %v4803_v28  ;;  %v8179_v33 = vrot.slane %v7325_v45, 4 }
 0x2b2   : > { %v1368_v60 = vpop.permute.xlu1 %1367  ;;  %4339 = vmatpush1.bf16.msra.mxu1 %v4802_v11  ;;  %v1290_v14 = vpop.permute.xlu0 %1289  ;;  %v1626_v54 = vsel %vm8168_vm7, %v7234_v19, %v1625_v6  ;;  %v1704_v51 = vsel %vm8169_vm8, %v7232_v22, %v1703_v21 }
 0x2b3   : > { %v1377_v48 = vrot.slane %v1368_v60, 4  ;;  %v1299_v32 = vrot.slane %v1290_v14, 4  ;;  %v4778_v9 = vcombine.low %v1626_v54, %v1704_v51  ;;  %v4779_v36 = vcombine.high %v1626_v54, %v1704_v51 }
 0x2b5   : > { %v1393_v10 = vsel %vm441_vm0, %v1376_v43, %v1377_v48  ;;  %v1315_v39 = vsel %vm441_vm0, %v1298_v4, %v1299_v32  ;;  %4098 = vmatprep.subr.bf16.mxu0 %v4779_v36  ;;  %v8172_v4 = vrot.slane %v7278_v24, 4 }
 0x2b6   : > { %v7662_v25 = vpop.permute.xlu1 %1833  ;;  %v7664_v55 = vpop.permute.xlu0 %1755  ;;  %4099 = vmatpush1.bf16.msra.mxu0 %v4778_v9  ;;  %v1316_v22 = vsel %vm8170_vm1, %v7574_v46, %v1315_v39  ;;  %v1394_v19 = vsel %vm8171_vm6, %v7572_v0, %v1393_v10  ;;  %vm8182_vm1 = vmmov %vm8174_vm2 }
 0x2b7   : > { %v1844_v8 = vrot.slane %v7662_v25, 4  ;;  %v1766_v43 = vrot.slane %v7664_v55, 4  ;;  %v4804_v47 = vcombine.low %v1316_v22, %v1394_v19  ;;  %v4805_v50 = vcombine.high %v1316_v22, %v1394_v19  ;;  %vm8183_vm6 = vmmov %vm8175_vm3 }
 0x2b9   : > { %v1859_v42 = vsel %vm441_vm0, %v8172_v4, %v1844_v8  ;;  %v1781_v46 = vsel %vm441_vm0, %v8173_v53, %v1766_v43  ;;  %4340 = vmatprep.subr.bf16.mxu1 %v4805_v50 }
 0x2ba   : > { %v1524_v0 = vpop.permute.xlu1 %1523  ;;  %4341 = vmatpush1.bf16.msra.mxu1 %v4804_v47  ;;  %v1446_v16 = vpop.permute.xlu0 %1445  ;;  %v1782_v26 = vsel %vm8174_vm2, %v7280_v12, %v1781_v46  ;;  %v1860_v20 = vsel %vm8175_vm3, %v7278_v24, %v1859_v42  ;;  %v8181_v47 = vrot.slane %v7345_v5, 4 }
 0x2bb   : > { %v1533_v62 = vrot.slane %v1524_v0, 4  ;;  %v1455_v63 = vrot.slane %v1446_v16, 4  ;;  %v4780_v59 = vcombine.low %v1782_v26, %v1860_v20  ;;  %v4781_v49 = vcombine.high %v1782_v26, %v1860_v20 }
 0x2bd   : > { %v1549_v7 = vsel %vm441_vm0, %v1532_v40, %v1533_v62  ;;  %v1471_v17 = vsel %vm441_vm0, %v1454_v1, %v1455_v63  ;;  %4100 = vmatprep.subr.bf16.mxu0 %v4781_v49  ;;  %v8178_v1 = vrot.slane %v7323_v13, 4 }
 0x2be   : > { %v7692_v52 = vpop.permute.xlu1 %1989  ;;  %v7694_v29 = vpop.permute.xlu0 %1911  ;;  %4101 = vmatpush1.bf16.msra.mxu0 %v4780_v59  ;;  %v1472_v24 = vsel %vm8176_vm4, %v7604_v58, %v1471_v17  ;;  %v1550_v12 = vsel %vm8177_vm5, %v7602_v23, %v1549_v7  ;;  %v8184_v17 = vrot.slane %v7392_v31, 4 }
 0x2bf   : > { %v2000_v37 = vrot.slane %v7692_v52, 4  ;;  %v1922_v40 = vrot.slane %v7694_v29, 4  ;;  %v4806_v27 = vcombine.low %v1472_v24, %v1550_v12  ;;  %v4807_v11 = vcombine.high %v1472_v24, %v1550_v12 }
 0x2c1   : > { %v2015_v28 = vsel %vm441_vm0, %v8178_v1, %v2000_v37  ;;  %v1937_v58 = vsel %vm441_vm0, %v8179_v33, %v1922_v40  ;;  %4342 = vmatprep.subr.bf16.mxu1 %v4807_v11 }
 0x2c2   : > { %v1680_v23 = vpop.permute.xlu1 %1679  ;;  %4343 = vmatpush1.bf16.msra.mxu1 %v4806_v27  ;;  %v1602_v21 = vpop.permute.xlu0 %1601  ;;  %v1938_v18 = vsel %vm1925_vm15, %v7325_v45, %v1937_v58  ;;  %v2016_v6 = vsel %vm2003_vm10, %v7323_v13, %v2015_v28 }
 0x2c3   : > { %v1689_v60 = vrot.slane %v1680_v23, 4  ;;  %v1611_v14 = vrot.slane %v1602_v21, 4  ;;  %v4782_v54 = vcombine.low %v1938_v18, %v2016_v6  ;;  %v4783_v51 = vcombine.high %v1938_v18, %v2016_v6  ;;  %v3139_v18 = vld [vmem:[#allocation9 + $0x4] sm:$0x3] }
 0x2c5   : > { %v1705_v48 = vsel %vm441_vm0, %v1688_v30, %v1689_v60  ;;  %v1627_v32 = vsel %vm441_vm0, %v1610_v2, %v1611_v14  ;;  %4102 = vmatprep.subr.bf16.mxu0 %v4783_v51  ;;  %v8180_v2 = vrot.slane %v7367_v41, 4 }
 0x2c6   : > { %v7722_v9 = vpop.permute.xlu1 %2145  ;;  %v7724_v36 = vpop.permute.xlu0 %2067  ;;  %4103 = vmatpush1.bf16.msra.mxu0 %v4782_v54  ;;  %v1628_v13 = vsel %vm8168_vm7, %v7634_v57, %v1627_v32  ;;  %v1706_v45 = vsel %vm8169_vm8, %v7632_v44, %v1705_v48 }
 0x2c7   : > { %v2156_v10 = vrot.slane %v7722_v9, 4  ;;  %v2078_v30 = vrot.slane %v7724_v36, 4  ;;  %v4808_v39 = vcombine.low %v1628_v13, %v1706_v45  ;;  %v4809_v22 = vcombine.high %v1628_v13, %v1706_v45 }
 0x2c9   : > { %v2171_v19 = vsel %vm441_vm0, %v8180_v2, %v2156_v10  ;;  %v2093_v50 = vsel %vm441_vm0, %v8181_v47, %v2078_v30  ;;  %4344 = vmatprep.subr.bf16.mxu1 %v4809_v22 }
 0x2ca   : > { %v1836_v57 = vpop.permute.xlu1 %1835  ;;  %4345 = vmatpush1.bf16.msra.mxu1 %v4808_v39  ;;  %v1758_v44 = vpop.permute.xlu0 %1757  ;;  %v2094_v4 = vsel %vm2081_vm11, %v7345_v5, %v2093_v50  ;;  %v2172_v42 = vsel %vm2159_vm12, %v7367_v41, %v2171_v19 }
 0x2cb   : > { %v1845_v53 = vrot.slane %v1836_v57, 4  ;;  %v1767_v46 = vrot.slane %v1758_v44, 4  ;;  %v4784_v0 = vcombine.low %v2094_v4, %v2172_v42  ;;  %v4785_v16 = vcombine.high %v2094_v4, %v2172_v42 }
 0x2cd   : > { %v1861_v26 = vsel %vm441_vm0, %v1844_v8, %v1845_v53  ;;  %v1783_v20 = vsel %vm441_vm0, %v1766_v43, %v1767_v46  ;;  %4104 = vmatprep.subr.bf16.mxu0 %v4785_v16 }
 0x2ce   : > { %v7750_v62 = vpop.permute.xlu1 %2301  ;;  %v7752_v63 = vpop.permute.xlu0 %2223  ;;  %4105 = vmatpush1.bf16.msra.mxu0 %v4784_v0  ;;  %v1784_v5 = vsel %vm8182_vm1, %v7664_v55, %v1783_v20  ;;  %v1862_v41 = vsel %vm8183_vm6, %v7662_v25, %v1861_v26 }
 0x2cf   : > { %v2312_v59 = vrot.slane %v7750_v62, 4  ;;  %v2234_v8 = vrot.slane %v7752_v63, 4  ;;  %v4810_v49 = vcombine.low %v1784_v5, %v1862_v41  ;;  %v4811_v7 = vcombine.high %v1784_v5, %v1862_v41 }
 0x2d1   : > { %v2327_v43 = vsel %vm441_vm0, %v2311_v34, %v2312_v59  ;;  %v2249_v24 = vsel %vm441_vm0, %v8184_v17, %v2234_v8  ;;  %4346 = vmatprep.subr.bf16.mxu1 %v4811_v7  ;;  %v3385_v17 = vld [vmem:[#allocation9 + $0x6] sm:$0x3] }
 0x2d2   : > { %v1992_v12 = vpop.permute.xlu1 %1991  ;;  %4347 = vmatpush1.bf16.msra.mxu1 %v4810_v49  ;;  %v1914_v55 = vpop.permute.xlu0 %1913  ;;  %v2250_v25 = vsel %vm2237_vm14, %v7392_v31, %v2249_v24  ;;  %v2328_v27 = vsel %vm2315_vm13, %v7390_v3, %v2327_v43 }
 0x2d3   : > { %v2001_v11 = vrot.slane %v1992_v12, 4  ;;  %v1923_v1 = vrot.slane %v1914_v55, 4  ;;  %v4786_v28 = vcombine.low %v2250_v25, %v2328_v27  ;;  %v4787_v33 = vcombine.high %v2250_v25, %v2328_v27 }
 0x2d4   : > { %v3386_v27 = vunpack.c.l.bf16 %v3385_v17 }
 0x2d5   : > { %v2017_v34 = vsel %vm441_vm0, %v2000_v37, %v2001_v11  ;;  %v1939_v58 = vsel %vm441_vm0, %v1922_v40, %v1923_v1  ;;  %4106 = vmatprep.subr.bf16.mxu0 %v4787_v33  ;;  %v3140_v40 = vunpack.c.l.bf16 %v3139_v18  ;;  %v5150_v1 = vmov 0.0  }
 0x2d6   : > { %v2070_v23 = vpop.permute.xlu1 %2069  ;;  %v2380_v21 = vpop.permute.xlu0 %2379  ;;  %4107 = vmatpush1.bf16.msra.mxu0 %v4786_v28  ;;  %v1940_v31 = vsel %vm1925_vm15, %v7694_v29, %v1939_v58  ;;  %v2018_v3 = vsel %vm2003_vm10, %v7692_v52, %v2017_v34  ;;  %v3391_v28 = vrot.slane %v3386_v27, %v7371_v56  ;;  %v3395_v33 = vrot.slane %v3386_v27, %v7373_v15 }
 0x2d7   : > { %v2079_v6 = vrot.slane %v2070_v23, 4  ;;  %v2390_v60 = vrot.slane %v2380_v21, 4  ;;  %v4812_v14 = vcombine.low %v1940_v31, %v2018_v3  ;;  %v4813_v54 = vcombine.high %v1940_v31, %v2018_v3 }
 0x2d8   : > { %v3149_v57 = vrot.slane %v3140_v40, %v7373_v15  ;;  %v3401_v34 = vrot.slane %v3391_v28, %v7371_v56  ;;  %v3405_v58 = vrot.slane %v3395_v33, %v7371_v56 }
 0x2d9   : > { %v2405_v37 = vsel %vm441_vm0, %v2389_v61, %v2390_v60  ;;  %4348 = vmatprep.subr.bf16.mxu1 %v4813_v54  ;;  %v2095_v51 = vsel %vm441_vm0, %v2078_v30, %v2079_v6  ;;  %v3145_v30 = vrot.slane %v3140_v40, %v7371_v56 }
 0x2da   : > { %v2226_v48 = vpop.permute.xlu1 %2225  ;;  %4349 = vmatpush1.bf16.msra.mxu1 %v4812_v14  ;;  %v2148_v32 = vpop.permute.xlu0 %2147  ;;  %v2406_v29 = vsel %vm2393_vm9, %v7440_v35, %v2405_v37  ;;  %v2096_v35 = vsel %vm2081_vm11, %v7724_v36, %v2095_v51  ;;  %v3159_v26 = vrot.slane %v3149_v57, %v7371_v56 }
 0x2db   : > { %v2235_v52 = vrot.slane %v2226_v48, 4  ;;  %v2157_v13 = vrot.slane %v2148_v32, 4  ;;  %v4789_v45 = vcombine.high %v2406_v29, %v2406_v29  ;;  %v4788_v39 = vcombine.low %v2406_v29, %v2406_v29 }
 0x2dc   : > { %v3155_v0 = vrot.slane %v3145_v30, %v7371_v56  ;;  %v3631_v30 = vld [vmem:[#allocation9 + $0x8] sm:$0x3] }
 0x2dd   : > { %v2173_v22 = vsel %vm441_vm0, %v2156_v10, %v2157_v13  ;;  %4790 = vmatprep.subr.msk.bf16.mxu0 %vm441_vm0, %v4789_v45  ;;  %v4077_v61 = vsel %vm441_vm0, %v4788_v39, 0  ;;  %v2251_v2 = vsel %vm441_vm0, %v2234_v8, %v2235_v52 }
 0x2de   : > { %v2382_v19 = vpop.permute.xlu1 %2381  ;;  %v2304_v47 = vpop.permute.xlu0 %2303  ;;  %4109 = vmatpush1.bf16.msra.mxu0 %v4077_v61  ;;  %v2174_v50 = vsel %vm2159_vm12, %v7722_v9, %v2173_v22  ;;  %v2252_v9 = vsel %vm2237_vm14, %v7752_v63, %v2251_v2  ;;  %v3632_v2 = vunpack.c.l.bf16 %v3631_v30 }
 0x2df   : > { %v2391_v10 = vrot.slane %v2382_v19, 4  ;;  %v2313_v44 = vrot.slane %v2304_v47, 4  ;;  %v4814_v4 = vcombine.low %v2096_v35, %v2174_v50  ;;  %v4815_v42 = vcombine.high %v2096_v35, %v2174_v50 }
 0x2e0   : > { %v3637_v19 = vrot.slane %v3632_v2, %v7371_v56  ;;  %v3641_v47 = vrot.slane %v3632_v2, %v7373_v15 }
 0x2e1   : > { %v2407_v53 = vsel %vm441_vm0, %v2390_v60, %v2391_v10  ;;  %v2329_v46 = vsel %vm441_vm0, %v2312_v59, %v2313_v44  ;;  %4115 = vmatmul.mubr.bf16.vlgmr.msra.gmra.mrb[12].mxu0 %v6137_v38  ;;  %4350 = vmatprep.subr.bf16.mxu1 %v4815_v42  ;;  %v3877_v42 = vld [vmem:[#allocation9 + $0xa] sm:$0x3] }
 0x2e2   : > { %v2408_v36 = vsel %vm2393_vm9, %v2380_v21, %v2407_v53  ;;  %4351 = vmatpush1.bf16.msra.mxu1 %v4814_v4  ;;  %v2330_v16 = vsel %vm2315_vm13, %v7750_v62, %v2329_v46  ;;  %vm359_vm9 = vcmask 7168   ;;  %v3647_v35 = vrot.slane %v3637_v19, %v7371_v56 }
 0x2e3   : > { %v4816_v20 = vcombine.low %v2252_v9, %v2330_v16  ;;  %v4817_v5 = vcombine.high %v2252_v9, %v2330_v16  ;;  %v4819_v59 = vcombine.high %v2408_v36, %v2408_v36  ;;  %v4818_v8 = vcombine.low %v2408_v36, %v2408_v36  ;;  %361 = vst.msk [vmem:[%s7815_s3] sm:$0xff] %vm359_vm9, %v5150_v1 }
 0x2e4   : > { %v3132_v41 = vpop.f32.mrb[4].mxu0  ;;  %360 = vst.msk [vmem:[%s7820_s14] sm:$0xff] %vm359_vm9, %v5150_v1  ;;  %v3651_v50 = vrot.slane %v3641_v47, %v7371_v56  ;;  %v3878_v16 = vunpack.c.l.bf16 %v3877_v42 }
 0x2e5   : > { %4352 = vmatprep.subr.bf16.mxu1 %v4817_v5  ;;  %v3160_v49 = vmul.f32 %v3155_v0, %v3132_v41  ;;  %v3134_v7 = vpop.f32.mrb[5].mxu0  ;;  %v4323_v25 = vsel %vm441_vm0, %v4818_v8, 0 }
 0x2e6   : > { %4353 = vmatpush1.bf16.msra.mxu1 %v4816_v20  ;;  %v3161_v43 = vmul.f32 %v3159_v26, %v3134_v7  ;;  %v3136_v24 = vpop.f32.mrb[6].mxu0  ;;  %v3883_v20 = vrot.slane %v3878_v16, %v7371_v56  ;;  %v3887_v5 = vrot.slane %v3878_v16, %v7373_v15 }
 0x2e7   : > { %4820 = vmatprep.subr.msk.bf16.mxu1 %vm441_vm0, %v4819_v59  ;;  %v3169_v63 = vmul.f32 %v3160_v49, %v3132_v41  ;;  %v3137_v62 = vpop.f32.mrb[7].mxu0 }
 0x2e8   : > { %v3163_v12 = vadd.f32 %v3161_v43, %v3160_v49  ;;  %v3170_v55 = vmul.f32 %v3161_v43, %v3134_v7  ;;  %v3893_v41 = vrot.slane %v3883_v20, %v7371_v56  ;;  %v3897_v59 = vrot.slane %v3887_v5, %v7371_v56 }
 0x2ea   : > { %4355 = vmatpush1.bf16.msra.mxu1 %v4323_v25  ;;  %v3171_v11 = vadd.f32 %v3170_v55, %v3169_v63  ;;  %3164 = vadd.xlane.f32.xlu1 %v3163_v12  ;;  %v2676_v48 = vld [vmem:[%s7815_s3] sm:$0xff] }
 0x2eb   : > { %v2669_v37 = vld [vmem:[%s7820_s14] sm:$0xff] }
 0x2ec   : > { %3172 = vadd.xlane.f32.xlu0 %v3171_v11 }
 0x2ed   : > { %4361 = vmatmul.mubr.bf16.vlgmr.msra.gmra.mrb[12].mxu1 %v6137_v38 }
 0x2f4   : > { %v3378_v23 = vpop.f32.mrb[4].mxu1 }
 0x2f5   : > { %v3406_v21 = vmul.f32 %v3401_v34, %v3378_v23  ;;  %v3380_v31 = vpop.f32.mrb[5].mxu1 }
 0x2f6   : > { %v3407_v3 = vmul.f32 %v3405_v58, %v3380_v31  ;;  %v3382_v18 = vpop.f32.mrb[6].mxu1 }
 0x2f7   : > { %v3415_v6 = vmul.f32 %v3406_v21, %v3378_v23  ;;  %v3383_v38 = vpop.f32.mrb[7].mxu1  ;;  %v4123_v18 = vld [vmem:[#allocation9 + $0xc] sm:$0x3] }
 0x2f8   : > { %v3409_v60 = vadd.f32 %v3407_v3, %v3406_v21  ;;  %v3416_v14 = vmul.f32 %v3407_v3, %v3380_v31 }
 0x2fa   : > { %v3417_v54 = vadd.f32 %v3416_v14, %v3415_v6  ;;  %3410 = vadd.xlane.f32.xlu1 %v3409_v60  ;;  %v4124_v6 = vunpack.c.l.bf16 %v4123_v18 }
 0x2fc   : > { %3418 = vadd.xlane.f32.xlu0 %v3417_v54  ;;  %v4129_v38 = vrot.slane %v4124_v6, %v7371_v56  ;;  %v4133_v60 = vrot.slane %v4124_v6, %v7373_v15 }
 0x2fe   : > { %v4139_v14 = vrot.slane %v4129_v38, %v7371_v56  ;;  %v4143_v54 = vrot.slane %v4133_v60, %v7371_v56 }
 0x319   : > { %v2672_v40 = vpop.xlane.xlu0 %2671 }
 0x31a   : > { %v2673_v51 = vadd.f32 %v2672_v40, %v2669_v37  ;;  %v4369_v37 = vld [vmem:[#allocation9 + $0xe] sm:$0x3] }
 0x31c   : > { %2675 = vst.msk [vmem:[%s7820_s14] sm:$0xff] %vm359_vm9, %v2673_v51 }
 0x31d   : > { %v2681_v32 = vpop.xlane.xlu1 %2680 }
 0x31e   : > { %v2682_v29 = vadd.f32 %v2681_v32, %v2676_v48  ;;  %v4370_v32 = vunpack.c.l.bf16 %v4369_v37 }
 0x31f   : > { %v2919_v52 = vpop.xlane.xlu0 %2918 }
 0x320   : > { %2683 = vst.msk [vmem:[%s7815_s3] sm:$0xff] %vm359_vm9, %v2682_v29  ;;  %v4379_v2 = vrot.slane %v4370_v32, %v7373_v15 }
 0x322   : > { %v4389_v47 = vrot.slane %v4379_v2, %v7371_v56 }
 0x323   : > { %v2916_v13 = vld [vmem:[%s7820_s14] sm:$0xff]  ;;  %v2927_v39 = vpop.xlane.xlu0 %2926 }
 0x324   : > { %v2920_v45 = vadd.f32 %v2919_v52, %v2916_v13 }
 0x326   : > { %2921 = vst.msk [vmem:[%s7820_s14] sm:$0xff] %vm359_vm9, %v2920_v45 }
 0x327   : > { %v2922_v22 = vld [vmem:[%s7815_s3] sm:$0xff] }
 0x328   : > { %v2928_v61 = vadd.f32 %v2927_v39, %v2922_v22 }
 0x32a   : > { %2929 = vst.msk [vmem:[%s7815_s3] sm:$0xff] %vm359_vm9, %v2928_v61  ;;  %v4375_v61 = vrot.slane %v4370_v32, %v7371_v56 }
 0x32c   : > { %v4385_v19 = vrot.slane %v4375_v61, %v7371_v56 }
 0x32d   : > { %v3162_v25 = vld [vmem:[%s7820_s14] sm:$0xff] }
 0x331   : > { %v3168_v27 = vld [vmem:[%s7815_s3] sm:$0xff] }
 0x34c   : > { %v3624_v57 = vpop.f32.mrb[8].mxu0 }
 0x34d   : > { %v3652_v10 = vmul.f32 %v3647_v35, %v3624_v57  ;;  %v3626_v44 = vpop.f32.mrb[9].mxu0 }
 0x34e   : > { %v3653_v4 = vmul.f32 %v3651_v50, %v3626_v44  ;;  %v3628_v53 = vpop.f32.mrb[10].mxu0 }
 0x34f   : > { %v3661_v46 = vmul.f32 %v3652_v10, %v3624_v57  ;;  %v3629_v0 = vpop.f32.mrb[11].mxu0 }
 0x350   : > { %v3655_v36 = vadd.f32 %v3653_v4, %v3652_v10  ;;  %v3662_v9 = vmul.f32 %v3653_v4, %v3626_v44 }
 0x352   : > { %v3663_v26 = vadd.f32 %v3662_v9, %v3661_v46  ;;  %3656 = vadd.xlane.f32.xlu1 %v3655_v36 }
 0x354   : > { %3664 = vadd.xlane.f32.xlu0 %v3663_v26 }
 0x35c   : > { %v3870_v8 = vpop.f32.mrb[8].mxu1 }
 0x35d   : > { %v3898_v49 = vmul.f32 %v3893_v41, %v3870_v8  ;;  %v3872_v7 = vpop.f32.mrb[9].mxu1 }
 0x35e   : > { %v3899_v43 = vmul.f32 %v3897_v59, %v3872_v7  ;;  %v3874_v17 = vpop.f32.mrb[10].mxu1 }
 0x35f   : > { %v3907_v24 = vmul.f32 %v3898_v49, %v3870_v8  ;;  %v3875_v63 = vpop.f32.mrb[11].mxu1 }
 0x360   : > { %v3901_v62 = vadd.f32 %v3899_v43, %v3898_v49  ;;  %v3908_v12 = vmul.f32 %v3899_v43, %v3872_v7 }
 0x362   : > { %v3909_v55 = vadd.f32 %v3908_v12, %v3907_v24  ;;  %3902 = vadd.xlane.f32.xlu1 %v3901_v62 }
 0x364   : > { %3910 = vadd.xlane.f32.xlu0 %v3909_v55 }
 0x377   : > { %v3165_v11 = vpop.xlane.xlu1 %3164 }
 0x378   : > { %v3166_v1 = vadd.f32 %v3165_v11, %v3162_v25 }
 0x379   : > { %v3173_v28 = vpop.xlane.xlu0 %3172 }
 0x37a   : > { %v3174_v33 = vadd.f32 %v3173_v28, %v3168_v27  ;;  %3167 = vst.msk [vmem:[%s7820_s14] sm:$0xff] %vm359_vm9, %v3166_v1 }
 0x37c   : > { %3175 = vst.msk [vmem:[%s7815_s3] sm:$0xff] %vm359_vm9, %v3174_v33 }
 0x381   : > { %v3408_v34 = vld [vmem:[%s7820_s14] sm:$0xff] }
 0x383   : > { %v3414_v58 = vld [vmem:[%s7815_s3] sm:$0xff] }
 0x387   : > { %v3411_v23 = vpop.xlane.xlu1 %3410 }
 0x388   : > { %v3412_v21 = vadd.f32 %v3411_v23, %v3408_v34 }
 0x389   : > { %v3419_v31 = vpop.xlane.xlu0 %3418 }
 0x38a   : > { %v3420_v3 = vadd.f32 %v3419_v31, %v3414_v58  ;;  %3413 = vst.msk [vmem:[%s7820_s14] sm:$0xff] %vm359_vm9, %v3412_v21 }
 0x38c   : > { %3421 = vst.msk [vmem:[%s7815_s3] sm:$0xff] %vm359_vm9, %v3420_v3 }
 0x391   : > { %v3654_v0 = vld [vmem:[%s7820_s14] sm:$0xff] }
 0x393   : > { %v3660_v16 = vld [vmem:[%s7815_s3] sm:$0xff] }
 0x3b4   : > { %v4116_v40 = vpop.f32.mrb[12].mxu0 }
 0x3b5   : > { %v4144_v51 = vmul.f32 %v4139_v14, %v4116_v40  ;;  %v4118_v48 = vpop.f32.mrb[13].mxu0 }
 0x3b6   : > { %v4145_v29 = vmul.f32 %v4143_v54, %v4118_v48  ;;  %v4120_v52 = vpop.f32.mrb[14].mxu0 }
 0x3b7   : > { %v4153_v13 = vmul.f32 %v4144_v51, %v4116_v40  ;;  %v4121_v45 = vpop.f32.mrb[15].mxu0 }
 0x3b8   : > { %v4147_v39 = vadd.f32 %v4145_v29, %v4144_v51  ;;  %v4154_v22 = vmul.f32 %v4145_v29, %v4118_v48 }
 0x3ba   : > { %v4155_v30 = vadd.f32 %v4154_v22, %v4153_v13  ;;  %4148 = vadd.xlane.f32.xlu1 %v4147_v39 }
 0x3bc   : > { %4156 = vadd.xlane.f32.xlu0 %v4155_v30 }
 0x3c0   : > { %v4362_v35 = vpop.f32.mrb[12].mxu1 }
 0x3c1   : > { %v4390_v50 = vmul.f32 %v4385_v19, %v4362_v35  ;;  %v4364_v57 = vpop.f32.mrb[13].mxu1 }
 0x3c2   : > { %v4391_v10 = vmul.f32 %v4389_v47, %v4364_v57  ;;  %v4366_v44 = vpop.f32.mrb[14].mxu1 }
 0x3c3   : > { %v4399_v4 = vmul.f32 %v4390_v50, %v4362_v35  ;;  %v4367_v42 = vpop.f32.mrb[15].mxu1 }
 0x3c4   : > { %v4393_v53 = vadd.f32 %v4391_v10, %v4390_v50  ;;  %v4400_v46 = vmul.f32 %v4391_v10, %v4364_v57 }
 0x3c6   : > { %v4401_v15 = vadd.f32 %v4400_v46, %v4399_v4  ;;  %4394 = vadd.xlane.f32.xlu1 %v4393_v53 }
 0x3c8   : > { %4402 = vadd.xlane.f32.xlu0 %v4401_v15 }
 0x3df   : > { %v3657_v56 = vpop.xlane.xlu1 %3656 }
 0x3e0   : > { %v3658_v36 = vadd.f32 %v3657_v56, %v3654_v0 }
 0x3e1   : > { %v3665_v9 = vpop.xlane.xlu0 %3664 }
 0x3e2   : > { %3659 = vst.msk [vmem:[%s7820_s14] sm:$0xff] %vm359_vm9, %v3658_v36  ;;  %v3666_v26 = vadd.f32 %v3665_v9, %v3660_v16 }
 0x3e4   : > { %3667 = vst.msk [vmem:[%s7815_s3] sm:$0xff] %vm359_vm9, %v3666_v26 }
 0x3e9   : > { %v3900_v5 = vld [vmem:[%s7820_s14] sm:$0xff] }
 0x3eb   : > { %v3906_v8 = vld [vmem:[%s7815_s3] sm:$0xff] }
 0x3ef   : > { %v3903_v20 = vpop.xlane.xlu1 %3902 }
 0x3f0   : > { %v3904_v41 = vadd.f32 %v3903_v20, %v3900_v5 }
 0x3f1   : > { %v3911_v59 = vpop.xlane.xlu0 %3910 }
 0x3f2   : > { %3905 = vst.msk [vmem:[%s7820_s14] sm:$0xff] %vm359_vm9, %v3904_v41  ;;  %v3912_v49 = vadd.f32 %v3911_v59, %v3906_v8 }
 0x3f4   : > { %3913 = vst.msk [vmem:[%s7815_s3] sm:$0xff] %vm359_vm9, %v3912_v49 }
 0x3f9   : > { %v4146_v43 = vld [vmem:[%s7820_s14] sm:$0xff] }
 0x3fb   : > { %v4152_v63 = vld [vmem:[%s7815_s3] sm:$0xff] }
 0x447   : > { %v4149_v7 = vpop.xlane.xlu1 %4148 }
 0x448   : > { %v4150_v17 = vadd.f32 %v4149_v7, %v4146_v43 }
 0x449   : > { %v4157_v24 = vpop.xlane.xlu0 %4156 }
 0x44a   : > { %4151 = vst.msk [vmem:[%s7820_s14] sm:$0xff] %vm359_vm9, %v4150_v17  ;;  %v4158_v62 = vadd.f32 %v4157_v24, %v4152_v63 }
 0x44c   : > { %4159 = vst.msk [vmem:[%s7815_s3] sm:$0xff] %vm359_vm9, %v4158_v62 }
 0x451   : > { %v4392_v55 = vld [vmem:[%s7820_s14] sm:$0xff] }
 0x453   : > { %v4395_v12 = vpop.xlane.xlu1 %4394  ;;  %v4398_v11 = vld [vmem:[%s7815_s3] sm:$0xff] }
 0x454   : > { %v4396_v25 = vadd.f32 %v4395_v12, %v4392_v55 }
 0x455   : > { %v4403_v27 = vpop.xlane.xlu0 %4402 }
 0x456   : > { %4397 = vst.msk [vmem:[%s7820_s14] sm:$0xff] %vm359_vm9, %v4396_v25  ;;  %v4404_v1 = vadd.f32 %v4403_v27, %v4398_v11 }
 0x458   : > { %4405 = vst.msk [vmem:[%s7815_s3] sm:$0xff] %vm359_vm9, %v4404_v1 }
 0x459 PF: > { %s23_s23 = sadd.s32 1, %s5118_s23   ;;  %s8185_s21 = sld [smem:[#allocation15_spill]] }
 0x45a   : > { %p20_p5 = scmp.ge.s32.totalorder %s23_s23, 4   ;;  %s8186_s20 = sld [smem:[#allocation18_spill]] }
 0x45b   : > { %s8187_s26 = sld [smem:[#allocation16_spill]]  ;;  %s8188_s22 = sld [smem:[#allocation17_spill]] }
 0x45c   : > { %s8189_s18 = smov %s5102_s19  ;;  %22 = sbr.rel (!%p20_p5) target bundleno = 12 (0xc), region = 114 }
 0x45f   : > { %s8190_s19 = smov %s8185_s21 }
 0x461   : > { %s8191_s21 = smov %s8187_s26 }
 0x463   :  { %4439 = vsyncpa [#allocation5], 1 }
 0x464   :  { %4441 = vsyncpa [#allocation5 + $0x1], 1 }
 0x465   :  { %4442 = vsyncpa [#allocation7], 1 }
 0x466   :  { %4444 = vsyncpa [#allocation7 + $0x1], 1 }
 0x467   :  { %4445 = vsyncpa [#allocation10], 1 }

</bundles_post_ra>
